<compile_context>
chip_gen: v7x
topology: tpu7x:2x2x1
jax: 0.10.0
libtpu: 0.0.40
codegen_flags: <defaults>
</compile_context>

<pallas_src>
import functools

import jax
import jax.numpy as jnp
import numpy as np
from jax import lax
from jax.experimental import pallas as pl
from jax.experimental.pallas import tpu as pltpu

_MAX_K_BLOCK = 1024     # above this K, the GEMM fallback adds a K grid axis


def _round_up(v, m):
    return (v + m - 1) // m * m


def _pair(v):
    return (v, v) if isinstance(v, int) else tuple(v)


def _vmem_limit_bytes():
    """Generation-aware VMEM budget (v5e/v6e: 128 MiB parts, v7x: 64 MiB)."""
    cap = 64 * 1024 * 1024
    try:
        cap = int(getattr(pltpu.get_tpu_info(), "vmem_capacity_bytes", cap))
    except Exception:
        pass
    return min(cap * 3 // 4, 100 * 1024 * 1024)


def _fold_bn(w_hwio, gamma, beta, running_mean, running_var, eps):
    """Fold eval-mode BatchNorm into the conv weight (bf16) + an f32 bias.

    Note: folding the BN scale into bf16 weights rounds slightly differently
    than PyTorch's f32 conv followed by BN (well inside rtol/atol 1e-2).
    """
    scale = gamma / jnp.sqrt(running_var + eps)
    w_folded = (w_hwio * scale).astype(jnp.bfloat16)
    bias = (beta - running_mean * scale).astype(jnp.float32)
    return w_folded, bias


# ----------------------------------------------------------------------------
# Pallas kernels
# ----------------------------------------------------------------------------
def _conv_direct_kernel(x_ref, w_ref, b_ref, o_ref, p_ref, *,
                        KH, KW, sh, sw, dh, dw, Hq, Wq, Ho, Wo, act):
    """In-VMEM im2col + ONE wide-K MXU dot + bias/ReLU epilogue.

    x_ref : (1, sh*Hq, sw*Wq, Cin) bf16 phase-major padded image,
            element [0, py*Hq+hq, px*Wq+wq, c] == xpad[hq*sh+py, wq*sw+px, c]
    w_ref : (KH*KW*Cin, tco) bf16 (BN scale folded in)
    b_ref : (1, tco) f32
    o_ref : (1, Ho, Wo, tco) bf16
    p_ref : (Ho*Wo, KH*KW*Cin) bf16 VMEM patch scratch
    """
    cin = x_ref.shape[-1]
    for ky in range(KH):
        for kx in range(KW):
            py, qy = (ky * dh) % sh, (ky * dh) // sh
            px, qx = (kx * dw) % sw, (kx * dw) // sw
            r0 = py * Hq + qy
            c0 = px * Wq + qx
            tap = x_ref[0, r0:r0 + Ho, c0:c0 + Wo, :]          # (Ho, Wo, Cin)
            t = ky * KW + kx
            p_ref[:, t * cin:(t + 1) * cin] = tap.reshape(Ho * Wo, cin)
    # Single wide-K contraction (K = KH*KW*Cin); accumulate in f32, no scratch
    # accumulator round trips; output written once.
    y = jnp.dot(p_ref[...], w_ref[...], preferred_element_type=jnp.float32)
    y = y + b_ref[...]
    if act == "relu":
        y = jnp.maximum(y, 0.0)
    o_ref[0] = y.reshape(Ho, Wo, o_ref.shape[-1]).astype(o_ref.dtype)


def _gemm_bias_act_kernel(x_ref, w_ref, b_ref, o_ref, *, act):
    """Single-shot GEMM (full-K block): act(x @ w + bias) -> bf16."""
    y = jnp.dot(x_ref[...], w_ref[...], preferred_element_type=jnp.float32)
    y = y + b_ref[...]
    if act == "relu":
        y = jnp.maximum(y, 0.0)
    o_ref[...] = y.astype(o_ref.dtype)


def _gemm_bias_act_ktiled_kernel(x_ref, w_ref, b_ref, o_ref, acc_ref, *, act):
    """K-tiled GEMM with f32 VMEM accumulator (init/finalize via pl.when)."""
    k = pl.program_id(2)

    @pl.when(k == 0)
    def _():
        acc_ref[...] = jnp.zeros_like(acc_ref)

    acc_ref[...] += jnp.dot(x_ref[...], w_ref[...],
                            preferred_element_type=jnp.float32)

    @pl.when(k == pl.num_programs(2) - 1)
    def _():
        y = acc_ref[...] + b_ref[...]
        if act == "relu":
            y = jnp.maximum(y, 0.0)
        o_ref[...] = y.astype(o_ref.dtype)


# ----------------------------------------------------------------------------
# Wrappers around pallas_call
# ----------------------------------------------------------------------------
def conv2d_direct(xph, w2, bias, *, KH, KW, sh, sw, dh, dw, Hq, Wq, Ho, Wo, act):
    """xph: (Nb, sh*Hq, sw*Wq, Cin) bf16 phase-major padded input.
       w2 : (KH*KW*Cin, Co) bf16.  Returns (Nb, Ho, Wo, Cop) bf16 (Cout padded)."""
    Nb, HH, WW, Cin = xph.shape
    K, Co = w2.shape
    Cop = _round_up(Co, 128)                      # lane-dense output columns
    tco = 256 if Cop % 256 == 0 else 128
    wp = w2 if Cop == Co else jnp.pad(w2, ((0, 0), (0, Cop - Co)))
    bp = bias.reshape(1, Co)
    if Cop != Co:
        bp = jnp.pad(bp, ((0, 0), (0, Cop - Co)))

    return pl.pallas_call(
        functools.partial(_conv_direct_kernel, KH=KH, KW=KW, sh=sh, sw=sw,
                          dh=dh, dw=dw, Hq=Hq, Wq=Wq, Ho=Ho, Wo=Wo, act=act),
        out_shape=jax.ShapeDtypeStruct((Nb, Ho, Wo, Cop), jnp.bfloat16),
        grid=(Nb, Cop // tco),
        in_specs=[
            pl.BlockSpec((1, HH, WW, Cin), lambda n, c: (n, 0, 0, 0)),
            pl.BlockSpec((K, tco), lambda n, c: (0, c)),
            pl.BlockSpec((1, tco), lambda n, c: (0, c)),
        ],
        out_specs=pl.BlockSpec((1, Ho, Wo, tco), lambda n, c: (n, 0, 0, c)),
        scratch_shapes=[pltpu.VMEM((Ho * Wo, K), jnp.bfloat16)],
        compiler_params=pltpu.CompilerParams(
            dimension_semantics=("parallel", "parallel"),
            vmem_limit_bytes=_vmem_limit_bytes()),
    )(xph, wp, bp)


def _weight_spec_ktiled(tk, tn):
    idx = lambda i, j, k: (k, j)
    try:  # deeper weight pipelining (review: helps short K loops on v6e/v5e)
        return pl.BlockSpec((tk, tn), idx, pipeline_mode=pl.Buffered(3))
    except Exception:  # older jax without pipeline_mode / Buffered
        return pl.BlockSpec((tk, tn), idx)


def fused_gemm_bias_act(x, w, bias, act):
    """act(x @ w + bias) -> bf16.  x: [M,K] bf16, w: [K,N] bf16 (scale folded),
    bias: [N] f32."""
    M, K = x.shape
    Nc = w.shape[1]
    Np = _round_up(Nc, 128)                        # lane-dense output columns
    tn = 256 if Np % 256 == 0 else 128

    if M >= 512:                                   # bigger M tile: fewer steps
        tm = 512
    elif M >= 256:
        tm = 256
    else:
        tm = _round_up(M, 16)
    Mp = _round_up(M, tm)

    if K > _MAX_K_BLOCK:                           # large K -> K grid axis
        tk = next((c for c in (512, 384, 256) if K % c == 0), 512)
        Kp = _round_up(K, tk)
    else:                                          # small K -> full-extent block
        tk = Kp = K

    xp = x if (Mp == M and Kp == K) else jnp.pad(x, ((0, Mp - M), (0, Kp - K)))
    wp = w if (Kp == K and Np == Nc) else jnp.pad(w, ((0, Kp - K), (0, Np - Nc)))
    bp = bias.reshape(1, Nc)
    if Np != Nc:
        bp = jnp.pad(bp, ((0, 0), (0, Np - Nc)))

    vmem_limit = _vmem_limit_bytes()
    if K <= _MAX_K_BLOCK:
        out = pl.pallas_call(
            functools.partial(_gemm_bias_act_kernel, act=act),
            out_shape=jax.ShapeDtypeStruct((Mp, Np), jnp.bfloat16),
            grid=(Mp // tm, Np // tn),
            in_specs=[
                pl.BlockSpec((tm, Kp), lambda i, j: (i, 0)),
                pl.BlockSpec((Kp, tn), lambda i, j: (0, j)),
                pl.BlockSpec((1, tn), lambda i, j: (0, j)),
            ],
            out_specs=pl.BlockSpec((tm, tn), lambda i, j: (i, j)),
            compiler_params=pltpu.CompilerParams(
                dimension_semantics=("parallel", "parallel"),
                vmem_limit_bytes=vmem_limit),
        )(xp, wp, bp)
    else:
        out = pl.pallas_call(
            functools.partial(_gemm_bias_act_ktiled_kernel, act=act),
            out_shape=jax.ShapeDtypeStruct((Mp, Np), jnp.bfloat16),
            grid=(Mp // tm, Np // tn, Kp // tk),
            in_specs=[
                pl.BlockSpec((tm, tk), lambda i, j, k: (i, k)),
                _weight_spec_ktiled(tk, tn),
                pl.BlockSpec((1, tn), lambda i, j, k: (0, j)),
            ],
            out_specs=pl.BlockSpec((tm, tn), lambda i, j, k: (i, j)),
            scratch_shapes=[pltpu.VMEM((tm, tn), jnp.float32)],
            compiler_params=pltpu.CompilerParams(
                dimension_semantics=("parallel", "parallel", "arbitrary"),
                vmem_limit_bytes=vmem_limit),
        )(xp, wp, bp)
    return out[:M, :Nc]


# ----------------------------------------------------------------------------
# BasicConv2d forward (PyTorch semantics, NCHW in/out)
# ----------------------------------------------------------------------------
def basic_conv2d_apply(x_nchw, w_hwio, gamma, beta, running_mean, running_var, *,
                       stride=1, padding=0, dilation=1, relu=False, eps=1e-5,
                       force_gemm=False, out_dtype=jnp.float32):
    sh, sw = _pair(stride)
    ph, pw = _pair(padding)
    dh, dw = _pair(dilation)
    KH, KW, Cin, Co = w_hwio.shape
    K = KH * KW * Cin
    w_folded, bias = _fold_bn(w_hwio, gamma, beta, running_mean, running_var, eps)
    act = "relu" if relu else "none"

    # Cast to bf16 BEFORE the layout transforms: transpose + pad move half the bytes.
    x = jnp.transpose(x_nchw.astype(jnp.bfloat16), (0, 2, 3, 1))        # -> NHWC bf16
    Nb, H, W, _ = x.shape
    Ho = (H + 2 * ph - dh * (KH - 1) - 1) // sh + 1
    Wo = (W + 2 * pw - dw * (KW - 1) - 1) // sw + 1
    Hp, Wp = H + 2 * ph, W + 2 * pw
    Hq, Wq = -(-Hp // sh), -(-Wp // sw)            # per-phase extents
    # single pad: conv padding + right/bottom alignment to a multiple of the stride
    xp = jnp.pad(x, ((0, 0),
                     (ph, ph + Hq * sh - Hp),
                     (pw, pw + Wq * sw - Wp),
                     (0, 0)))

    Cop = _round_up(Co, 128)
    tco = 256 if Cop % 256 == 0 else 128
    vmem_estimate = (2 * (sh * Hq) * (sw * Wq) * Cin * 2   # double-buffered bf16 input
                     + 2 * K * tco * 2 + tco * 4           # weights + bias
                     + 2 * Ho * Wo * tco * 2               # double-buffered bf16 output
                     + Ho * Wo * K * 2                     # bf16 patch scratch
                     + 2 * Ho * Wo * tco * 4)              # epilogue temporaries
    use_direct = (not force_gemm) and vmem_estimate <= _vmem_limit_bytes() // 2

    if use_direct:
        if sh == 1 and sw == 1:
            xph = xp
        else:
            # phase-major relayout: [n, py*Hq+hq, px*Wq+wq, c] <- [n, hq*sh+py, wq*sw+px, c]
            xph = (xp.reshape(Nb, Hq, sh, Wq, sw, Cin)
                     .transpose(0, 2, 1, 4, 3, 5)
                     .reshape(Nb, sh * Hq, sw * Wq, Cin))
        y = conv2d_direct(xph, w_folded.reshape(K, Co), bias, KH=KH, KW=KW,
                          sh=sh, sw=sw, dh=dh, dw=dw, Hq=Hq, Wq=Wq,
                          Ho=Ho, Wo=Wo, act=act)
        y = y[..., :Co]                            # crop fuses into transpose below
    else:
        # TODO(synk): replace this HBM im2col with an H-strip-tiled direct kernel.
        cols = []
        for ky in range(KH):
            for kx in range(KW):
                y0, x0 = ky * dh, kx * dw
                cols.append(xp[:, y0:y0 + sh * (Ho - 1) + 1:sh,
                               x0:x0 + sw * (Wo - 1) + 1:sw, :])
        X = jnp.concatenate(cols, axis=-1).reshape(Nb * Ho * Wo, K)
        y = fused_gemm_bias_act(X, w_folded.reshape(K, Co), bias, act)
        y = y.reshape(Nb, Ho, Wo, Co)
    # Module boundary: crop + NCHW transpose + dtype cast fuse into one XLA op.
    return jnp.transpose(y, (0, 3, 1, 2)).astype(out_dtype)


def basic_conv2d_reference(x_nchw, w_hwio, gamma, beta, running_mean, running_var, *,
                           stride=1, padding=0, dilation=1, relu=False, eps=1e-5):
    """Plain-JAX reference using the same bf16 operands / f32 accumulation."""
    sh, sw = _pair(stride)
    ph, pw = _pair(padding)
    dh, dw = _pair(dilation)
    w_folded, bias = _fold_bn(w_hwio, gamma, beta, running_mean, running_var, eps)
    x = jnp.transpose(x_nchw.astype(jnp.bfloat16), (0, 2, 3, 1))
    y = lax.conv_general_dilated(
        x, w_folded, window_strides=(sh, sw), padding=[(ph, ph), (pw, pw)],
        rhs_dilation=(dh, dw), dimension_numbers=("NHWC", "HWIO", "NHWC"),
        preferred_element_type=jnp.float32)
    y = y + bias
    if relu:
        y = jnp.maximum(y, 0.0)
    return jnp.transpose(y, (0, 3, 1, 2))


def make_basic_conv2d_params(key, cin, cout, kernel_size):
    kh, kw = _pair(kernel_size)
    ks = jax.random.split(key, 5)
    w = 0.1 * jax.random.normal(ks[0], (kh, kw, cin, cout), jnp.float32)
    gamma = 1.0 + 0.1 * jax.random.normal(ks[1], (cout,), jnp.float32)
    beta = 0.1 * jax.random.normal(ks[2], (cout,), jnp.float32)
    running_mean = 0.1 * jax.random.normal(ks[3], (cout,), jnp.float32)
    running_var = 1.0 + 0.1 * jnp.abs(jax.random.normal(ks[4], (cout,), jnp.float32))
    return w, gamma, beta, running_mean, running_var


# ----------------------------------------------------------------------------
if __name__ == "__main__":
    root = jax.random.PRNGKey(0)
    configs = [
        # direct path, stride 1 (K = 36 fused single dot)
        dict(cin=4, cout=32, k=3, stride=1, padding=1, dilation=1, relu=True,
             force_gemm=False),
        # direct path, stride 2 via phase-major relayout
        dict(cin=4, cout=32, k=3, stride=2, padding=1, dilation=1, relu=False,
             force_gemm=False),
        # direct path, stride 2, wide K = 1152 single dot
        dict(cin=128, cout=40, k=3, stride=2, padding=1, dilation=1, relu=True,
             force_gemm=False),
        # GEMM fallback coverage: single full-K block
        dict(cin=4, cout=32, k=3, stride=2, padding=1, dilation=1, relu=False,
             force_gemm=True),
        # GEMM fallback coverage: K grid axis + f32 accumulator (K = 1152)
        dict(cin=128, cout=40, k=3, stride=2, padding=1, dilation=1, relu=True,
             force_gemm=True),
    ]

    for t, cfg in enumerate(configs):
        kparam, kinput = jax.random.split(jax.random.fold_in(root, t))
        w, gamma, beta, rm, rv = make_basic_conv2d_params(
            kparam, cfg["cin"], cfg["cout"], cfg["k"])
        x = jax.random.normal(kinput, (2, cfg["cin"], 16, 16), jnp.float32)

        fwd = jax.jit(functools.partial(
            basic_conv2d_apply, stride=cfg["stride"], padding=cfg["padding"],
            dilation=cfg["dilation"], relu=cfg["relu"],
            force_gemm=cfg["force_gemm"]))
        y = fwd(x, w, gamma, beta, rm, rv)
        jax.block_until_ready(y)

        y_ref = basic_conv2d_reference(
            x, w, gamma, beta, rm, rv, stride=cfg["stride"],
            padding=cfg["padding"], dilation=cfg["dilation"], relu=cfg["relu"])

        ho = (16 + 2 * cfg["padding"] - cfg["dilation"] * (cfg["k"] - 1) - 1) \
            // cfg["stride"] + 1
        assert y.shape == (2, cfg["cout"], ho, ho)
        np.testing.assert_allclose(np.asarray(y), np.asarray(y_ref),
                                   rtol=1e-2, atol=1e-2)

    print("KERNEL_OK")
</pallas_src>

<mosaic_0001>
module attributes {stable_mosaic.version = 11 : i64} {
  func.func @_conv_direct_kernel(%arg0: i32, %arg1: i32, %arg2: memref<1x18x18x4xbf16, #tpu.memory_space<vmem>>, %arg3: memref<36x128xbf16, #tpu.memory_space<vmem>>, %arg4: memref<1x128xf32, #tpu.memory_space<vmem>>, %arg5: memref<1x16x16x128xbf16, #tpu.memory_space<vmem>>, %arg6: memref<256x36xbf16, #tpu.memory_space<vmem>>) attributes {dimension_semantics = [#tpu.dimension_semantics<parallel>, #tpu.dimension_semantics<parallel>], iteration_bounds = array<i64: 2, 1>, scalar_prefetch = 0 : i64, scratch_operands = 1 : i64, tpu.core_type = #tpu.core_type<tc>, window_params = [{transform_indices = @transform_0, window_bounds = array<i64: 1, 18, 18, 4>}, {transform_indices = @transform_1, window_bounds = array<i64: 36, 128>}, {transform_indices = @transform_2, window_bounds = array<i64: 1, 128>}, {transform_indices = @transform_3, window_bounds = array<i64: 1, 16, 16, 128>}]} {
    %c0 = arith.constant 0 : index
    %c0_0 = arith.constant 0 : index
    %c0_1 = arith.constant 0 : index
    %c0_2 = arith.constant 0 : index
    %0 = vector.load %arg2[%c0, %c0_0, %c0_1, %c0_2] : memref<1x18x18x4xbf16, #tpu.memory_space<vmem>>, vector<1x16x16x4xbf16>
    %1 = vector.shape_cast %0 : vector<1x16x16x4xbf16> to vector<16x16x4xbf16>
    %2 = vector.shape_cast %1 : vector<16x16x4xbf16> to vector<256x4xbf16>
    %c0_3 = arith.constant 0 : index
    %c0_4 = arith.constant 0 : index
    %3 = vector.load %arg6[%c0_3, %c0_4] : memref<256x36xbf16, #tpu.memory_space<vmem>>, vector<256x4xbf16>
    tpu.vector_store %arg6[%c0_3, %c0_4], %2 {strides = array<i32>} : memref<256x36xbf16, #tpu.memory_space<vmem>>, vector<256x4xbf16>,
    %c0_5 = arith.constant 0 : index
    %c0_6 = arith.constant 0 : index
    %c1 = arith.constant 1 : index
    %c0_7 = arith.constant 0 : index
    %4 = vector.load %arg2[%c0_5, %c0_6, %c1, %c0_7] : memref<1x18x18x4xbf16, #tpu.memory_space<vmem>>, vector<1x16x16x4xbf16>
    %5 = vector.shape_cast %4 : vector<1x16x16x4xbf16> to vector<16x16x4xbf16>
    %6 = vector.shape_cast %5 : vector<16x16x4xbf16> to vector<256x4xbf16>
    %c0_8 = arith.constant 0 : index
    %c4 = arith.constant 4 : index
    %7 = vector.load %arg6[%c0_8, %c4] : memref<256x36xbf16, #tpu.memory_space<vmem>>, vector<256x4xbf16>
    tpu.vector_store %arg6[%c0_8, %c4], %6 {strides = array<i32>} : memref<256x36xbf16, #tpu.memory_space<vmem>>, vector<256x4xbf16>,
    %c0_9 = arith.constant 0 : index
    %c0_10 = arith.constant 0 : index
    %c2 = arith.constant 2 : index
    %c0_11 = arith.constant 0 : index
    %8 = vector.load %arg2[%c0_9, %c0_10, %c2, %c0_11] : memref<1x18x18x4xbf16, #tpu.memory_space<vmem>>, vector<1x16x16x4xbf16>
    %9 = vector.shape_cast %8 : vector<1x16x16x4xbf16> to vector<16x16x4xbf16>
    %10 = vector.shape_cast %9 : vector<16x16x4xbf16> to vector<256x4xbf16>
    %c0_12 = arith.constant 0 : index
    %c8 = arith.constant 8 : index
    %11 = vector.load %arg6[%c0_12, %c8] : memref<256x36xbf16, #tpu.memory_space<vmem>>, vector<256x4xbf16>
    tpu.vector_store %arg6[%c0_12, %c8], %10 {strides = array<i32>} : memref<256x36xbf16, #tpu.memory_space<vmem>>, vector<256x4xbf16>,
    %c0_13 = arith.constant 0 : index
    %c1_14 = arith.constant 1 : index
    %c0_15 = arith.constant 0 : index
    %c0_16 = arith.constant 0 : index
    %12 = vector.load %arg2[%c0_13, %c1_14, %c0_15, %c0_16] : memref<1x18x18x4xbf16, #tpu.memory_space<vmem>>, vector<1x16x16x4xbf16>
    %13 = vector.shape_cast %12 : vector<1x16x16x4xbf16> to vector<16x16x4xbf16>
    %14 = vector.shape_cast %13 : vector<16x16x4xbf16> to vector<256x4xbf16>
    %c0_17 = arith.constant 0 : index
    %c12 = arith.constant 12 : index
    %15 = vector.load %arg6[%c0_17, %c12] : memref<256x36xbf16, #tpu.memory_space<vmem>>, vector<256x4xbf16>
    tpu.vector_store %arg6[%c0_17, %c12], %14 {strides = array<i32>} : memref<256x36xbf16, #tpu.memory_space<vmem>>, vector<256x4xbf16>,
    %c0_18 = arith.constant 0 : index
    %c1_19 = arith.constant 1 : index
    %c1_20 = arith.constant 1 : index
    %c0_21 = arith.constant 0 : index
    %16 = vector.load %arg2[%c0_18, %c1_19, %c1_20, %c0_21] : memref<1x18x18x4xbf16, #tpu.memory_space<vmem>>, vector<1x16x16x4xbf16>
    %17 = vector.shape_cast %16 : vector<1x16x16x4xbf16> to vector<16x16x4xbf16>
    %18 = vector.shape_cast %17 : vector<16x16x4xbf16> to vector<256x4xbf16>
    %c0_22 = arith.constant 0 : index
    %c16 = arith.constant 16 : index
    %19 = vector.load %arg6[%c0_22, %c16] : memref<256x36xbf16, #tpu.memory_space<vmem>>, vector<256x4xbf16>
    tpu.vector_store %arg6[%c0_22, %c16], %18 {strides = array<i32>} : memref<256x36xbf16, #tpu.memory_space<vmem>>, vector<256x4xbf16>,
    %c0_23 = arith.constant 0 : index
    %c1_24 = arith.constant 1 : index
    %c2_25 = arith.constant 2 : index
    %c0_26 = arith.constant 0 : index
    %20 = vector.load %arg2[%c0_23, %c1_24, %c2_25, %c0_26] : memref<1x18x18x4xbf16, #tpu.memory_space<vmem>>, vector<1x16x16x4xbf16>
    %21 = vector.shape_cast %20 : vector<1x16x16x4xbf16> to vector<16x16x4xbf16>
    %22 = vector.shape_cast %21 : vector<16x16x4xbf16> to vector<256x4xbf16>
    %c0_27 = arith.constant 0 : index
    %c20 = arith.constant 20 : index
    %23 = vector.load %arg6[%c0_27, %c20] : memref<256x36xbf16, #tpu.memory_space<vmem>>, vector<256x4xbf16>
    tpu.vector_store %arg6[%c0_27, %c20], %22 {strides = array<i32>} : memref<256x36xbf16, #tpu.memory_space<vmem>>, vector<256x4xbf16>,
    %c0_28 = arith.constant 0 : index
    %c2_29 = arith.constant 2 : index
    %c0_30 = arith.constant 0 : index
    %c0_31 = arith.constant 0 : index
    %24 = vector.load %arg2[%c0_28, %c2_29, %c0_30, %c0_31] : memref<1x18x18x4xbf16, #tpu.memory_space<vmem>>, vector<1x16x16x4xbf16>
    %25 = vector.shape_cast %24 : vector<1x16x16x4xbf16> to vector<16x16x4xbf16>
    %26 = vector.shape_cast %25 : vector<16x16x4xbf16> to vector<256x4xbf16>
    %c0_32 = arith.constant 0 : index
    %c24 = arith.constant 24 : index
    %27 = vector.load %arg6[%c0_32, %c24] : memref<256x36xbf16, #tpu.memory_space<vmem>>, vector<256x4xbf16>
    tpu.vector_store %arg6[%c0_32, %c24], %26 {strides = array<i32>} : memref<256x36xbf16, #tpu.memory_space<vmem>>, vector<256x4xbf16>,
    %c0_33 = arith.constant 0 : index
    %c2_34 = arith.constant 2 : index
    %c1_35 = arith.constant 1 : index
    %c0_36 = arith.constant 0 : index
    %28 = vector.load %arg2[%c0_33, %c2_34, %c1_35, %c0_36] : memref<1x18x18x4xbf16, #tpu.memory_space<vmem>>, vector<1x16x16x4xbf16>
    %29 = vector.shape_cast %28 : vector<1x16x16x4xbf16> to vector<16x16x4xbf16>
    %30 = vector.shape_cast %29 : vector<16x16x4xbf16> to vector<256x4xbf16>
    %c0_37 = arith.constant 0 : index
    %c28 = arith.constant 28 : index
    %31 = vector.load %arg6[%c0_37, %c28] : memref<256x36xbf16, #tpu.memory_space<vmem>>, vector<256x4xbf16>
    tpu.vector_store %arg6[%c0_37, %c28], %30 {strides = array<i32>} : memref<256x36xbf16, #tpu.memory_space<vmem>>, vector<256x4xbf16>,
    %c0_38 = arith.constant 0 : index
    %c2_39 = arith.constant 2 : index
    %c2_40 = arith.constant 2 : index
    %c0_41 = arith.constant 0 : index
    %32 = vector.load %arg2[%c0_38, %c2_39, %c2_40, %c0_41] : memref<1x18x18x4xbf16, #tpu.memory_space<vmem>>, vector<1x16x16x4xbf16>
    %33 = vector.shape_cast %32 : vector<1x16x16x4xbf16> to vector<16x16x4xbf16>
    %34 = vector.shape_cast %33 : vector<16x16x4xbf16> to vector<256x4xbf16>
    %c0_42 = arith.constant 0 : index
    %c32 = arith.constant 32 : index
    %35 = vector.load %arg6[%c0_42, %c32] : memref<256x36xbf16, #tpu.memory_space<vmem>>, vector<256x4xbf16>
    tpu.vector_store %arg6[%c0_42, %c32], %34 {strides = array<i32>} : memref<256x36xbf16, #tpu.memory_space<vmem>>, vector<256x4xbf16>,
    %c0_43 = arith.constant 0 : index
    %c0_44 = arith.constant 0 : index
    %36 = vector.load %arg6[%c0_43, %c0_44] : memref<256x36xbf16, #tpu.memory_space<vmem>>, vector<256x36xbf16>
    %c0_45 = arith.constant 0 : index
    %c0_46 = arith.constant 0 : index
    %37 = vector.load %arg3[%c0_45, %c0_46] : memref<36x128xbf16, #tpu.memory_space<vmem>>, vector<36x128xbf16>
    %cst = arith.constant dense<0.000000e+00> : vector<256x128xf32>
    %38 = tpu.matmul %36, %37, %cst {dimension_numbers = #tpu.dot_dimension_numbers<[1], [0], [0], [1], [0, 0, 1, 1], [], []>} : vector<256x36xbf16>, vector<36x128xbf16>, vector<256x128xf32> -> vector<256x128xf32>
    %c0_47 = arith.constant 0 : index
    %c0_48 = arith.constant 0 : index
    %39 = vector.load %arg4[%c0_47, %c0_48] : memref<1x128xf32, #tpu.memory_space<vmem>>, vector<1x128xf32>
    %40 = vector.broadcast %39 : vector<1x128xf32> to vector<256x128xf32>
    %41 = arith.addf %38, %40 : vector<256x128xf32>
    %cst_49 = arith.constant 0.000000e+00 : f32
    %42 = vector.broadcast %cst_49 : f32 to vector<256x128xf32>
    %43 = arith.maximumf %41, %42 : vector<256x128xf32>
    %44 = vector.shape_cast %43 : vector<256x128xf32> to vector<16x16x128xf32>
    %45 = arith.truncf %44 : vector<16x16x128xf32> to vector<16x16x128xbf16>
    %c0_50 = arith.constant 0 : index
    %c0_51 = arith.constant 0 : index
    %c0_52 = arith.constant 0 : index
    %c0_53 = arith.constant 0 : index
    %46 = vector.load %arg5[%c0_50, %c0_51, %c0_52, %c0_53] : memref<1x16x16x128xbf16, #tpu.memory_space<vmem>>, vector<1x16x16x128xbf16>
    %47 = vector.shape_cast %46 : vector<1x16x16x128xbf16> to vector<16x16x128xbf16>
    %48 = vector.shape_cast %45 : vector<16x16x128xbf16> to vector<1x16x16x128xbf16>
    tpu.vector_store %arg5[%c0_50, %c0_51, %c0_52, %c0_53], %48 {strides = array<i32>} : memref<1x16x16x128xbf16, #tpu.memory_space<vmem>>, vector<1x16x16x128xbf16>,
    return
  }
  func.func @transform_0(%arg0: i32, %arg1: i32) -> (i32, i32, i32, i32) {
    %c0_i32 = arith.constant 0 : i32
    %c0_i32_0 = arith.constant 0 : i32
    %c0_i32_1 = arith.constant 0 : i32
    %c0_i32_2 = arith.constant 0 : i32
    return %arg0, %c0_i32, %c0_i32_0, %c0_i32_1 : i32, i32, i32, i32
  }
  func.func @transform_1(%arg0: i32, %arg1: i32) -> (i32, i32) {
    %c0_i32 = arith.constant 0 : i32
    %c0_i32_0 = arith.constant 0 : i32
    return %c0_i32, %arg1 : i32, i32
  }
  func.func @transform_2(%arg0: i32, %arg1: i32) -> (i32, i32) {
    %c0_i32 = arith.constant 0 : i32
    %c0_i32_0 = arith.constant 0 : i32
    return %c0_i32, %arg1 : i32, i32
  }
  func.func @transform_3(%arg0: i32, %arg1: i32) -> (i32, i32, i32, i32) {
    %c0_i32 = arith.constant 0 : i32
    %c0_i32_0 = arith.constant 0 : i32
    %c0_i32_1 = arith.constant 0 : i32
    return %arg0, %c0_i32, %c0_i32_0, %arg1 : i32, i32, i32, i32
  }
}

</mosaic_0001>

<bundles_post_ra>
// kernel: basic_conv2d_apply.1
= control target key start
LH: loop header
LB: loop body
LE: loop exit
PB: predicated region body
PF: predicated region fallthrough
CT: control target
= control target key end

     0   :  { %s4723_s12 = smov 0   ;;  %s4725_s13 = smov 0   ;;  %s5914_s0 = inlined_call_operand.vmem [shape: bf16[2,18,18,4], index: 0, kind: input, shape index: {}]   ;;  %s5915_s1 = inlined_call_operand.vmem [shape: bf16[36,128], index: 1, kind: input, shape index: {}]   ;;  %s5916_s2 = inlined_call_operand.vmem [shape: f32[1,128], index: 2, kind: input, shape index: {}]   ;;  %s5917_s3 = inlined_call_operand.vmem [shape: bf16[2,16,16,128], index: 3, kind: output, shape index: {}]  }
   0x1   :  { %s4727_s14 = smov 0  }
   0x2 LB: > { %s25_s15 = sadd.s32 1, %s4689_s13  ;;  %p3888_p0 = scmp.ge.s32.totalorder %s4693_s14, 1  ;;  %s4693_s14 = sphi %s4727_s14, %s13_s14   ;;  %s4689_s13 = sphi %s4725_s13, %s5923_s13   ;;  %s4685_s12 = sphi %s4723_s12, %s5922_s12  }
   0x3   : > { %p27_p1 = scmp.ge.s32.totalorder %s25_s15, 2  ;;  %p168_p2 = scmp.lt.s32.totalorder %s4693_s14, 3 }
   0x5   : > { %s5925_s15 = smov (%p27_p1, %s25_s15), 0  ;;  %p169_p3 = pnand %p3888_p0, %p168_p2 }
   0x6   : > { %p202_p4 = scmp.lt.s32.totalorder (!%p169_p3), %s4685_s12, 1  ;;  %vm1012_vm0 = vcmask (!%p169_p3), 1042432   ;;  %vm1013_vm1 = vcmask (!%p169_p3), 1046532   ;;  %s4695_s20 = smov (!%p169_p3), 12   ;;  %vm416_vm3 = vsmask.f32 (!%p169_p3), 3328 }
   0x7   : > { %172 = sbr.rel (%p169_p3) target bundleno = 663 (0x297), region = 32  ;;  %vm4749_vm2 = vmor (!%p169_p3), %vm1012_vm0, %vm1013_vm1  ;;  %vm417_vm4 = vsmask.f32 (!%p169_p3), 7440  ;;  %s4696_s21 = smov (!%p169_p3), 8   ;;  %vm351_vm6 = vcmask (!%p169_p3), 31744   ;;  %vm899_vm7 = vcmask (!%p169_p3), 64544  }
   0x8   : > { %vm4799_vm5 = vmor (!%p169_p3), %vm416_vm3, %vm417_vm4  ;;  %s4697_s22 = smov (!%p169_p3), 4   ;;  %s4698_s23 = smov (!%p169_p3), 16   ;;  %vm1223_vm8 = vcmask (!%p169_p3), 97344   ;;  %vm1401_vm9 = vcmask (!%p169_p3), 130144   ;;  %vm1946_vm10 = vcmask (!%p169_p3), 162944   ;;  %vm2267_vm11 = vcmask (!%p169_p3), 195744  }
   0x9   : > { %s4699_s24 = smov (!%p169_p3), 20   ;;  %s4700_s25 = smov (!%p169_p3), 24   ;;  %vm2445_vm12 = vcmask (!%p169_p3), 228544   ;;  %vm2990_vm13 = vcmask (!%p169_p3), 261344   ;;  %vm3311_vm14 = vcmask (!%p169_p3), 294144   ;;  %vm3371_vm15 = vcmask (!%p169_p3), 293888  }
   0xa   : > { %s4701_s26 = smov (!%p169_p3), 28   ;;  %s4702_s27 = smov (!%p169_p3), 32   ;;  %vm3420_vm0 = vcmask (!%p169_p3), 1041408  }
   0xe   : > { %s5927_s12 = smov (!%p202_p4, %s4685_s12), 1 }
   0xf   : > { %s4587_s16 = smul.u32 216, %s5927_s12  ;;  %s4394_s9 = sshll.u32 %s5927_s12, 7 }
  0x10   : > { %s5863_s12 = scalar_lea.vmem %s5917_s3, %s4394_s9 }
  0x11   : > { %s4747_s19 = scalar_lea.vmem %s5914_s0, %s4587_s16 }
  0x12   : > { %v4620_v1 = vld [vmem:[%s4747_s19 + $0x6c] sm:$0xff]   ;;  %v940_v3 = vld [vmem:[%s4747_s19 + $0x60] sm:$0xe]  ;;  %v941_v4 = vld [vmem:[%s4747_s19 + $0x64] sm:$0xf] }
  0x13   : > { %v4621_v2 = vld [vmem:[%s4747_s19 + $0xc] sm:$0xff]   ;;  %1369 = vrot.lane.b32.xlu1 %v4620_v1, %s4695_s20  ;;  %v942_v5 = vld [vmem:[%s4747_s19 + $0x68] sm:$0x1]  ;;  %v3932_v6 = vrot.slane %v940_v3, 9  ;;  %v1073_v7 = vrot.slane %v941_v4, 5 }
  0x14   : > { %1353 = vrot.lane.b32.xlu0 %v4621_v2, %s4695_s20  ;;  %v1076_v8 = vrot.slane %v942_v5, 5  ;;  %v916_v9 = vld [vmem:[%s4747_s19] sm:$0xe]  ;;  %v917_v10 = vld [vmem:[%s4747_s19 + $0x4] sm:$0xf] }
  0x15   : > { %v918_v11 = vld [vmem:[%s4747_s19 + $0x8] sm:$0x1]  ;;  %v3924_v12 = vrot.slane %v916_v9, 9  ;;  %v1074_v13 = vsel %vm4749_vm2, %v3932_v6, %v1073_v7  ;;  %v1075_v14 = vrot.slane %v1073_v7, 4  ;;  %v1017_v15 = vrot.slane %v917_v10, 5 }
  0x16   : > { %v1020_v16 = vrot.slane %v918_v11, 5  ;;  %v943_v17 = vld [vmem:[%s4747_s19 + $0x6c] sm:$0xe]  ;;  %v944_v18 = vld [vmem:[%s4747_s19 + $0x70] sm:$0xf] }
  0x17   : > { %v945_v19 = vld [vmem:[%s4747_s19 + $0x74] sm:$0x1]  ;;  %v3933_v20 = vrot.slane %v943_v17, 9  ;;  %v1077_v21 = vsel %vm4749_vm2, %v1075_v14, %v1076_v8  ;;  %v1018_v22 = vsel %vm4749_vm2, %v3924_v12, %v1017_v15  ;;  %v1019_v23 = vrot.slane %v1017_v15, 4  ;;  %v919_v25 = vld [vmem:[%s4747_s19 + $0xc] sm:$0xe] }
  0x18   : > { %v1080_v24 = vrot.slane %v944_v18, 5  ;;  %v920_v26 = vld [vmem:[%s4747_s19 + $0x10] sm:$0xf]  ;;  %v3948_v27 = vcombine.low %v1074_v13, %v1077_v21  ;;  %v1083_v28 = vrot.slane %v945_v19, 5  ;;  %v921_v29 = vld [vmem:[%s4747_s19 + $0x14] sm:$0x1] }
  0x19   : > { %v3925_v30 = vrot.slane %v919_v25, 9  ;;  %v1024_v31 = vrot.slane %v920_v26, 5  ;;  %v1021_v32 = vsel %vm4749_vm2, %v1019_v23, %v1020_v16  ;;  %v1027_v35 = vrot.slane %v921_v29, 5  ;;  %v371_v36 = vld [vmem:[%s4747_s19 + $0xc] sm:$0xf] }
  0x1a   : > { %v1081_v33 = vsel %vm4749_vm2, %v3933_v20, %v1080_v24  ;;  %v1082_v34 = vrot.slane %v1080_v24, 4  ;;  %v372_v37 = vld [vmem:[%s4747_s19 + $0x10] sm:$0xf]  ;;  %1191 = vrot.lane.b32.xlu1 %v3948_v27, %s4696_s21  ;;  %v3940_v38 = vcombine.low %v1018_v22, %v1021_v32  ;;  %v373_v41 = vld [vmem:[%s4747_s19 + $0x14] sm:$0x1]  ;;  %v444_v42 = vshrl.u32 %v371_v36, 16 }
  0x1b   : > { %v1025_v39 = vsel %vm4749_vm2, %v3925_v30, %v1024_v31  ;;  %v1026_v40 = vrot.slane %v1024_v31, 4  ;;  %v368_v43 = vld [vmem:[%s4747_s19] sm:$0xf]  ;;  %v447_v45 = vshll.u32 %v371_v36, 16  ;;  %v453_v46 = vshll.u32 %v372_v37, 16 }
  0x1c   : > { %v1084_v44 = vsel %vm4749_vm2, %v1082_v34, %v1083_v28  ;;  %v457_v47 = vshrl.u32 %v372_v37, 16  ;;  %v369_v48 = vld [vmem:[%s4747_s19 + $0x4] sm:$0xf]  ;;  %1175 = vrot.lane.b32.xlu0 %v3940_v38, %s4696_s21  ;;  %v446_v51 = vrot.slane %v444_v42, 4  ;;  %v463_v52 = vshll.u32 %v373_v41, 16 }
  0x1d   : > { %v3949_v49 = vcombine.low %v1081_v33, %v1084_v44  ;;  %v1028_v50 = vsel %vm4749_vm2, %v1026_v40, %v1027_v35  ;;  %v370_v53 = vld [vmem:[%s4747_s19 + $0x8] sm:$0x1]  ;;  %v449_v55 = vrot.slane %v447_v45, 5  ;;  %v455_v56 = vrot.slane %v453_v46, 5  ;;  %v395_v58 = vld [vmem:[%s4747_s19 + $0x6c] sm:$0xf] }
  0x1e   : > { %v3941_v54 = vcombine.low %v1025_v39, %v1028_v50  ;;  %v459_v57 = vrot.slane %v457_v47, 4  ;;  %v465_v59 = vrot.slane %v463_v52, 5  ;;  %v420_v60 = vshrl.u32 %v368_v43, 16  ;;  %v396_v4 = vld [vmem:[%s4747_s19 + $0x70] sm:$0xf] }
  0x1f   : > { %1193 = vrot.lane.b32.xlu1 %v3949_v49, %s4696_s21  ;;  %v423_v61 = vshll.u32 %v368_v43, 16  ;;  %v429_v62 = vshll.u32 %v369_v48, 16  ;;  %v450_v63 = vor.u32 %v449_v55, %v446_v51  ;;  %v433_v2 = vshrl.u32 %v369_v48, 16  ;;  %v397_v9 = vld [vmem:[%s4747_s19 + $0x74] sm:$0x1] }
  0x20   : > { %v460_v1 = vor.u32 %v459_v57, %v455_v56  ;;  %v439_v3 = vshll.u32 %v370_v53, 16  ;;  %1177 = vrot.lane.b32.xlu0 %v3941_v54, %s4696_s21  ;;  %v422_v6 = vrot.slane %v420_v60, 4  ;;  %v636_v10 = vshrl.u32 %v395_v58, 16  ;;  %v392_v11 = vld [vmem:[%s4747_s19 + $0x60] sm:$0xf] }
  0x21   : > { %v425_v7 = vrot.slane %v423_v61, 5  ;;  %v431_v8 = vrot.slane %v429_v62, 5  ;;  %v451_v12 = vrot.slane %v450_v63, 4  ;;  %v435_v14 = vrot.slane %v433_v2, 4  ;;  %v393_v16 = vld [vmem:[%s4747_s19 + $0x64] sm:$0xf] }
  0x22   : > { %v461_v13 = vrot.slane %v460_v1, 4  ;;  %v441_v15 = vrot.slane %v439_v3, 5  ;;  %v638_v18 = vrot.slane %v636_v10, 4  ;;  %v639_v19 = vshll.u32 %v395_v58, 16  ;;  %v394_v35 = vld [vmem:[%s4747_s19 + $0x68] sm:$0x1] }
  0x23   : > { %v426_v17 = vor.u32 %v425_v7, %v422_v6  ;;  %v645_v20 = vshll.u32 %v396_v4, 16  ;;  %v456_v21 = vsel %vm4799_vm5, %v451_v12, %v455_v56  ;;  %v436_v23 = vor.u32 %v435_v14, %v431_v8  ;;  %v4028_v38 = vld [vmem:[%s4747_s19 + $0x6c] sm:$0xf]  ;;  %v4029_v43 = vld [vmem:[%s4747_s19 + $0x70] sm:$0xf]  ;;  %v4622_v6 = vld [vmem:[%s4747_s19 + $0x78] sm:$0xff]  }
  0x24   : > { %v466_v22 = vsel %vm4799_vm5, %v461_v13, %v465_v59  ;;  %v649_v24 = vshrl.u32 %v396_v4, 16  ;;  %v641_v27 = vrot.slane %v639_v19, 5  ;;  %v655_v31 = vshll.u32 %v397_v9, 16  ;;  %v4030_v54 = vld [vmem:[%s4747_s19 + $0x74] sm:$0x1] }
  0x25   : > { %v3909_v25 = vcombine.low %v456_v21, %v466_v22  ;;  %v427_v26 = vrot.slane %v426_v17, 4  ;;  %v647_v28 = vrot.slane %v645_v20, 5  ;;  %v437_v29 = vrot.slane %v436_v23, 4  ;;  %v4004_v57 = vld [vmem:[%s4747_s19 + $0xc] sm:$0xf] }
  0x26   : > { %v651_v30 = vrot.slane %v649_v24, 4  ;;  %v612_v32 = vshrl.u32 %v392_v11, 16  ;;  %v642_v34 = vor.u32 %v641_v27, %v638_v18  ;;  %v615_v36 = vshll.u32 %v392_v11, 16  ;;  %v4005_v62 = vld [vmem:[%s4747_s19 + $0x10] sm:$0xf] }
  0x27   : > { %853 = vrot.lane.b32.xlu1 %v3909_v25, %s4697_s22  ;;  %v432_v33 = vsel %vm4799_vm5, %v427_v26, %v431_v8  ;;  %v621_v37 = vshll.u32 %v393_v16, 16  ;;  %v442_v39 = vsel %vm4799_vm5, %v437_v29, %v441_v15  ;;  %v657_v41 = vrot.slane %v655_v31, 5  ;;  %v4006_v12 = vld [vmem:[%s4747_s19 + $0x14] sm:$0x1]  ;;  %v4031_v15 = vld [vmem:[%s4747_s19 + $0x78] sm:$0xf] }
  0x28   : > { %v652_v40 = vor.u32 %v651_v30, %v647_v28  ;;  %v614_v42 = vrot.slane %v612_v32, 4  ;;  %v3908_v44 = vcombine.low %v432_v33, %v442_v39  ;;  %v643_v45 = vrot.slane %v642_v34, 4  ;;  %v4032_v27 = vld [vmem:[%s4747_s19 + $0x7c] sm:$0xf]  ;;  %v4033_v33 = vld [vmem:[%s4747_s19 + $0x80] sm:$0x1] }
  0x29   : > { %v617_v46 = vrot.slane %v615_v36, 5  ;;  %v623_v47 = vrot.slane %v621_v37, 5  ;;  %v625_v49 = vshrl.u32 %v393_v16, 16  ;;  %v631_v50 = vshll.u32 %v394_v35, 16  ;;  %v4007_v34 = vld [vmem:[%s4747_s19 + $0x18] sm:$0xf] }
  0x2a   : > { %v653_v48 = vrot.slane %v652_v40, 4  ;;  %v1659_v51 = vshrl.u32 %v4028_v38, 16  ;;  %851 = vrot.lane.b32.xlu0 %v3908_v44, %s4697_s22  ;;  %v648_v52 = vsel %vm4799_vm5, %v643_v45, %v647_v28  ;;  %v1662_v55 = vshll.u32 %v4028_v38, 16  ;;  %v4008_v39 = vld [vmem:[%s4747_s19 + $0x1c] sm:$0xf] }
  0x2b   : > { %v618_v53 = vor.u32 %v617_v46, %v614_v42  ;;  %v1668_v56 = vshll.u32 %v4029_v43, 16  ;;  %v627_v59 = vrot.slane %v625_v49, 4  ;;  %v633_v60 = vrot.slane %v631_v50, 5  ;;  %v4623_v40 = vld [vmem:[%s4747_s19 + $0x18] sm:$0xff]   ;;  %v4009_v45 = vld [vmem:[%s4747_s19 + $0x20] sm:$0x1] }
  0x2c   : > { %v658_v58 = vsel %vm4799_vm5, %v653_v48, %v657_v41  ;;  %v1661_v61 = vrot.slane %v1659_v51, 4  ;;  %v1664_v2 = vrot.slane %v1662_v55, 5  ;;  %v1672_v7 = vshrl.u32 %v4029_v43, 16  ;;  %v4092_v50 = vld [vmem:[%s4747_s19 + $0x6c] sm:$0xe] }
  0x2d   : > { %v3917_v63 = vcombine.low %v648_v52, %v658_v58  ;;  %v619_v1 = vrot.slane %v618_v53, 4  ;;  %v1670_v3 = vrot.slane %v1668_v56, 5  ;;  %v628_v4 = vor.u32 %v627_v59, %v623_v47  ;;  %v4093_v55 = vld [vmem:[%s4747_s19 + $0x70] sm:$0xf] }
  0x2e   : > { %v1678_v8 = vshll.u32 %v4030_v54, 16  ;;  %v1467_v9 = vshrl.u32 %v4004_v57, 16  ;;  %v1665_v11 = vor.u32 %v1664_v2, %v1661_v61  ;;  %v1470_v13 = vshll.u32 %v4004_v57, 16  ;;  %v4068_v61 = vld [vmem:[%s4747_s19 + $0xc] sm:$0xe] }
  0x2f   : > { %869 = vrot.lane.b32.xlu1 %v3917_v63, %s4697_s22  ;;  %v624_v10 = vsel %vm4799_vm5, %v619_v1, %v623_v47  ;;  %v1476_v14 = vshll.u32 %v4005_v62, 16  ;;  %v629_v16 = vrot.slane %v628_v4, 4  ;;  %v1674_v17 = vrot.slane %v1672_v7, 4 }
  0x30   : > { %v1680_v18 = vrot.slane %v1678_v8, 5  ;;  %v1469_v19 = vrot.slane %v1467_v9, 4  ;;  %v1666_v20 = vrot.slane %v1665_v11, 4  ;;  %v1472_v21 = vrot.slane %v1470_v13, 5  ;;  %v4070_v9 = vld [vmem:[%s4747_s19 + $0x14] sm:$0x1] }
  0x31   : > { %v1478_v22 = vrot.slane %v1476_v14, 5  ;;  %v1480_v23 = vshrl.u32 %v4005_v62, 16  ;;  %v634_v24 = vsel %vm4799_vm5, %v629_v16, %v633_v60  ;;  %v1675_v25 = vor.u32 %v1674_v17, %v1670_v3  ;;  %v4094_v60 = vld [vmem:[%s4747_s19 + $0x74] sm:$0x1] }
  0x32   : > { %v1486_v26 = vshll.u32 %v4006_v12, 16  ;;  %v1683_v28 = vshrl.u32 %v4031_v15, 16  ;;  %v3916_v29 = vcombine.low %v624_v10, %v634_v24  ;;  %v1671_v30 = vsel %vm4799_vm5, %v1666_v20, %v1670_v3  ;;  %v4069_v3 = vld [vmem:[%s4747_s19 + $0x10] sm:$0xf] }
  0x33   : > { %1371 = vrot.lane.b32.xlu1 %v4622_v6, %s4695_s20  ;;  %v1473_v31 = vor.u32 %v1472_v21, %v1469_v19  ;;  %v1482_v32 = vrot.slane %v1480_v23, 4  ;;  %v1676_v35 = vrot.slane %v1675_v25, 4  ;;  %v1686_v38 = vshll.u32 %v4031_v15, 16 }
  0x34   : > { %v1488_v36 = vrot.slane %v1486_v26, 5  ;;  %v1685_v37 = vrot.slane %v1683_v28, 4  ;;  %867 = vrot.lane.b32.xlu0 %v3916_v29, %s4697_s22  ;;  %v1692_v43 = vshll.u32 %v4032_v27, 16  ;;  %v1696_v44 = vshrl.u32 %v4032_v27, 16  ;;  %v4096_v27 = vld [vmem:[%s4747_s19 + $0x7c] sm:$0xf] }
  0x35   : > { %v1474_v41 = vrot.slane %v1473_v31, 4  ;;  %v1483_v42 = vor.u32 %v1482_v32, %v1478_v22  ;;  %v1681_v46 = vsel %vm4799_vm5, %v1676_v35, %v1680_v18  ;;  %v1688_v47 = vrot.slane %v1686_v38, 5  ;;  %v4097_v28 = vld [vmem:[%s4747_s19 + $0x80] sm:$0x1]  ;;  %v4072_v38 = vld [vmem:[%s4747_s19 + $0x1c] sm:$0xf] }
  0x36   : > { %v1702_v48 = vshll.u32 %v4033_v33, 16  ;;  %v1491_v49 = vshrl.u32 %v4007_v34, 16  ;;  %v4060_v51 = vcombine.low %v1671_v30, %v1681_v46  ;;  %v1694_v54 = vrot.slane %v1692_v43, 5  ;;  %v4071_v33 = vld [vmem:[%s4747_s19 + $0x18] sm:$0xe] }
  0x37   : > { %v1479_v52 = vsel %vm4799_vm5, %v1474_v41, %v1478_v22  ;;  %v1484_v53 = vrot.slane %v1483_v42, 4  ;;  %v1689_v56 = vor.u32 %v1688_v47, %v1685_v37  ;;  %v1698_v57 = vrot.slane %v1696_v44, 4  ;;  %v4095_v22 = vld [vmem:[%s4747_s19 + $0x78] sm:$0xe] }
  0x38   : > { %v1704_v58 = vrot.slane %v1702_v48, 5  ;;  %v1493_v59 = vrot.slane %v1491_v49, 4  ;;  %1355 = vrot.lane.b32.xlu0 %v4623_v40, %s4695_s20  ;;  %1914 = vrot.lane.b32.xlu1 %v4060_v51, %s4698_s23  ;;  %v1494_v63 = vshll.u32 %v4007_v34, 16  ;;  %v1500_v1 = vshll.u32 %v4008_v39, 16  ;;  %v4220_v44 = vld [vmem:[%s4747_s19 + $0x78] sm:$0xf] }
  0x39   : > { %v1489_v62 = vsel %vm4799_vm5, %v1484_v53, %v1488_v36  ;;  %v1504_v2 = vshrl.u32 %v4008_v39, 16  ;;  %v1690_v6 = vrot.slane %v1689_v56, 4  ;;  %v1699_v7 = vor.u32 %v1698_v57, %v1694_v54  ;;  %v4073_v39 = vld [vmem:[%s4747_s19 + $0x20] sm:$0x1] }
  0x3a   : > { %v4052_v4 = vcombine.low %v1479_v52, %v1489_v62  ;;  %v1510_v8 = vshll.u32 %v4009_v45, 16  ;;  %v1496_v10 = vrot.slane %v1494_v63, 5  ;;  %v1502_v11 = vrot.slane %v1500_v1, 5  ;;  %v4221_v45 = vld [vmem:[%s4747_s19 + $0x7c] sm:$0xf] }
  0x3b   : > { %v1506_v12 = vrot.slane %v1504_v2, 4  ;;  %v4124_v13 = vrot.slane %v4092_v50, 9  ;;  %v1695_v14 = vsel %vm4799_vm5, %v1690_v6, %v1694_v54  ;;  %v1700_v15 = vrot.slane %v1699_v7, 4  ;;  %v4222_v54 = vld [vmem:[%s4747_s19 + $0x80] sm:$0x1] }
  0x3c   : > { %v1512_v16 = vrot.slane %v1510_v8, 5  ;;  %v2117_v17 = vrot.slane %v4093_v55, 5  ;;  %1898 = vrot.lane.b32.xlu0 %v4052_v4, %s4698_s23  ;;  %v1497_v18 = vor.u32 %v1496_v10, %v1493_v59  ;;  %v2120_v20 = vrot.slane %v4094_v60, 5  ;;  %v4196_v59 = vld [vmem:[%s4747_s19 + $0x18] sm:$0xf] }
  0x3d   : > { %v1507_v19 = vor.u32 %v1506_v12, %v1502_v11  ;;  %v4116_v21 = vrot.slane %v4068_v61, 9  ;;  %v1705_v23 = vsel %vm4799_vm5, %v1700_v15, %v1704_v58  ;;  %v2061_v26 = vrot.slane %v4069_v3, 5  ;;  %v4197_v1 = vld [vmem:[%s4747_s19 + $0x1c] sm:$0xf]  ;;  %v4198_v10 = vld [vmem:[%s4747_s19 + $0x20] sm:$0x1] }
  0x3e   : > { %v2118_v24 = vsel %vm4749_vm2, %v4124_v13, %v2117_v17  ;;  %v2119_v25 = vrot.slane %v2117_v17, 4  ;;  %v4061_v29 = vcombine.low %v1695_v14, %v1705_v23  ;;  %v1498_v30 = vrot.slane %v1497_v18, 4  ;;  %v4624_v17 = vld [vmem:[%s4747_s19 + $0x78] sm:$0xff]  }
  0x3f   : > { %v1508_v31 = vrot.slane %v1507_v19, 4  ;;  %v2064_v32 = vrot.slane %v4070_v9, 5  ;;  %v2062_v35 = vsel %vm4749_vm2, %v4116_v21, %v2061_v26  ;;  %v2063_v36 = vrot.slane %v2061_v26, 4 }
  0x40   : > { %v2121_v34 = vsel %vm4749_vm2, %v2119_v25, %v2120_v20  ;;  %v4125_v37 = vrot.slane %v4095_v22, 9  ;;  %1916 = vrot.lane.b32.xlu1 %v4061_v29, %s4698_s23  ;;  %v1503_v40 = vsel %vm4799_vm5, %v1498_v30, %v1502_v11  ;;  %v2124_v43 = vrot.slane %v4096_v27, 5  ;;  %v4224_v22 = vld [vmem:[%s4747_s19 + $0x88] sm:$0xf]  ;;  %v4625_v27 = vld [vmem:[%s4747_s19 + $0x18] sm:$0xff]  }
  0x41   : > { %v1513_v41 = vsel %vm4799_vm5, %v1508_v31, %v1512_v16  ;;  %v4140_v42 = vcombine.low %v2118_v24, %v2121_v34  ;;  %v2065_v47 = vsel %vm4749_vm2, %v2063_v36, %v2064_v32  ;;  %v2127_v48 = vrot.slane %v4097_v28, 5  ;;  %v4223_v16 = vld [vmem:[%s4747_s19 + $0x84] sm:$0xf] }
  0x42   : > { %v4053_v46 = vcombine.low %v1503_v40, %v1513_v41  ;;  %v4117_v49 = vrot.slane %v4071_v33, 9  ;;  %v4132_v50 = vcombine.low %v2062_v35, %v2065_v47  ;;  %v2125_v51 = vsel %vm4749_vm2, %v4125_v37, %v2124_v43  ;;  %v4225_v35 = vld [vmem:[%s4747_s19 + $0x8c] sm:$0x1]  ;;  %v4199_v37 = vld [vmem:[%s4747_s19 + $0x24] sm:$0xf] }
  0x43   : > { %v2126_v52 = vrot.slane %v2124_v43, 4  ;;  %v2068_v53 = vrot.slane %v4072_v38, 5  ;;  %v2071_v55 = vrot.slane %v4073_v39, 5  ;;  %v2703_v56 = vshrl.u32 %v4220_v44, 16  ;;  %v4626_v38 = vld [vmem:[%s4747_s19 + $0x84] sm:$0xff]  }
  0x44   : > { %1900 = vrot.lane.b32.xlu0 %v4053_v46, %s4698_s23  ;;  %v2706_v57 = vshll.u32 %v4220_v44, 16  ;;  %v2712_v58 = vshll.u32 %v4221_v45, 16  ;;  %2235 = vrot.lane.b32.xlu1 %v4140_v42, %s4699_s24  ;;  %v2716_v63 = vshrl.u32 %v4221_v45, 16  ;;  %v2722_v9 = vshll.u32 %v4222_v54, 16  ;;  %v4200_v43 = vld [vmem:[%s4747_s19 + $0x28] sm:$0xf] }
  0x45   : > { %v2128_v60 = vsel %vm4749_vm2, %v2126_v52, %v2127_v48  ;;  %v2069_v61 = vsel %vm4749_vm2, %v4117_v49, %v2068_v53  ;;  %v2070_v62 = vrot.slane %v2068_v53, 4  ;;  %v2705_v3 = vrot.slane %v2703_v56, 4  ;;  %v4201_v48 = vld [vmem:[%s4747_s19 + $0x2c] sm:$0x1]  ;;  %v4284_v53 = vld [vmem:[%s4747_s19 + $0x78] sm:$0xe] }
  0x46   : > { %v4141_v2 = vcombine.low %v2125_v51, %v2128_v60  ;;  %v2708_v4 = vrot.slane %v2706_v57, 5  ;;  %v2714_v6 = vrot.slane %v2712_v58, 5  ;;  %v2718_v8 = vrot.slane %v2716_v63, 4  ;;  %v4627_v54 = vld [vmem:[%s4747_s19 + $0x24] sm:$0xff]  }
  0x47   : > { %v2072_v7 = vsel %vm4749_vm2, %v2070_v62, %v2071_v55  ;;  %v2511_v11 = vshrl.u32 %v4196_v59, 16  ;;  %v2514_v14 = vshll.u32 %v4196_v59, 16  ;;  %v2520_v15 = vshll.u32 %v4197_v1, 16  ;;  %v4285_v59 = vld [vmem:[%s4747_s19 + $0x7c] sm:$0xf] }
  0x48   : > { %2219 = vrot.lane.b32.xlu0 %v4132_v50, %s4699_s24  ;;  %v4133_v12 = vcombine.low %v2069_v61, %v2072_v7  ;;  %v2709_v13 = vor.u32 %v2708_v4, %v2705_v3  ;;  %2237 = vrot.lane.b32.xlu1 %v4141_v2, %s4699_s24  ;;  %v2719_v18 = vor.u32 %v2718_v8, %v2714_v6  ;;  %v2724_v19 = vrot.slane %v2722_v9, 5  ;;  %v4260_v7 = vld [vmem:[%s4747_s19 + $0x18] sm:$0xe]  ;;  %v4261_v8 = vld [vmem:[%s4747_s19 + $0x1c] sm:$0xf] }
  0x49   : > { %v2513_v20 = vrot.slane %v2511_v11, 4  ;;  %v2524_v21 = vshrl.u32 %v4197_v1, 16  ;;  %v2516_v24 = vrot.slane %v2514_v14, 5  ;;  %v2522_v25 = vrot.slane %v2520_v15, 5  ;;  %v4286_v1 = vld [vmem:[%s4747_s19 + $0x80] sm:$0x1] }
  0x4a   : > { %v2710_v23 = vrot.slane %v2709_v13, 4  ;;  %v2530_v26 = vshll.u32 %v4198_v10, 16  ;;  %v2720_v28 = vrot.slane %v2719_v18, 4  ;;  %v2727_v30 = vshrl.u32 %v4223_v16, 16 }
  0x4b   : > { %v2526_v29 = vrot.slane %v2524_v21, 4  ;;  %v2730_v31 = vshll.u32 %v4223_v16, 16  ;;  %v2517_v33 = vor.u32 %v2516_v24, %v2513_v20  ;;  %v2736_v36 = vshll.u32 %v4224_v22, 16 }
  0x4c   : > { %2221 = vrot.lane.b32.xlu0 %v4133_v12, %s4699_s24  ;;  %v2715_v32 = vsel %vm4799_vm5, %v2710_v23, %v2714_v6  ;;  %v2532_v34 = vrot.slane %v2530_v26, 5  ;;  %2413 = vrot.lane.b32.xlu1 %v4624_v17, %s4700_s25  ;;  %v2725_v39 = vsel %vm4799_vm5, %v2720_v28, %v2724_v19  ;;  %v2729_v41 = vrot.slane %v2727_v30, 4  ;;  %v4262_v17 = vld [vmem:[%s4747_s19 + $0x20] sm:$0x1] }
  0x4d   : > { %v2527_v40 = vor.u32 %v2526_v29, %v2522_v25  ;;  %v2732_v42 = vrot.slane %v2730_v31, 5  ;;  %v4252_v44 = vcombine.low %v2715_v32, %v2725_v39  ;;  %v2518_v45 = vrot.slane %v2517_v33, 4  ;;  %v400_v32 = vld [vmem:[%s4747_s19 + $0x80] sm:$0x1] }
  0x4e   : > { %v2738_v46 = vrot.slane %v2736_v36, 5  ;;  %v2740_v47 = vshrl.u32 %v4224_v22, 16  ;;  %v2746_v51 = vshll.u32 %v4225_v35, 16  ;;  %v2535_v52 = vshrl.u32 %v4199_v37, 16  ;;  %v398_v22 = vld [vmem:[%s4747_s19 + $0x78] sm:$0xf] }
  0x4f   : > { %v2528_v49 = vrot.slane %v2527_v40, 4  ;;  %v2733_v50 = vor.u32 %v2732_v42, %v2729_v41  ;;  %v2523_v55 = vsel %vm4799_vm5, %v2518_v45, %v2522_v25  ;;  %v2538_v57 = vshll.u32 %v4199_v37, 16  ;;  %v374_v37 = vld [vmem:[%s4747_s19 + $0x18] sm:$0xf] }
  0x50   : > { %2397 = vrot.lane.b32.xlu0 %v4625_v27, %s4700_s25  ;;  %v2742_v56 = vrot.slane %v2740_v47, 4  ;;  %v2544_v58 = vshll.u32 %v4200_v43, 16  ;;  %2415 = vrot.lane.b32.xlu1 %v4626_v38, %s4700_s25  ;;  %v2748_v62 = vrot.slane %v2746_v51, 5  ;;  %v2537_v63 = vrot.slane %v2535_v52, 4  ;;  %v399_v27 = vld [vmem:[%s4747_s19 + $0x7c] sm:$0xf] }
  0x51   : > { %v2533_v60 = vsel %vm4799_vm5, %v2528_v49, %v2532_v34  ;;  %v2734_v61 = vrot.slane %v2733_v50, 4  ;;  %v2540_v4 = vrot.slane %v2538_v57, 5  ;;  %v2548_v10 = vshrl.u32 %v4200_v43, 16  ;;  %v375_v38 = vld [vmem:[%s4747_s19 + $0x1c] sm:$0xf] }
  0x52   : > { %v4244_v2 = vcombine.low %v2523_v55, %v2533_v60  ;;  %v2743_v3 = vor.u32 %v2742_v56, %v2738_v46  ;;  %v2546_v6 = vrot.slane %v2544_v58, 5  ;;  %v2554_v11 = vshll.u32 %v4201_v48, 16  ;;  %v376_v43 = vld [vmem:[%s4747_s19 + $0x20] sm:$0x1]  ;;  %v4287_v48 = vld [vmem:[%s4747_s19 + $0x84] sm:$0xe] }
  0x53   : > { %v2739_v9 = vsel %vm4799_vm5, %v2734_v61, %v2738_v46  ;;  %v4316_v12 = vrot.slane %v4284_v53, 9  ;;  %v2541_v14 = vor.u32 %v2540_v4, %v2537_v63  ;;  %v3161_v15 = vrot.slane %v4285_v59, 5  ;;  %v4288_v53 = vld [vmem:[%s4747_s19 + $0x88] sm:$0xf]  ;;  %v4263_v59 = vld [vmem:[%s4747_s19 + $0x24] sm:$0xe] }
  0x54   : > { %2399 = vrot.lane.b32.xlu0 %v4627_v54, %s4700_s25  ;;  %v2744_v13 = vrot.slane %v2743_v3, 4  ;;  %v3164_v16 = vrot.slane %v4286_v1, 5  ;;  %2958 = vrot.lane.b32.xlu1 %v4252_v44, %s4701_s26  ;;  %v2550_v18 = vrot.slane %v2548_v10, 4  ;;  %v2556_v19 = vrot.slane %v2554_v11, 5  ;;  %v4289_v54 = vld [vmem:[%s4747_s19 + $0x8c] sm:$0x1] }
  0x55   : > { %v4308_v20 = vrot.slane %v4260_v7, 9  ;;  %v3105_v21 = vrot.slane %v4261_v8, 5  ;;  %v2542_v24 = vrot.slane %v2541_v14, 4  ;;  %v3162_v25 = vsel %vm4749_vm2, %v4316_v12, %v3161_v15  ;;  %v4264_v1 = vld [vmem:[%s4747_s19 + $0x28] sm:$0xf] }
  0x56   : > { %v2749_v23 = vsel %vm4799_vm5, %v2744_v13, %v2748_v62  ;;  %v3163_v26 = vrot.slane %v3161_v15, 4  ;;  %v2551_v29 = vor.u32 %v2550_v18, %v2546_v6  ;;  %v3108_v35 = vrot.slane %v4262_v17, 5  ;;  %v4265_v7 = vld [vmem:[%s4747_s19 + $0x2c] sm:$0x1]  ;;  %v401_v12 = vld [vmem:[%s4747_s19 + $0x84] sm:$0xf] }
  0x57   : > { %v4253_v28 = vcombine.low %v2739_v9, %v2749_v23  ;;  %v3106_v30 = vsel %vm4749_vm2, %v4308_v20, %v3105_v21  ;;  %v3107_v31 = vrot.slane %v3105_v21, 4  ;;  %v2547_v33 = vsel %vm4799_vm5, %v2542_v24, %v2546_v6  ;;  %v402_v21 = vld [vmem:[%s4747_s19 + $0x88] sm:$0xf] }
  0x58   : > { %2942 = vrot.lane.b32.xlu0 %v4244_v2, %s4701_s26  ;;  %v3165_v34 = vsel %vm4749_vm2, %v3163_v26, %v3164_v16  ;;  %v660_v36 = vshrl.u32 %v398_v22, 16  ;;  %v2552_v39 = vrot.slane %v2551_v29, 4  ;;  %v663_v41 = vshll.u32 %v398_v22, 16 }
  0x59   : > { %2960 = vrot.lane.b32.xlu1 %v4253_v28, %s4701_s26  ;;  %v4332_v40 = vcombine.low %v3162_v25, %v3165_v34  ;;  %v669_v42 = vshll.u32 %v399_v27, 16  ;;  %v3109_v44 = vsel %vm4749_vm2, %v3107_v31, %v3108_v35  ;;  %v673_v46 = vshrl.u32 %v399_v27, 16 }
  0x5a   : > { %v662_v45 = vrot.slane %v660_v36, 4  ;;  %v679_v47 = vshll.u32 %v400_v32, 16  ;;  %v2557_v49 = vsel %vm4799_vm5, %v2552_v39, %v2556_v19  ;;  %v4324_v50 = vcombine.low %v3106_v30, %v3109_v44  ;;  %v377_v39 = vld [vmem:[%s4747_s19 + $0x24] sm:$0xf] }
  0x5b   : > { %v665_v51 = vrot.slane %v663_v41, 5  ;;  %v671_v52 = vrot.slane %v669_v42, 5  ;;  %v4245_v55 = vcombine.low %v2547_v33, %v2557_v49  ;;  %v675_v56 = vrot.slane %v673_v46, 4  ;;  %v403_v33 = vld [vmem:[%s4747_s19 + $0x8c] sm:$0x1] }
  0x5c   : > { %v681_v57 = vrot.slane %v679_v47, 5  ;;  %v468_v58 = vshrl.u32 %v374_v37, 16  ;;  %v471_v61 = vshll.u32 %v374_v37, 16  ;;  %v477_v62 = vshll.u32 %v375_v38, 16  ;;  %v946_v46 = vld [vmem:[%s4747_s19 + $0x78] sm:$0xe] }
  0x5d   : > { %3279 = vrot.lane.b32.xlu1 %v4332_v40, %s4702_s27  ;;  %v666_v60 = vor.u32 %v665_v51, %v662_v45  ;;  %v481_v63 = vshrl.u32 %v375_v38, 16  ;;  %2944 = vrot.lane.b32.xlu0 %v4245_v55, %s4701_s26  ;;  %v676_v2 = vor.u32 %v675_v56, %v671_v52  ;;  %v487_v4 = vshll.u32 %v376_v43, 16  ;;  %v378_v40 = vld [vmem:[%s4747_s19 + $0x28] sm:$0xf]  ;;  %v379_v45 = vld [vmem:[%s4747_s19 + $0x2c] sm:$0x1] }
  0x5e   : > { %v470_v3 = vrot.slane %v468_v58, 4  ;;  %v4317_v6 = vrot.slane %v4287_v48, 9  ;;  %v473_v9 = vrot.slane %v471_v61, 5  ;;  %v479_v10 = vrot.slane %v477_v62, 5  ;;  %v947_v51 = vld [vmem:[%s4747_s19 + $0x7c] sm:$0xf] }
  0x5f   : > { %v667_v8 = vrot.slane %v666_v60, 4  ;;  %v483_v11 = vrot.slane %v481_v63, 4  ;;  %v677_v13 = vrot.slane %v676_v2, 4  ;;  %v489_v14 = vrot.slane %v487_v4, 5  ;;  %v948_v56 = vld [vmem:[%s4747_s19 + $0x80] sm:$0x1] }
  0x60   : > { %v3168_v15 = vrot.slane %v4288_v53, 5  ;;  %v3171_v16 = vrot.slane %v4289_v54, 5  ;;  %v474_v18 = vor.u32 %v473_v9, %v470_v3  ;;  %v4309_v20 = vrot.slane %v4263_v59, 9  ;;  %v922_v61 = vld [vmem:[%s4747_s19 + $0x18] sm:$0xe] }
  0x61   : > { %v672_v17 = vsel %vm4799_vm5, %v667_v8, %v671_v52  ;;  %v484_v19 = vor.u32 %v483_v11, %v479_v10  ;;  %3263 = vrot.lane.b32.xlu0 %v4324_v50, %s4702_s27  ;;  %v682_v22 = vsel %vm4799_vm5, %v677_v13, %v681_v57  ;;  %v3112_v25 = vrot.slane %v4264_v1, 5  ;;  %v923_v3 = vld [vmem:[%s4747_s19 + $0x1c] sm:$0xf]  ;;  %v924_v9 = vld [vmem:[%s4747_s19 + $0x20] sm:$0x1] }
  0x62   : > { %v3169_v23 = vsel %vm4749_vm2, %v4317_v6, %v3168_v15  ;;  %v3170_v24 = vrot.slane %v3168_v15, 4  ;;  %v3918_v26 = vcombine.low %v672_v17, %v682_v22  ;;  %v475_v27 = vrot.slane %v474_v18, 4  ;;  %v4650_v15 = vld [vmem:[%s5915_s1] sm:$0xff]  }
  0x63   : > { %v485_v28 = vrot.slane %v484_v19, 4  ;;  %v3115_v29 = vrot.slane %v4265_v7, 5  ;;  %v3113_v31 = vsel %vm4749_vm2, %v4309_v20, %v3112_v25  ;;  %v3114_v32 = vrot.slane %v3112_v25, 4  ;;  %v950_v20 = vld [vmem:[%s4747_s19 + $0x88] sm:$0xf]  ;;  %4541 = vmatprep.subr.bf16.mxu0 %v4650_v15  ;;  %4579 = vmatprep.subr.bf16.mxu1 %v4650_v15 }
  0x64   : > { %v3172_v30 = vsel %vm4749_vm2, %v3170_v24, %v3171_v16  ;;  %v684_v34 = vshrl.u32 %v401_v12, 16  ;;  %871 = vrot.lane.b32.xlu1 %v3918_v26, %s4697_s22  ;;  %v480_v35 = vsel %vm4799_vm5, %v475_v27, %v479_v10  ;;  %v687_v38 = vshll.u32 %v401_v12, 16  ;;  %v925_v26 = vld [vmem:[%s4747_s19 + $0x24] sm:$0xe]  ;;  %v4651_v27 = vld [vmem:[%s5915_s1 + $0x8] sm:$0xff]   ;;  %4542 = vmatpush3.bf16.msra.mxu0 %v4650_v15 }
  0x65   : > { %v490_v36 = vsel %vm4799_vm5, %v485_v28, %v489_v14  ;;  %v4333_v37 = vcombine.low %v3169_v23, %v3172_v30  ;;  %v3116_v42 = vsel %vm4749_vm2, %v3114_v32, %v3115_v29  ;;  %v693_v44 = vshll.u32 %v402_v21, 16  ;;  %v949_v14 = vld [vmem:[%s4747_s19 + $0x84] sm:$0xe]  ;;  %v926_v32 = vld [vmem:[%s4747_s19 + $0x28] sm:$0xf]  ;;  %4582 = vmatpush3.bf16.msra.mxu1 %v4650_v15  ;;  %4543 = vmatprep.subr.bf16.mxu0 %v4651_v27 }
  0x66   : > { %v3910_v41 = vcombine.low %v480_v35, %v490_v36  ;;  %v686_v43 = vrot.slane %v684_v34, 4  ;;  %v4325_v47 = vcombine.low %v3113_v31, %v3116_v42  ;;  %v689_v48 = vrot.slane %v687_v38, 5  ;;  %v4034_v42 = vld [vmem:[%s4747_s19 + $0x84] sm:$0xf]  ;;  %4580 = vmatprep.subr.bf16.mxu1 %v4651_v27 }
  0x67   : > { %v697_v49 = vshrl.u32 %v402_v21, 16  ;;  %v703_v50 = vshll.u32 %v403_v33, 16  ;;  %v695_v52 = vrot.slane %v693_v44, 5  ;;  %v492_v53 = vshrl.u32 %v377_v39, 16  ;;  %v951_v21 = vld [vmem:[%s4747_s19 + $0x8c] sm:$0x1] }
  0x68   : > { %855 = vrot.lane.b32.xlu0 %v3910_v41, %s4697_s22  ;;  %v495_v54 = vshll.u32 %v377_v39, 16  ;;  %v501_v55 = vshll.u32 %v378_v40, 16  ;;  %3281 = vrot.lane.b32.xlu1 %v4333_v37, %s4702_s27  ;;  %v690_v57 = vor.u32 %v689_v48, %v686_v43  ;;  %v505_v60 = vshrl.u32 %v378_v40, 16  ;;  %v927_v37 = vld [vmem:[%s4747_s19 + $0x2c] sm:$0x1] }
  0x69   : > { %v699_v58 = vrot.slane %v697_v49, 4  ;;  %v705_v59 = vrot.slane %v703_v50, 5  ;;  %v494_v62 = vrot.slane %v492_v53, 4  ;;  %v511_v2 = vshll.u32 %v379_v45, 16  ;;  %v4035_v43 = vld [vmem:[%s4747_s19 + $0x88] sm:$0xf]  ;;  %4544 = vmatpush3.bf16.msra.mxu0 %v4651_v27  ;;  %4583 = vmatpush3.bf16.msra.mxu1 %v4651_v27 }
  0x6a   : > { %v497_v63 = vrot.slane %v495_v54, 5  ;;  %v503_v1 = vrot.slane %v501_v55, 5  ;;  %v691_v4 = vrot.slane %v690_v57, 4  ;;  %v507_v7 = vrot.slane %v505_v60, 4  ;;  %v4036_v48 = vld [vmem:[%s4747_s19 + $0x8c] sm:$0x1] }
  0x6b   : > { %v700_v6 = vor.u32 %v699_v58, %v695_v52  ;;  %v3934_v8 = vrot.slane %v946_v46, 9  ;;  %v513_v11 = vrot.slane %v511_v2, 5  ;;  %v1087_v12 = vrot.slane %v947_v51, 5  ;;  %v4010_v53 = vld [vmem:[%s4747_s19 + $0x24] sm:$0xf] }
  0x6c   : > { %3265 = vrot.lane.b32.xlu0 %v4325_v47, %s4702_s27  ;;  %v498_v10 = vor.u32 %v497_v63, %v494_v62  ;;  %v1090_v13 = vrot.slane %v948_v56, 5  ;;  %v696_v16 = vsel %vm4799_vm5, %v691_v4, %v695_v52  ;;  %v508_v18 = vor.u32 %v507_v7, %v503_v1  ;;  %v4011_v54 = vld [vmem:[%s4747_s19 + $0x28] sm:$0xf] }
  0x6d   : > { %v701_v17 = vrot.slane %v700_v6, 4  ;;  %v3926_v19 = vrot.slane %v922_v61, 9  ;;  %v1088_v23 = vsel %vm4749_vm2, %v3934_v8, %v1087_v12  ;;  %v1089_v24 = vrot.slane %v1087_v12, 4 }
  0x6e   : > { %v499_v22 = vrot.slane %v498_v10, 4  ;;  %v1031_v25 = vrot.slane %v923_v3, 5  ;;  %v509_v29 = vrot.slane %v508_v18, 4  ;;  %v1034_v30 = vrot.slane %v924_v9, 5 }
  0x6f   : > { %v706_v28 = vsel %vm4799_vm5, %v701_v17, %v705_v59  ;;  %v3935_v31 = vrot.slane %v949_v14, 9  ;;  %v1091_v35 = vsel %vm4749_vm2, %v1089_v24, %v1090_v13  ;;  %v1094_v41 = vrot.slane %v950_v20, 5  ;;  %v4012_v59 = vld [vmem:[%s4747_s19 + $0x2c] sm:$0x1]  ;;  %v4628_v20 = vld [vmem:[%s4747_s19 + $0x84] sm:$0xff]  }
  0x70   : > { %v3919_v33 = vcombine.low %v696_v16, %v706_v28  ;;  %v504_v34 = vsel %vm4799_vm5, %v499_v22, %v503_v1  ;;  %v1032_v36 = vsel %vm4749_vm2, %v3926_v19, %v1031_v25  ;;  %v514_v38 = vsel %vm4799_vm5, %v509_v29, %v513_v11  ;;  %v4037_v1 = vld [vmem:[%s4747_s19 + $0x90] sm:$0xf]  ;;  %v4038_v19 = vld [vmem:[%s4747_s19 + $0x94] sm:$0xf]  ;;  %v4039_v29 = vld [vmem:[%s4747_s19 + $0x98] sm:$0x1] }
  0x71   : > { %v3950_v39 = vcombine.low %v1088_v23, %v1091_v35  ;;  %v1033_v40 = vrot.slane %v1031_v25, 4  ;;  %v3911_v44 = vcombine.low %v504_v34, %v514_v38  ;;  %v1097_v45 = vrot.slane %v951_v21, 5  ;;  %v4013_v35 = vld [vmem:[%s4747_s19 + $0x30] sm:$0xf] }
  0x72   : > { %873 = vrot.lane.b32.xlu1 %v3919_v33, %s4697_s22  ;;  %v3927_v46 = vrot.slane %v925_v26, 9  ;;  %v1038_v47 = vrot.slane %v926_v32, 5  ;;  %v1095_v50 = vsel %vm4749_vm2, %v3935_v31, %v1094_v41  ;;  %v1096_v51 = vrot.slane %v1094_v41, 4  ;;  %v4630_v41 = vld [vmem:[%s4747_s19 + $0x90] sm:$0xff]  }
  0x73   : > { %v1035_v49 = vsel %vm4749_vm2, %v1033_v40, %v1034_v30  ;;  %v1041_v52 = vrot.slane %v927_v37, 5  ;;  %857 = vrot.lane.b32.xlu0 %v3911_v44, %s4697_s22  ;;  %v1707_v58 = vshrl.u32 %v4034_v42, 16  ;;  %v1710_v61 = vshll.u32 %v4034_v42, 16  ;;  %v4629_v30 = vld [vmem:[%s4747_s19 + $0x24] sm:$0xff]   ;;  %v4014_v40 = vld [vmem:[%s4747_s19 + $0x34] sm:$0xf] }
  0x74   : > { %v3942_v55 = vcombine.low %v1032_v36, %v1035_v49  ;;  %v1039_v56 = vsel %vm4749_vm2, %v3927_v46, %v1038_v47  ;;  %v1040_v57 = vrot.slane %v1038_v47, 4  ;;  %v1098_v60 = vsel %vm4749_vm2, %v1096_v51, %v1097_v45  ;;  %v4631_v42 = vld [vmem:[%s4747_s19 + $0x30] sm:$0xff]  }
  0x75   : > { %v1716_v62 = vshll.u32 %v4035_v43, 16  ;;  %v1720_v63 = vshrl.u32 %v4035_v43, 16  ;;  %v3951_v2 = vcombine.low %v1095_v50, %v1098_v60  ;;  %v1709_v4 = vrot.slane %v1707_v58, 4  ;;  %v4015_v50 = vld [vmem:[%s4747_s19 + $0x38] sm:$0x1] }
  0x76   : > { %1195 = vrot.lane.b32.xlu1 %v3950_v39, %s4696_s21  ;;  %v1042_v3 = vsel %vm4749_vm2, %v1040_v57, %v1041_v52  ;;  %v1726_v6 = vshll.u32 %v4036_v48, 16  ;;  %v1712_v8 = vrot.slane %v1710_v61, 5  ;;  %v1515_v12 = vshrl.u32 %v4010_v53, 16  ;;  %v4099_v57 = vld [vmem:[%s4747_s19 + $0x88] sm:$0xf] }
  0x77   : > { %v3943_v7 = vcombine.low %v1039_v56, %v1042_v3  ;;  %v1718_v9 = vrot.slane %v1716_v62, 5  ;;  %v1722_v10 = vrot.slane %v1720_v63, 4  ;;  %1179 = vrot.lane.b32.xlu0 %v3942_v55, %s4696_s21  ;;  %v1518_v13 = vshll.u32 %v4010_v53, 16  ;;  %v4098_v56 = vld [vmem:[%s4747_s19 + $0x84] sm:$0xe] }
  0x78   : > { %v1728_v11 = vrot.slane %v1726_v6, 5  ;;  %v1524_v14 = vshll.u32 %v4011_v54, 16  ;;  %v1713_v15 = vor.u32 %v1712_v8, %v1709_v4  ;;  %v1528_v17 = vshrl.u32 %v4011_v54, 16  ;;  %v4100_v62 = vld [vmem:[%s4747_s19 + $0x8c] sm:$0x1] }
  0x79   : > { %v1723_v16 = vor.u32 %v1722_v10, %v1718_v9  ;;  %v1534_v18 = vshll.u32 %v4012_v59, 16  ;;  %v1517_v21 = vrot.slane %v1515_v12, 4  ;;  %v1520_v22 = vrot.slane %v1518_v13, 5  ;;  %v4074_v63 = vld [vmem:[%s4747_s19 + $0x24] sm:$0xe] }
  0x7a   : > { %1197 = vrot.lane.b32.xlu1 %v3951_v2, %s4696_s21  ;;  %v1526_v23 = vrot.slane %v1524_v14, 5  ;;  %v1731_v24 = vshrl.u32 %v4037_v1, 16  ;;  %v1714_v25 = vrot.slane %v1713_v15, 4  ;;  %v1530_v27 = vrot.slane %v1528_v17, 4  ;;  %v4075_v6 = vld [vmem:[%s4747_s19 + $0x28] sm:$0xf] }
  0x7b   : > { %v1724_v26 = vrot.slane %v1723_v16, 4  ;;  %v1536_v28 = vrot.slane %v1534_v18, 5  ;;  %1181 = vrot.lane.b32.xlu0 %v3943_v7, %s4696_s21  ;;  %v1521_v31 = vor.u32 %v1520_v22, %v1517_v21  ;;  %v1734_v33 = vshll.u32 %v4037_v1, 16  ;;  %v4101_v16 = vld [vmem:[%s4747_s19 + $0x90] sm:$0xe] }
  0x7c   : > { %v1733_v32 = vrot.slane %v1731_v24, 4  ;;  %v1740_v34 = vshll.u32 %v4038_v19, 16  ;;  %v1719_v36 = vsel %vm4799_vm5, %v1714_v25, %v1718_v9  ;;  %v1531_v38 = vor.u32 %v1530_v27, %v1526_v23  ;;  %v4102_v17 = vld [vmem:[%s4747_s19 + $0x94] sm:$0xf]  ;;  %v4103_v22 = vld [vmem:[%s4747_s19 + $0x98] sm:$0x1] }
  0x7d   : > { %v1729_v37 = vsel %vm4799_vm5, %v1724_v26, %v1728_v11  ;;  %v1744_v39 = vshrl.u32 %v4038_v19, 16  ;;  %v1522_v44 = vrot.slane %v1521_v31, 4  ;;  %v1736_v45 = vrot.slane %v1734_v33, 5  ;;  %v4076_v11 = vld [vmem:[%s4747_s19 + $0x2c] sm:$0x1] }
  0x7e   : > { %1373 = vrot.lane.b32.xlu1 %v4628_v20, %s4695_s20  ;;  %v4062_v43 = vcombine.low %v1719_v36, %v1729_v37  ;;  %v1742_v46 = vrot.slane %v1740_v34, 5  ;;  %v1532_v47 = vrot.slane %v1531_v38, 4  ;;  %v1750_v49 = vshll.u32 %v4039_v29, 16  ;;  %v4077_v27 = vld [vmem:[%s4747_s19 + $0x30] sm:$0xe] }
  0x7f   : > { %v1746_v48 = vrot.slane %v1744_v39, 4  ;;  %v1539_v51 = vshrl.u32 %v4013_v35, 16  ;;  %1357 = vrot.lane.b32.xlu0 %v4629_v30, %s4695_s20  ;;  %v1527_v52 = vsel %vm4799_vm5, %v1522_v44, %v1526_v23  ;;  %v1737_v53 = vor.u32 %v1736_v45, %v1733_v32  ;;  %v4078_v32 = vld [vmem:[%s4747_s19 + $0x34] sm:$0xf]  ;;  %v4079_v37 = vld [vmem:[%s4747_s19 + $0x38] sm:$0x1] }
  0x80   : > { %v1542_v54 = vshll.u32 %v4013_v35, 16  ;;  %v1548_v55 = vshll.u32 %v4014_v40, 16  ;;  %v1537_v58 = vsel %vm4799_vm5, %v1532_v47, %v1536_v28  ;;  %v1752_v60 = vrot.slane %v1750_v49, 5  ;;  %v4226_v38 = vld [vmem:[%s4747_s19 + $0x90] sm:$0xf] }
  0x81   : > { %v1747_v59 = vor.u32 %v1746_v48, %v1742_v46  ;;  %v1541_v61 = vrot.slane %v1539_v51, 4  ;;  %v4054_v1 = vcombine.low %v1527_v52, %v1537_v58  ;;  %v1738_v2 = vrot.slane %v1737_v53, 4  ;;  %v4228_v44 = vld [vmem:[%s4747_s19 + $0x98] sm:$0x1]  ;;  %v4202_v45 = vld [vmem:[%s4747_s19 + $0x30] sm:$0xf] }
  0x82   : > { %1375 = vrot.lane.b32.xlu1 %v4630_v41, %s4695_s20  ;;  %v1544_v3 = vrot.slane %v1542_v54, 5  ;;  %v1550_v4 = vrot.slane %v1548_v55, 5  ;;  %v1552_v8 = vshrl.u32 %v4014_v40, 16  ;;  %v1558_v9 = vshll.u32 %v4015_v50, 16 }
  0x83   : > { %v1748_v7 = vrot.slane %v1747_v59, 4  ;;  %v4126_v10 = vrot.slane %v4098_v56, 9  ;;  %1359 = vrot.lane.b32.xlu0 %v4631_v42, %s4695_s20  ;;  %v1743_v12 = vsel %vm4799_vm5, %v1738_v2, %v1742_v46  ;;  %v2131_v14 = vrot.slane %v4099_v57, 5  ;;  %v4203_v59 = vld [vmem:[%s4747_s19 + $0x34] sm:$0xf] }
  0x84   : > { %v1545_v13 = vor.u32 %v1544_v3, %v1541_v61  ;;  %v2134_v15 = vrot.slane %v4100_v62, 5  ;;  %v1554_v19 = vrot.slane %v1552_v8, 4  ;;  %v1560_v20 = vrot.slane %v1558_v9, 5 }
  0x85   : > { %v1753_v18 = vsel %vm4799_vm5, %v1748_v7, %v1752_v60  ;;  %v4118_v21 = vrot.slane %v4074_v63, 9  ;;  %v2132_v25 = vsel %vm4749_vm2, %v4126_v10, %v2131_v14  ;;  %v2133_v26 = vrot.slane %v2131_v14, 4  ;;  %v5095_v46 = vpop.permute.xlu1 %1369 }
  0x86   : > { %1918 = vrot.lane.b32.xlu1 %v4062_v43, %s4698_s23  ;;  %v4063_v23 = vcombine.low %v1743_v12, %v1753_v18  ;;  %v1546_v24 = vrot.slane %v1545_v13, 4  ;;  %v1555_v28 = vor.u32 %v1554_v19, %v1550_v4  ;;  %v2075_v29 = vrot.slane %v4075_v6, 5  ;;  %v4227_v43 = vld [vmem:[%s4747_s19 + $0x94] sm:$0xf]  ;;  %v4229_v12 = vld [vmem:[%s4747_s19 + $0x9c] sm:$0xf] }
  0x87   : > { %v2078_v30 = vrot.slane %v4076_v11, 5  ;;  %v4127_v31 = vrot.slane %v4101_v16, 9  ;;  %1902 = vrot.lane.b32.xlu0 %v4054_v1, %s4698_s23  ;;  %v2135_v34 = vsel %vm4749_vm2, %v2133_v26, %v2134_v15  ;;  %v2138_v35 = vrot.slane %v4102_v17, 5  ;;  %v5114_v11 = vpop.permute.xlu0 %1353  ;;  %v4230_v18 = vld [vmem:[%s4747_s19 + $0xa0] sm:$0xf] }
  0x88   : > { %v1551_v33 = vsel %vm4799_vm5, %v1546_v24, %v1550_v4  ;;  %v2141_v36 = vrot.slane %v4103_v22, 5  ;;  %v1556_v39 = vrot.slane %v1555_v28, 4  ;;  %v4142_v40 = vcombine.low %v2132_v25, %v2135_v34  ;;  %v4204_v4 = vld [vmem:[%s4747_s19 + $0x38] sm:$0x1]  ;;  %v4632_v24 = vld [vmem:[%s4747_s19 + $0x90] sm:$0xff]  }
  0x89   : > { %v2076_v41 = vsel %vm4749_vm2, %v4118_v21, %v2075_v29  ;;  %v2077_v42 = vrot.slane %v2075_v29, 4  ;;  %v2139_v47 = vsel %vm4749_vm2, %v4127_v31, %v2138_v35  ;;  %v2140_v48 = vrot.slane %v2138_v35, 4  ;;  %v4205_v29 = vld [vmem:[%s4747_s19 + $0x3c] sm:$0xf] }
  0x8a   : > { %1920 = vrot.lane.b32.xlu1 %v4063_v23, %s4698_s23  ;;  %v4119_v49 = vrot.slane %v4077_v27, 9  ;;  %v2082_v50 = vrot.slane %v4078_v32, 5  ;;  %v1561_v51 = vsel %vm4799_vm5, %v1556_v39, %v1560_v20  ;;  %v2085_v53 = vrot.slane %v4079_v37, 5  ;;  %v4231_v23 = vld [vmem:[%s4747_s19 + $0xa4] sm:$0x1] }
  0x8b   : > { %v2079_v52 = vsel %vm4749_vm2, %v2077_v42, %v2078_v30  ;;  %v2751_v54 = vshrl.u32 %v4226_v38, 16  ;;  %v4055_v55 = vcombine.low %v1551_v33, %v1561_v51  ;;  %v2142_v57 = vsel %vm4749_vm2, %v2140_v48, %v2141_v36  ;;  %v4206_v51 = vld [vmem:[%s4747_s19 + $0x40] sm:$0xf] }
  0x8c   : > { %v4134_v56 = vcombine.low %v2076_v41, %v2079_v52  ;;  %v2083_v58 = vsel %vm4749_vm2, %v4119_v49, %v2082_v50  ;;  %v4143_v60 = vcombine.low %v2139_v47, %v2142_v57  ;;  %v2084_v61 = vrot.slane %v2082_v50, 4  ;;  %v5117_v13 = vpop.permute.xlu1 %1191  ;;  %v4635_v57 = vld [vmem:[%s4747_s19 + $0x3c] sm:$0xff]  }
  0x8d   : > { %v2753_v62 = vrot.slane %v2751_v54, 4  ;;  %v2754_v63 = vshll.u32 %v4226_v38, 16  ;;  %1904 = vrot.lane.b32.xlu0 %v4055_v55, %s4698_s23  ;;  %v2760_v1 = vshll.u32 %v4227_v43, 16  ;;  %v2764_v2 = vshrl.u32 %v4227_v43, 16  ;;  %v4633_v38 = vld [vmem:[%s4747_s19 + $0x30] sm:$0xff]  }
  0x8e   : > { %2239 = vrot.lane.b32.xlu1 %v4142_v40, %s4699_s24  ;;  %v2770_v3 = vshll.u32 %v4228_v44, 16  ;;  %v2559_v6 = vshrl.u32 %v4202_v45, 16  ;;  %v2086_v7 = vsel %vm4749_vm2, %v2084_v61, %v2085_v53  ;;  %v2562_v9 = vshll.u32 %v4202_v45, 16  ;;  %v5128_v43 = vpop.permute.xlu0 %1175  ;;  %v4634_v45 = vld [vmem:[%s4747_s19 + $0x9c] sm:$0xff]   ;;  %v4207_v55 = vld [vmem:[%s4747_s19 + $0x44] sm:$0x1] }
  0x8f   : > { %v2756_v8 = vrot.slane %v2754_v63, 5  ;;  %v2568_v10 = vshll.u32 %v4203_v59, 16  ;;  %v4135_v14 = vcombine.low %v2083_v58, %v2086_v7  ;;  %v2762_v15 = vrot.slane %v2760_v1, 5 }
  0x90   : > { %v2766_v16 = vrot.slane %v2764_v2, 4  ;;  %v2772_v17 = vrot.slane %v2770_v3, 5  ;;  %v2561_v20 = vrot.slane %v2559_v6, 4  ;;  %v2564_v21 = vrot.slane %v2562_v9, 5 }
  0x91   : > { %v2757_v19 = vor.u32 %v2756_v8, %v2753_v62  ;;  %v2570_v22 = vrot.slane %v2568_v10, 5  ;;  %2223 = vrot.lane.b32.xlu0 %v4134_v56, %s4699_s24  ;;  %v2572_v26 = vshrl.u32 %v4203_v59, 16  ;;  %v2578_v27 = vshll.u32 %v4204_v4, 16  ;;  %v5130_v44 = vpop.permute.xlu1 %1193  ;;  %v4290_v62 = vld [vmem:[%s4747_s19 + $0x90] sm:$0xe] }
  0x92   : > { %2241 = vrot.lane.b32.xlu1 %v4143_v60, %s4699_s24  ;;  %v2767_v25 = vor.u32 %v2766_v16, %v2762_v15  ;;  %v2775_v28 = vshrl.u32 %v4229_v12, 16  ;;  %v2565_v31 = vor.u32 %v2564_v21, %v2561_v20  ;;  %v2778_v32 = vshll.u32 %v4229_v12, 16  ;;  %v4291_v4 = vld [vmem:[%s4747_s19 + $0x94] sm:$0xf]  ;;  %v4292_v10 = vld [vmem:[%s4747_s19 + $0x98] sm:$0x1]  ;;  %v5154_v20 = vpop.permute.xlu0 %1177 }
  0x93   : > { %v2758_v30 = vrot.slane %v2757_v19, 4  ;;  %v2784_v33 = vshll.u32 %v4230_v18, 16  ;;  %v2574_v35 = vrot.slane %v2572_v26, 4  ;;  %v2580_v36 = vrot.slane %v2578_v27, 5  ;;  %v4266_v12 = vld [vmem:[%s4747_s19 + $0x30] sm:$0xe] }
  0x94   : > { %v2768_v34 = vrot.slane %v2767_v25, 4  ;;  %v2777_v37 = vrot.slane %v2775_v28, 4  ;;  %v2566_v40 = vrot.slane %v2565_v31, 4  ;;  %v2780_v41 = vrot.slane %v2778_v32, 5  ;;  %v4268_v19 = vld [vmem:[%s4747_s19 + $0x38] sm:$0x1] }
  0x95   : > { %v2763_v39 = vsel %vm4799_vm5, %v2758_v30, %v2762_v15  ;;  %v2786_v42 = vrot.slane %v2784_v33, 5  ;;  %2225 = vrot.lane.b32.xlu0 %v4135_v14, %s4699_s24  ;;  %v2575_v48 = vor.u32 %v2574_v35, %v2570_v22  ;;  %v2788_v49 = vshrl.u32 %v4230_v18, 16  ;;  %v4267_v18 = vld [vmem:[%s4747_s19 + $0x34] sm:$0xf]  ;;  %v404_v30 = vld [vmem:[%s4747_s19 + $0x90] sm:$0xf] }
  0x96   : > { %2417 = vrot.lane.b32.xlu1 %v4632_v24, %s4700_s25  ;;  %v2773_v47 = vsel %vm4799_vm5, %v2768_v34, %v2772_v17  ;;  %v2794_v50 = vshll.u32 %v4231_v23, 16  ;;  %v2571_v53 = vsel %vm4799_vm5, %v2566_v40, %v2570_v22  ;;  %v2781_v54 = vor.u32 %v2780_v41, %v2777_v37  ;;  %v405_v35 = vld [vmem:[%s4747_s19 + $0x94] sm:$0xf]  ;;  %v406_v40 = vld [vmem:[%s4747_s19 + $0x98] sm:$0x1] }
  0x97   : > { %v4254_v52 = vcombine.low %v2763_v39, %v2773_v47  ;;  %v2583_v56 = vshrl.u32 %v4205_v29, 16  ;;  %v2576_v58 = vrot.slane %v2575_v48, 4  ;;  %v2790_v59 = vrot.slane %v2788_v49, 4  ;;  %v380_v41 = vld [vmem:[%s4747_s19 + $0x30] sm:$0xf] }
  0x98   : > { %v2796_v60 = vrot.slane %v2794_v50, 5  ;;  %v2586_v61 = vshll.u32 %v4205_v29, 16  ;;  %v2782_v63 = vrot.slane %v2781_v54, 4  ;;  %v2592_v2 = vshll.u32 %v4206_v51, 16  ;;  %v381_v49 = vld [vmem:[%s4747_s19 + $0x34] sm:$0xf] }
  0x99   : > { %v2585_v1 = vrot.slane %v2583_v56, 4  ;;  %v2596_v3 = vshrl.u32 %v4206_v51, 16  ;;  %2401 = vrot.lane.b32.xlu0 %v4633_v38, %s4700_s25  ;;  %v2581_v6 = vsel %vm4799_vm5, %v2576_v58, %v2580_v36  ;;  %v2791_v7 = vor.u32 %v2790_v59, %v2786_v42  ;;  %v5156_v21 = vpop.permute.xlu1 %853  ;;  %v382_v50 = vld [vmem:[%s4747_s19 + $0x38] sm:$0x1] }
  0x9a   : > { %2419 = vrot.lane.b32.xlu1 %v4634_v45, %s4700_s25  ;;  %v2588_v8 = vrot.slane %v2586_v61, 5  ;;  %v2602_v9 = vshll.u32 %v4207_v55, 16  ;;  %v4246_v14 = vcombine.low %v2571_v53, %v2581_v6  ;;  %v2787_v15 = vsel %vm4799_vm5, %v2782_v63, %v2786_v42  ;;  %v4639_v6 = vld [vmem:[%s4747_s19 + $0x60] sm:$0xff]  }
  0x9b   : > { %v2594_v16 = vrot.slane %v2592_v2, 5  ;;  %v2598_v17 = vrot.slane %v2596_v3, 4  ;;  %v2792_v22 = vrot.slane %v2791_v7, 4  ;;  %v4318_v25 = vrot.slane %v4290_v62, 9  ;;  %v4636_v2 = vld [vmem:[%s4747_s19 + $0xc] sm:$0xff]   ;;  %v4637_v3 = vld [vmem:[%s4747_s19] sm:$0xff]  }
  0x9c   : > { %v2589_v23 = vor.u32 %v2588_v8, %v2585_v1  ;;  %v2604_v24 = vrot.slane %v2602_v9, 5  ;;  %v3175_v27 = vrot.slane %v4291_v4, 5  ;;  %v3178_v28 = vrot.slane %v4292_v10, 5  ;;  %v5180_v55 = vpop.permute.xlu0 %851  ;;  %v4638_v4 = vld [vmem:[%s4747_s19 + $0x6c] sm:$0xff]   ;;  %v4648_v7 = vld [vmem:[%s4747_s19 + $0x78] sm:$0xff]   ;;  %v4652_v9 = vld [vmem:[%s4747_s19 + $0x84] sm:$0xff]  }
  0x9d   : > { %v2599_v26 = vor.u32 %v2598_v17, %v2594_v16  ;;  %v4310_v29 = vrot.slane %v4266_v12, 9  ;;  %2403 = vrot.lane.b32.xlu0 %v4635_v57, %s4700_s25  ;;  %v2797_v31 = vsel %vm4799_vm5, %v2792_v22, %v2796_v60  ;;  %v3119_v33 = vrot.slane %v4267_v18, 5  ;;  %v4649_v8 = vld [vmem:[%s4747_s19 + $0x18] sm:$0xff]   ;;  %353 = vst.msk [vmem:[#allocation2 + $0x8] sm:$0xff] %vm351_vm6, %v4636_v2  ;;  %352 = vst.msk [vmem:[#allocation2] sm:$0xff] %vm351_vm6, %v4637_v3 }
  0x9e   : > { %2962 = vrot.lane.b32.xlu1 %v4254_v52, %s4701_s26  ;;  %v2590_v32 = vrot.slane %v2589_v23, 4  ;;  %v3122_v34 = vrot.slane %v4268_v19, 5  ;;  %v4255_v36 = vcombine.low %v2787_v15, %v2797_v31  ;;  %v3176_v38 = vsel %vm4749_vm2, %v4318_v25, %v3175_v27  ;;  %v4294_v23 = vld [vmem:[%s4747_s19 + $0xa0] sm:$0xf]  ;;  %v4269_v25 = vld [vmem:[%s4747_s19 + $0x3c] sm:$0xe] }
  0x9f   : > { %v2600_v37 = vrot.slane %v2599_v26, 4  ;;  %v3177_v39 = vrot.slane %v3175_v27, 4  ;;  %v5172_v45 = vsel %vm4749_vm2, %v4310_v29, %v3119_v33  ;;  %v3121_v47 = vrot.slane %v3119_v33, 4  ;;  %v4653_v26 = vld [vmem:[%s4747_s19 + $0x24] sm:$0xff]   ;;  %361 = vst.msk [vmem:[#allocation2 + $0x48] sm:$0xff] %vm351_vm6, %v4638_v4  ;;  %360 = vst.msk [vmem:[#allocation2 + $0x40] sm:$0xff] %vm351_vm6, %v4639_v6 }
  0xa0   : > { %v2595_v42 = vsel %vm4799_vm5, %v2590_v32, %v2594_v16  ;;  %v708_v48 = vshrl.u32 %v404_v30, 16  ;;  %v711_v53 = vshll.u32 %v404_v30, 16  ;;  %v717_v54 = vshll.u32 %v405_v35, 16  ;;  %v5199_v16 = vld [vmem:[%s4747_s19 + $0x9c] sm:$0xe]  ;;  %362 = vst.msk [vmem:[#allocation2 + $0x50] sm:$0xff] %vm351_vm6, %v4648_v7 }
  0xa1   : > { %v2605_v51 = vsel %vm4799_vm5, %v2600_v37, %v2604_v24  ;;  %v3179_v52 = vsel %vm4749_vm2, %v3177_v39, %v3178_v28  ;;  %v5182_v56 = vpop.permute.xlu1 %869  ;;  %2946 = vrot.lane.b32.xlu0 %v4246_v14, %s4701_s26  ;;  %v3123_v59 = vsel %vm4749_vm2, %v3121_v47, %v3122_v34  ;;  %v721_v1 = vshrl.u32 %v405_v35, 16  ;;  %v5203_v24 = vld [vmem:[%s4747_s19 + $0xa4] sm:$0x1]  ;;  %v4270_v35 = vld [vmem:[%s4747_s19 + $0x40] sm:$0xf]  ;;  %354 = vst.msk [vmem:[#allocation2 + $0x10] sm:$0xff] %vm351_vm6, %v4649_v8 }
  0xa2   : > { %2964 = vrot.lane.b32.xlu1 %v4255_v36, %s4701_s26  ;;  %v4247_v57 = vcombine.low %v2595_v42, %v2605_v51  ;;  %v4334_v58 = vcombine.low %v3176_v38, %v3179_v52  ;;  %v710_v60 = vrot.slane %v708_v48, 4  ;;  %v4326_v61 = vcombine.low %v5172_v45, %v3123_v59  ;;  %v4271_v39 = vld [vmem:[%s4747_s19 + $0x44] sm:$0x1]  ;;  %363 = vst.msk [vmem:[#allocation2 + $0x58] sm:$0xff] %vm351_vm6, %v4652_v9  ;;  %v407_v51 = vld [vmem:[%s4747_s19 + $0x9c] sm:$0xf] }
  0xa3   : > { %v713_v62 = vrot.slane %v711_v53, 5  ;;  %v5189_v63 = vrot.slane %v717_v54, 5  ;;  %v727_v10 = vshll.u32 %v406_v40, 16  ;;  %v516_v12 = vshrl.u32 %v380_v41, 16  ;;  %355 = vst.msk [vmem:[#allocation2 + $0x18] sm:$0xff] %vm351_vm6, %v4653_v26 }
  0xa4   : > { %v519_v14 = vshll.u32 %v380_v41, 16  ;;  %v525_v15 = vshll.u32 %v381_v49, 16  ;;  %v723_v18 = vrot.slane %v721_v1, 4  ;;  %v529_v19 = vshrl.u32 %v381_v49, 16  ;;  %901 = vst.msk [vmem:[#allocation2 + $0x8] sm:$0xff] %vm899_vm7, %v5156_v21  ;;  %900 = vst.msk [vmem:[#allocation2] sm:$0xff] %vm899_vm7, %v5180_v55 }
  0xa5   : > { %v714_v17 = vor.u32 %v713_v62, %v710_v60  ;;  %v535_v22 = vshll.u32 %v382_v50, 16  ;;  %2948 = vrot.lane.b32.xlu0 %v4247_v57, %s4701_s26  ;;  %v729_v27 = vrot.slane %v727_v10, 5  ;;  %v518_v28 = vrot.slane %v516_v12, 4  ;;  %v5211_v37 = vpop.permute.xlu1 %1371  ;;  %909 = vst.msk [vmem:[#allocation2 + $0x48] sm:$0xff] %vm899_vm7, %v5182_v56  ;;  %v408_v55 = vld [vmem:[%s4747_s19 + $0xa0] sm:$0xf] }
  0xa6   : > { %3283 = vrot.lane.b32.xlu1 %v4334_v58, %s4702_s27  ;;  %v521_v29 = vrot.slane %v519_v14, 5  ;;  %v527_v30 = vrot.slane %v525_v15, 5  ;;  %v724_v32 = vor.u32 %v723_v18, %v5189_v63  ;;  %v531_v33 = vrot.slane %v529_v19, 4  ;;  %v868_v36 = vpop.permute.xlu0 %867  ;;  %1224 = vst.msk [vmem:[#allocation2] sm:$0xff] %vm1223_vm8, %v5128_v43  ;;  %1225 = vst.msk [vmem:[#allocation2 + $0x8] sm:$0xff] %vm1223_vm8, %v5154_v20 }
  0xa7   : > { %v715_v31 = vrot.slane %v714_v17, 4  ;;  %v537_v34 = vrot.slane %v535_v22, 5  ;;  %v4319_v45 = vrot.slane %v5199_v16, 9  ;;  %v3182_v48 = vrot.slane %v4294_v23, 5  ;;  %908 = vst.msk [vmem:[#allocation2 + $0x40] sm:$0xff] %vm899_vm7, %v868_v36 }
  0xa8   : > { %v522_v38 = vor.u32 %v521_v29, %v518_v28  ;;  %v725_v41 = vrot.slane %v724_v32, 4  ;;  %v532_v42 = vor.u32 %v531_v33, %v527_v30  ;;  %v3185_v49 = vrot.slane %v5203_v24, 5  ;;  %1233 = vst.msk [vmem:[#allocation2 + $0x48] sm:$0xff] %vm1223_vm8, %v5130_v44  ;;  %1232 = vst.msk [vmem:[#allocation2 + $0x40] sm:$0xff] %vm1223_vm8, %v5117_v13  ;;  %v409_v60 = vld [vmem:[%s4747_s19 + $0xa4] sm:$0x1] }
  0xa9   : > { %v720_v40 = vsel %vm4799_vm5, %v715_v31, %v5189_v63  ;;  %3267 = vrot.lane.b32.xlu0 %v4326_v61, %s4702_s27  ;;  %v4311_v50 = vrot.slane %v4269_v25, 9  ;;  %v3126_v21 = vrot.slane %v4270_v35, 5  ;;  %v3129_v54 = vrot.slane %v4271_v39, 5  ;;  %v383_v4 = vld [vmem:[%s4747_s19 + $0x3c] sm:$0xf]  ;;  %1411 = vst.msk [vmem:[#allocation2 + $0x48] sm:$0xff] %vm1401_vm9, %v5211_v37 }
  0xaa   : > { %v523_v47 = vrot.slane %v522_v38, 4  ;;  %v730_v52 = vsel %vm4799_vm5, %v725_v41, %v729_v27  ;;  %v533_v53 = vrot.slane %v532_v42, 4  ;;  %v1356_v56 = vpop.permute.xlu0 %1355  ;;  %v3183_v43 = vsel %vm4749_vm2, %v4319_v45, %v3182_v48  ;;  %v5256_v62 = vpop.permute.xlu1 %1914  ;;  %v384_v6 = vld [vmem:[%s4747_s19 + $0x40] sm:$0xf]  ;;  %v385_v12 = vld [vmem:[%s4747_s19 + $0x44] sm:$0x1] }
  0xab   : > { %v3920_v57 = vcombine.low %v720_v40, %v730_v52  ;;  %v3184_v20 = vrot.slane %v3182_v48, 4  ;;  %v3127_v44 = vsel %vm4749_vm2, %v4311_v50, %v3126_v21  ;;  %v3128_v13 = vrot.slane %v3126_v21, 4  ;;  %v952_v18 = vld [vmem:[%s4747_s19 + $0x90] sm:$0xe]  ;;  %v953_v19 = vld [vmem:[%s4747_s19 + $0x94] sm:$0xf] }
  0xac   : > { %v528_v58 = vsel %vm4799_vm5, %v523_v47, %v527_v30  ;;  %v538_v59 = vsel %vm4799_vm5, %v533_v53, %v537_v34  ;;  %v732_v61 = vshrl.u32 %v407_v51, 16  ;;  %v735_v2 = vshll.u32 %v407_v51, 16  ;;  %v954_v27 = vld [vmem:[%s4747_s19 + $0x98] sm:$0x1]  ;;  %v928_v32 = vld [vmem:[%s4747_s19 + $0x30] sm:$0xe] }
  0xad   : > { %875 = vrot.lane.b32.xlu1 %v3920_v57, %s4697_s22  ;;  %v3912_v63 = vcombine.low %v528_v58, %v538_v59  ;;  %v3186_v1 = vsel %vm4749_vm2, %v3184_v20, %v3185_v49  ;;  %v741_v3 = vshll.u32 %v408_v55, 16  ;;  %v3130_v8 = vsel %vm4749_vm2, %v3128_v13, %v3129_v54  ;;  %v929_v38 = vld [vmem:[%s4747_s19 + $0x34] sm:$0xf]  ;;  %v930_v47 = vld [vmem:[%s4747_s19 + $0x38] sm:$0x1]  ;;  %1402 = vst.msk [vmem:[#allocation2] sm:$0xff] %vm1401_vm9, %v5114_v11 }
  0xae   : > { %v4335_v7 = vcombine.low %v3183_v43, %v3186_v1  ;;  %v734_v9 = vrot.slane %v732_v61, 4  ;;  %v745_v10 = vshrl.u32 %v408_v55, 16  ;;  %v4327_v14 = vcombine.low %v3127_v44, %v3130_v8  ;;  %v5269_v22 = vpop.permute.xlu0 %1898  ;;  %v4663_v40 = vld [vmem:[%s4747_s19 + $0x90] sm:$0xff]   ;;  %1410 = vst.msk [vmem:[#allocation2 + $0x40] sm:$0xff] %vm1401_vm9, %v5095_v46  ;;  %1403 = vst.msk [vmem:[#allocation2 + $0x8] sm:$0xff] %vm1401_vm9, %v1356_v56 }
  0xaf   : > { %859 = vrot.lane.b32.xlu0 %v3912_v63, %s4697_s22  ;;  %v737_v15 = vrot.slane %v735_v2, 5  ;;  %v743_v16 = vrot.slane %v741_v3, 5  ;;  %v751_v17 = vshll.u32 %v409_v60, 16  ;;  %v540_v24 = vshrl.u32 %v383_v4, 16  ;;  %v955_v52 = vld [vmem:[%s4747_s19 + $0x9c] sm:$0xe] }
  0xb0   : > { %v747_v23 = vrot.slane %v745_v10, 4  ;;  %v543_v25 = vshll.u32 %v383_v4, 16  ;;  %v549_v26 = vshll.u32 %v384_v6, 16  ;;  %v553_v30 = vshrl.u32 %v384_v6, 16  ;;  %364 = vst.msk [vmem:[#allocation2 + $0x60] sm:$0xff] %vm351_vm6, %v4663_v40  ;;  %v4664_v53 = vld [vmem:[%s4747_s19 + $0x30] sm:$0xff]  }
  0xb1   : > { %3285 = vrot.lane.b32.xlu1 %v4335_v7, %s4702_s27  ;;  %v738_v28 = vor.u32 %v737_v15, %v734_v9  ;;  %v753_v29 = vrot.slane %v751_v17, 5  ;;  %v559_v31 = vshll.u32 %v385_v12, 16  ;;  %v542_v34 = vrot.slane %v540_v24, 4  ;;  %v956_v11 = vld [vmem:[%s4747_s19 + $0xa0] sm:$0xf]  ;;  %356 = vst.msk [vmem:[#allocation2 + $0x20] sm:$0xff] %vm351_vm6, %v4664_v53 }
  0xb2   : > { %v748_v33 = vor.u32 %v747_v23, %v743_v16  ;;  %v545_v35 = vrot.slane %v543_v25, 5  ;;  %v551_v36 = vrot.slane %v549_v26, 5  ;;  %v1917_v39 = vpop.permute.xlu1 %1916  ;;  %v555_v42 = vrot.slane %v553_v30, 4  ;;  %v5292_v57 = vld [vmem:[%s4747_s19 + $0xa4] sm:$0x1]  ;;  %1955 = vst.msk [vmem:[#allocation2 + $0x40] sm:$0xff] %vm1946_vm10, %v5256_v62 }
  0xb3   : > { %3269 = vrot.lane.b32.xlu0 %v4327_v14, %s4702_s27  ;;  %v739_v41 = vrot.slane %v738_v28, 4  ;;  %v561_v45 = vrot.slane %v559_v31, 5  ;;  %v3936_v50 = vrot.slane %v952_v18, 9  ;;  %v1101_v51 = vrot.slane %v953_v19, 5  ;;  %v931_v46 = vld [vmem:[%s4747_s19 + $0x3c] sm:$0xe] }
  0xb4   : > { %v749_v48 = vrot.slane %v748_v33, 4  ;;  %v546_v49 = vor.u32 %v545_v35, %v542_v34  ;;  %v556_v37 = vor.u32 %v555_v42, %v551_v36  ;;  %v1104_v54 = vrot.slane %v954_v27, 5  ;;  %v932_v44 = vld [vmem:[%s4747_s19 + $0x40] sm:$0xf]  ;;  %v933_v13 = vld [vmem:[%s4747_s19 + $0x44] sm:$0x1] }
  0xb5   : > { %v744_v21 = vsel %vm4799_vm5, %v739_v41, %v743_v16  ;;  %v3928_v55 = vrot.slane %v928_v32, 9  ;;  %v1102_v20 = vsel %vm4749_vm2, %v3936_v50, %v1101_v51  ;;  %v1103_v59 = vrot.slane %v1101_v51, 4  ;;  %v4040_v3 = vld [vmem:[%s4747_s19 + $0x9c] sm:$0xf]  ;;  %v4041_v8 = vld [vmem:[%s4747_s19 + $0xa0] sm:$0xf] }
  0xb6   : > { %v1901_v56 = vpop.permute.xlu0 %1900  ;;  %v754_v58 = vsel %vm4799_vm5, %v749_v48, %v753_v29  ;;  %v547_v43 = vrot.slane %v546_v49, 4  ;;  %v2236_v60 = vpop.permute.xlu1 %2235  ;;  %v557_v63 = vrot.slane %v556_v37, 4  ;;  %v1045_v1 = vrot.slane %v929_v38, 5  ;;  %1947 = vst.msk [vmem:[#allocation2] sm:$0xff] %vm1946_vm10, %v5269_v22  ;;  %1956 = vst.msk [vmem:[#allocation2 + $0x48] sm:$0xff] %vm1946_vm10, %v1917_v39  ;;  %v4665_v17 = vld [vmem:[%s4747_s19 + $0x9c] sm:$0xff]  }
  0xb7   : > { %v3921_v61 = vcombine.low %v744_v21, %v754_v58  ;;  %v1048_v2 = vrot.slane %v930_v47, 5  ;;  %v1105_v6 = vsel %vm4749_vm2, %v1103_v59, %v1104_v54  ;;  %v3937_v7 = vrot.slane %v955_v52, 9  ;;  %1948 = vst.msk [vmem:[#allocation2 + $0x8] sm:$0xff] %vm1946_vm10, %v1901_v56  ;;  %v4042_v16 = vld [vmem:[%s4747_s19 + $0xa4] sm:$0x1]  ;;  %v4666_v26 = vld [vmem:[%s4747_s19 + $0x3c] sm:$0xff]  }
  0xb8   : > { %v552_v4 = vsel %vm4799_vm5, %v547_v43, %v551_v36  ;;  %v562_v9 = vsel %vm4799_vm5, %v557_v63, %v561_v45  ;;  %v3952_v10 = vcombine.low %v1102_v20, %v1105_v6  ;;  %v1046_v12 = vsel %vm4749_vm2, %v3928_v55, %v1045_v1  ;;  %v4016_v28 = vld [vmem:[%s4747_s19 + $0x3c] sm:$0xf]  ;;  %365 = vst.msk [vmem:[#allocation2 + $0x68] sm:$0xff] %vm351_vm6, %v4665_v17  ;;  %v4017_v33 = vld [vmem:[%s4747_s19 + $0x40] sm:$0xf] }
  0xb9   : > { %877 = vrot.lane.b32.xlu1 %v3921_v61, %s4697_s22  ;;  %v1047_v14 = vrot.slane %v1045_v1, 4  ;;  %v3913_v18 = vcombine.low %v552_v4, %v562_v9  ;;  %v1108_v19 = vrot.slane %v956_v11, 5  ;;  %v1111_v23 = vrot.slane %v5292_v57, 5  ;;  %2276 = vst.msk [vmem:[#allocation2 + $0x40] sm:$0xff] %vm2267_vm11, %v2236_v60  ;;  %v4018_v52 = vld [vmem:[%s4747_s19 + $0x44] sm:$0x1] }
  0xba   : > { %v2220_v15 = vpop.permute.xlu0 %2219  ;;  %v3929_v24 = vrot.slane %v931_v46, 9  ;;  %v2238_v25 = vpop.permute.xlu1 %2237  ;;  %v1052_v22 = vrot.slane %v932_v44, 5  ;;  %v1055_v27 = vrot.slane %v933_v13, 5  ;;  %v1755_v32 = vshrl.u32 %v4040_v3, 16  ;;  %357 = vst.msk [vmem:[#allocation2 + $0x28] sm:$0xff] %vm351_vm6, %v4666_v26  ;;  %v4640_v55 = vld [vmem:[%s4747_s19 + $0x9c] sm:$0xff]  }
  0xbb   : > { %v1049_v62 = vsel %vm4749_vm2, %v1047_v14, %v1048_v2  ;;  %861 = vrot.lane.b32.xlu0 %v3913_v18, %s4697_s22  ;;  %v1109_v30 = vsel %vm4749_vm2, %v3937_v7, %v1108_v19  ;;  %v1110_v31 = vrot.slane %v1108_v19, 4  ;;  %2268 = vst.msk [vmem:[#allocation2] sm:$0xff] %vm2267_vm11, %v2220_v15  ;;  %2277 = vst.msk [vmem:[#allocation2 + $0x48] sm:$0xff] %vm2267_vm11, %v2238_v25  ;;  %v1758_v38 = vshll.u32 %v4040_v3, 16  ;;  %v4043_v43 = vld [vmem:[%s4747_s19 + $0xa8] sm:$0xf] }
  0xbc   : > { %v3944_v29 = vcombine.low %v1046_v12, %v1049_v62  ;;  %v1053_v34 = vsel %vm4749_vm2, %v3929_v24, %v1052_v22  ;;  %v1054_v35 = vrot.slane %v1052_v22, 4  ;;  %v1764_v39 = vshll.u32 %v4041_v8, 16  ;;  %v4044_v13 = vld [vmem:[%s4747_s19 + $0xac] sm:$0xf]  ;;  %v4641_v3 = vld [vmem:[%s4747_s19 + $0x3c] sm:$0xff]  }
  0xbd   : > { %1199 = vrot.lane.b32.xlu1 %v3952_v10, %s4696_s21  ;;  %v1112_v40 = vsel %vm4749_vm2, %v1110_v31, %v1111_v23  ;;  %v1757_v41 = vrot.slane %v1755_v32, 4  ;;  %v1768_v42 = vshrl.u32 %v4041_v8, 16  ;;  %v1774_v45 = vshll.u32 %v4042_v16, 16  ;;  %v4642_v9 = vld [vmem:[%s4747_s19 + $0xa8] sm:$0xff]   ;;  %v4045_v15 = vld [vmem:[%s4747_s19 + $0xb0] sm:$0x1] }
  0xbe   : > { %v2222_v36 = vpop.permute.xlu0 %2221  ;;  %v2414_v47 = vpop.permute.xlu1 %2413  ;;  %v3953_v48 = vcombine.low %v1109_v30, %v1112_v40  ;;  %v1056_v49 = vsel %vm4749_vm2, %v1054_v35, %v1055_v27  ;;  %v1760_v50 = vrot.slane %v1758_v38, 5  ;;  %v1766_v51 = vrot.slane %v1764_v39, 5  ;;  %v4019_v17 = vld [vmem:[%s4747_s19 + $0x48] sm:$0xf]  ;;  %v4020_v26 = vld [vmem:[%s4747_s19 + $0x4c] sm:$0xf] }
  0xbf   : > { %2269 = vst.msk [vmem:[#allocation2 + $0x8] sm:$0xff] %vm2267_vm11, %v2222_v36  ;;  %1183 = vrot.lane.b32.xlu0 %v3944_v29, %s4696_s21  ;;  %v3945_v53 = vcombine.low %v1053_v34, %v1056_v49  ;;  %v1770_v21 = vrot.slane %v1768_v42, 4  ;;  %v1776_v37 = vrot.slane %v1774_v45, 5  ;;  %v1563_v54 = vshrl.u32 %v4016_v28, 16  ;;  %v4021_v30 = vld [vmem:[%s4747_s19 + $0x50] sm:$0x1] }
  0xc0   : > { %v1761_v11 = vor.u32 %v1760_v50, %v1757_v41  ;;  %v1566_v57 = vshll.u32 %v4016_v28, 16  ;;  %v1572_v46 = vshll.u32 %v4017_v33, 16  ;;  %v1576_v56 = vshrl.u32 %v4017_v33, 16  ;;  %2454 = vst.msk [vmem:[#allocation2 + $0x40] sm:$0xff] %vm2445_vm12, %v2414_v47  ;;  %v4104_v31 = vld [vmem:[%s4747_s19 + $0x9c] sm:$0xe] }
  0xc1   : > { %1201 = vrot.lane.b32.xlu1 %v3953_v48, %s4696_s21  ;;  %v1771_v20 = vor.u32 %v1770_v21, %v1766_v51  ;;  %v1565_v59 = vrot.slane %v1563_v54, 4  ;;  %v1582_v44 = vshll.u32 %v4018_v52, 16  ;;  %v1779_v7 = vshrl.u32 %v4043_v43, 16  ;;  %v4643_v32 = vld [vmem:[%s4747_s19 + $0x48] sm:$0xff]   ;;  %v4105_v38 = vld [vmem:[%s4747_s19 + $0xa0] sm:$0xf] }
  0xc2   : > { %v2398_v58 = vpop.permute.xlu0 %2397  ;;  %v2416_v60 = vpop.permute.xlu1 %2415  ;;  %v1762_v61 = vrot.slane %v1761_v11, 4  ;;  %v1568_v63 = vrot.slane %v1566_v57, 5  ;;  %v1574_v1 = vrot.slane %v1572_v46, 5  ;;  %v1578_v2 = vrot.slane %v1576_v56, 4  ;;  %v4106_v39 = vld [vmem:[%s4747_s19 + $0xa4] sm:$0x1] }
  0xc3   : > { %2446 = vst.msk [vmem:[#allocation2] sm:$0xff] %vm2445_vm12, %v2398_v58  ;;  %2455 = vst.msk [vmem:[#allocation2 + $0x48] sm:$0xff] %vm2445_vm12, %v2416_v60  ;;  %1185 = vrot.lane.b32.xlu0 %v3945_v53, %s4696_s21  ;;  %v1772_v4 = vrot.slane %v1771_v20, 4  ;;  %v1584_v6 = vrot.slane %v1582_v44, 5  ;;  %v1782_v8 = vshll.u32 %v4043_v43, 16  ;;  %v1788_v16 = vshll.u32 %v4044_v13, 16 }
  0xc4   : > { %v1767_v10 = vsel %vm4799_vm5, %v1762_v61, %v1766_v51  ;;  %v1569_v12 = vor.u32 %v1568_v63, %v1565_v59  ;;  %v1579_v14 = vor.u32 %v1578_v2, %v1574_v1  ;;  %v1781_v23 = vrot.slane %v1779_v7, 4  ;;  %v4080_v47 = vld [vmem:[%s4747_s19 + $0x3c] sm:$0xe]  ;;  %v4081_v48 = vld [vmem:[%s4747_s19 + $0x40] sm:$0xf] }
  0xc5   : > { %1377 = vrot.lane.b32.xlu1 %v4640_v55, %s4695_s20  ;;  %v1777_v19 = vsel %vm4799_vm5, %v1772_v4, %v1776_v37  ;;  %v1784_v24 = vrot.slane %v1782_v8, 5  ;;  %v1792_v25 = vshrl.u32 %v4044_v13, 16  ;;  %v1790_v29 = vrot.slane %v1788_v16, 5  ;;  %v4082_v13 = vld [vmem:[%s4747_s19 + $0x44] sm:$0x1] }
  0xc6   : > { %v2400_v18 = vpop.permute.xlu0 %2399  ;;  %v5364_v62 = vpop.permute.xlu1 %2958  ;;  %v4064_v22 = vcombine.low %v1767_v10, %v1777_v19  ;;  %v1570_v27 = vrot.slane %v1569_v12, 4  ;;  %v1580_v28 = vrot.slane %v1579_v14, 4  ;;  %v1798_v35 = vshll.u32 %v4045_v15, 16  ;;  %v4107_v2 = vld [vmem:[%s4747_s19 + $0xa8] sm:$0xe] }
  0xc7   : > { %2447 = vst.msk [vmem:[#allocation2 + $0x8] sm:$0xff] %vm2445_vm12, %v2400_v18  ;;  %1361 = vrot.lane.b32.xlu0 %v4641_v3, %s4695_s20  ;;  %v1785_v33 = vor.u32 %v1784_v24, %v1781_v23  ;;  %v1794_v34 = vrot.slane %v1792_v25, 4  ;;  %v1587_v36 = vshrl.u32 %v4019_v17, 16  ;;  %v1590_v42 = vshll.u32 %v4019_v17, 16  ;;  %v4108_v8 = vld [vmem:[%s4747_s19 + $0xac] sm:$0xf] }
  0xc8   : > { %v1575_v40 = vsel %vm4799_vm5, %v1570_v27, %v1574_v1  ;;  %v1585_v41 = vsel %vm4799_vm5, %v1580_v28, %v1584_v6  ;;  %v1596_v45 = vshll.u32 %v4020_v26, 16  ;;  %v1800_v53 = vrot.slane %v1798_v35, 5  ;;  %v4083_v17 = vld [vmem:[%s4747_s19 + $0x48] sm:$0xe]  ;;  %v4084_v25 = vld [vmem:[%s4747_s19 + $0x4c] sm:$0xf] }
  0xc9   : > { %1379 = vrot.lane.b32.xlu1 %v4642_v9, %s4695_s20  ;;  %v4056_v50 = vcombine.low %v1575_v40, %v1585_v41  ;;  %v1786_v51 = vrot.slane %v1785_v33, 4  ;;  %v1795_v52 = vor.u32 %v1794_v34, %v1790_v29  ;;  %v1589_v37 = vrot.slane %v1587_v36, 4  ;;  %v4109_v9 = vld [vmem:[%s4747_s19 + $0xb0] sm:$0x1]  ;;  %2999 = vst.msk [vmem:[#allocation2 + $0x40] sm:$0xff] %vm2990_vm13, %v5364_v62 }
  0xca   : > { %v2943_v49 = vpop.permute.xlu0 %2942  ;;  %v1592_v54 = vrot.slane %v1590_v42, 5  ;;  %v1598_v55 = vrot.slane %v1596_v45, 5  ;;  %v1600_v11 = vshrl.u32 %v4020_v26, 16  ;;  %v1606_v56 = vshll.u32 %v4021_v30, 16  ;;  %v4232_v30 = vld [vmem:[%s4747_s19 + $0xa8] sm:$0xf] }
  0xcb   : > { %v2961_v21 = vpop.permute.xlu1 %2960  ;;  %1363 = vrot.lane.b32.xlu0 %v4643_v32, %s4695_s20  ;;  %v1791_v57 = vsel %vm4799_vm5, %v1786_v51, %v1790_v29  ;;  %v1796_v46 = vrot.slane %v1795_v52, 4  ;;  %v4128_v58 = vrot.slane %v4104_v31, 9  ;;  %v2145_v59 = vrot.slane %v4105_v38, 5  ;;  %2991 = vst.msk [vmem:[#allocation2] sm:$0xff] %vm2990_vm13, %v2943_v49  ;;  %v4085_v29 = vld [vmem:[%s4747_s19 + $0x50] sm:$0x1] }
  0xcc   : > { %v1593_v43 = vor.u32 %v1592_v54, %v1589_v37  ;;  %v1602_v20 = vrot.slane %v1600_v11, 4  ;;  %v2148_v44 = vrot.slane %v4106_v39, 5  ;;  %v1608_v61 = vrot.slane %v1606_v56, 5  ;;  %3000 = vst.msk [vmem:[#allocation2 + $0x48] sm:$0xff] %vm2990_vm13, %v2961_v21  ;;  %v4233_v35 = vld [vmem:[%s4747_s19 + $0xac] sm:$0xf] }
  0xcd   : > { %1922 = vrot.lane.b32.xlu1 %v4064_v22, %s4698_s23  ;;  %v1801_v60 = vsel %vm4799_vm5, %v1796_v46, %v1800_v53  ;;  %v4120_v63 = vrot.slane %v4080_v47, 9  ;;  %v2089_v1 = vrot.slane %v4081_v48, 5  ;;  %v2146_v7 = vsel %vm4749_vm2, %v4128_v58, %v2145_v59  ;;  %v4234_v41 = vld [vmem:[%s4747_s19 + $0xb0] sm:$0x1]  ;;  %v4208_v48 = vld [vmem:[%s4747_s19 + $0x48] sm:$0xf] }
  0xce   : > { %v4065_v3 = vcombine.low %v1791_v57, %v1801_v60  ;;  %v1594_v4 = vrot.slane %v1593_v43, 4  ;;  %v1603_v6 = vor.u32 %v1602_v20, %v1598_v55  ;;  %v2147_v12 = vrot.slane %v2145_v59, 4  ;;  %v4209_v11 = vld [vmem:[%s4747_s19 + $0x4c] sm:$0xf]  ;;  %v4210_v58 = vld [vmem:[%s4747_s19 + $0x50] sm:$0x1] }
  0xcf   : > { %v2945_v10 = vpop.permute.xlu0 %2944  ;;  %1906 = vrot.lane.b32.xlu0 %v4056_v50, %s4698_s23  ;;  %v5394_v14 = vsel %vm4749_vm2, %v4120_v63, %v2089_v1  ;;  %v2091_v15 = vrot.slane %v2089_v1, 4  ;;  %v2092_v16 = vrot.slane %v4082_v13, 5  ;;  %v3280_v18 = vpop.permute.xlu1 %3279  ;;  %v4129_v24 = vrot.slane %v4107_v2, 9  ;;  %v4644_v59 = vld [vmem:[%s4747_s19 + $0xa8] sm:$0xff]   ;;  %v4235_v63 = vld [vmem:[%s4747_s19 + $0xb4] sm:$0xf] }
  0xd0   : > { %v1599_v19 = vsel %vm4799_vm5, %v1594_v4, %v1598_v55  ;;  %v1604_v23 = vrot.slane %v1603_v6, 4  ;;  %v2149_v26 = vsel %vm4749_vm2, %v2147_v12, %v2148_v44  ;;  %v2152_v27 = vrot.slane %v4108_v8, 5  ;;  %2992 = vst.msk [vmem:[#allocation2 + $0x8] sm:$0xff] %vm2990_vm13, %v2945_v10  ;;  %v4236_v12 = vld [vmem:[%s4747_s19 + $0xb8] sm:$0xf] }
  0xd1   : > { %1924 = vrot.lane.b32.xlu1 %v4065_v3, %s4698_s23  ;;  %v2093_v22 = vsel %vm4749_vm2, %v2091_v15, %v2092_v16  ;;  %v2155_v28 = vrot.slane %v4109_v9, 5  ;;  %v4144_v32 = vcombine.low %v2146_v7, %v2149_v26  ;;  %v4121_v34 = vrot.slane %v4083_v17, 9  ;;  %3320 = vst.msk [vmem:[#allocation2 + $0x40] sm:$0xff] %vm3311_vm14, %v3280_v18  ;;  %v4237_v16 = vld [vmem:[%s4747_s19 + $0xbc] sm:$0x1]  ;;  %v4646_v18 = vld [vmem:[%s4747_s19 + $0xb4] sm:$0xff]  }
  0xd2   : > { %v1609_v31 = vsel %vm4799_vm5, %v1604_v23, %v1608_v61  ;;  %v4136_v33 = vcombine.low %v5394_v14, %v2093_v22  ;;  %v2153_v38 = vsel %vm4749_vm2, %v4129_v24, %v2152_v27  ;;  %v2154_v39 = vrot.slane %v2152_v27, 4 }
  0xd3   : > { %v3264_v62 = vpop.permute.xlu0 %3263  ;;  %v4057_v36 = vcombine.low %v1599_v19, %v1609_v31  ;;  %v2096_v40 = vrot.slane %v4084_v25, 5  ;;  %v2099_v42 = vrot.slane %v4085_v29, 5  ;;  %v2799_v45 = vshrl.u32 %v4232_v30, 16 }
  0xd4   : > { %v2802_v47 = vshll.u32 %v4232_v30, 16  ;;  %v2156_v49 = vsel %vm4749_vm2, %v2154_v39, %v2155_v28  ;;  %3312 = vst.msk [vmem:[#allocation2] sm:$0xff] %vm3311_vm14, %v3264_v62  ;;  %v2808_v53 = vshll.u32 %v4233_v35, 16  ;;  %v2812_v55 = vshrl.u32 %v4233_v35, 16  ;;  %v4645_v28 = vld [vmem:[%s4747_s19 + $0x48] sm:$0xff]  }
  0xd5   : > { %2243 = vrot.lane.b32.xlu1 %v4144_v32, %s4699_s24  ;;  %1908 = vrot.lane.b32.xlu0 %v4057_v36, %s4698_s23  ;;  %v2097_v50 = vsel %vm4749_vm2, %v4121_v34, %v2096_v40  ;;  %v2098_v51 = vrot.slane %v2096_v40, 4  ;;  %v4145_v21 = vcombine.low %v2153_v38, %v2156_v49  ;;  %v2801_v37 = vrot.slane %v2799_v45, 4  ;;  %v4212_v38 = vld [vmem:[%s4747_s19 + $0x58] sm:$0xf]  ;;  %v4213_v45 = vld [vmem:[%s4747_s19 + $0x5c] sm:$0x1] }
  0xd6   : > { %v872_v52 = vpop.permute.xlu1 %871  ;;  %v2804_v54 = vrot.slane %v2802_v47, 5  ;;  %v2810_v46 = vrot.slane %v2808_v53, 5  ;;  %v2818_v56 = vshll.u32 %v4234_v41, 16  ;;  %v2607_v43 = vshrl.u32 %v4208_v48, 16 }
  0xd7   : > { %910 = vst.msk [vmem:[#allocation2 + $0x50] sm:$0xff] %vm899_vm7, %v872_v52  ;;  %v2100_v57 = vsel %vm4749_vm2, %v2098_v51, %v2099_v42  ;;  %v2814_v60 = vrot.slane %v2812_v55, 4  ;;  %v2610_v61 = vshll.u32 %v4208_v48, 16  ;;  %v2616_v3 = vshll.u32 %v4209_v11, 16  ;;  %v4647_v52 = vld [vmem:[%s4747_s19 + $0x54] sm:$0xff]  }
  0xd8   : > { %v4137_v20 = vcombine.low %v2097_v50, %v2100_v57  ;;  %v2805_v13 = vor.u32 %v2804_v54, %v2801_v37  ;;  %v2820_v1 = vrot.slane %v2818_v56, 5  ;;  %v2609_v2 = vrot.slane %v2607_v43, 4  ;;  %v3336_v27 = vld [vmem:[#allocation2 + $0x40] sm:$0xff]  ;;  %v4654_v51 = vld [vmem:[%s5915_s1 + $0x10] ss:$0 sps:$4 sm:$0x33]  }
  0xd9   : > { %2245 = vrot.lane.b32.xlu1 %v4145_v21, %s4699_s24  ;;  %2227 = vrot.lane.b32.xlu0 %v4136_v33, %s4699_s24  ;;  %v2620_v4 = vshrl.u32 %v4209_v11, 16  ;;  %v2815_v8 = vor.u32 %v2814_v60, %v2810_v46  ;;  %v2612_v9 = vrot.slane %v2610_v61, 5  ;;  %v2626_v10 = vshll.u32 %v4210_v58, 16  ;;  %v4211_v33 = vld [vmem:[%s4747_s19 + $0x54] sm:$0xf] }
  0xda   : > { %v856_v44 = vpop.permute.xlu0 %855  ;;  %v3282_v6 = vpop.permute.xlu1 %3281  ;;  %v2806_v7 = vrot.slane %v2805_v13, 4  ;;  %v2618_v14 = vrot.slane %v2616_v3, 5  ;;  %v2823_v17 = vshrl.u32 %v4235_v63, 16  ;;  %v2826_v31 = vshll.u32 %v4235_v63, 16  ;;  %4563 = vmatprep.mubr.msk.bf16.mxu1 %vm3371_vm15, %v3336_v27  ;;  %v4296_v55 = vld [vmem:[%s4747_s19 + $0xa8] sm:$0xe]  ;;  %4585 = vmatprep.subr.msk.bf16.mxu0 %vm3420_vm0, %v4654_v51 }
  0xdb   : > { %902 = vst.msk [vmem:[#allocation2 + $0x10] sm:$0xff] %vm899_vm7, %v856_v44  ;;  %v2622_v15 = vrot.slane %v2620_v4, 4  ;;  %v2816_v23 = vrot.slane %v2815_v8, 4  ;;  %v2613_v24 = vor.u32 %v2612_v9, %v2609_v2  ;;  %v2628_v25 = vrot.slane %v2626_v10, 5  ;;  %v3328_v22 = vld [vmem:[#allocation2] sm:$0xff]  ;;  %4586 = vmatprep.subr.msk.bf16.mxu1 %vm3420_vm0, %v4654_v51 }
  0xdc   : > { %3321 = vst.msk [vmem:[#allocation2 + $0x48] sm:$0xff] %vm3311_vm14, %v3282_v6  ;;  %v2811_v19 = vsel %vm4799_vm5, %v2806_v7, %v2810_v46  ;;  %4547 = vmatprep.mubr.msk.bf16.mxu0 %vm3371_vm15, %v3328_v22  ;;  %v2825_v30 = vrot.slane %v2823_v17, 4  ;;  %v2832_v32 = vshll.u32 %v4236_v12, 16  ;;  %v2836_v35 = vshrl.u32 %v4236_v12, 16  ;;  %v4297_v43 = vld [vmem:[%s4747_s19 + $0xac] sm:$0xf] }
  0xdd   : > { %2421 = vrot.lane.b32.xlu1 %v4644_v59, %s4700_s25  ;;  %2229 = vrot.lane.b32.xlu0 %v4137_v20, %s4699_s24  ;;  %v2623_v29 = vor.u32 %v2622_v15, %v2618_v14  ;;  %v2821_v34 = vsel %vm4799_vm5, %v2816_v23, %v2820_v1  ;;  %v2614_v62 = vrot.slane %v2613_v24, 4  ;;  %v2842_v36 = vshll.u32 %v4237_v16, 16  ;;  %v4298_v20 = vld [vmem:[%s4747_s19 + $0xb0] sm:$0x1]  ;;  %v4272_v61 = vld [vmem:[%s4747_s19 + $0x48] sm:$0xe] }
  0xde   : > { %v3266_v26 = vpop.permute.xlu0 %3265  ;;  %v4256_v39 = vcombine.low %v2811_v19, %v2821_v34  ;;  %v2828_v41 = vrot.slane %v2826_v31, 5  ;;  %v2834_v42 = vrot.slane %v2832_v32, 5  ;;  %v2838_v48 = vrot.slane %v2836_v35, 4  ;;  %v4273_v4 = vld [vmem:[%s4747_s19 + $0x4c] sm:$0xf] }
  0xdf   : > { %3313 = vst.msk [vmem:[#allocation2 + $0x8] sm:$0xff] %vm3311_vm14, %v3266_v26  ;;  %v2624_v40 = vrot.slane %v2623_v29, 4  ;;  %v2619_v47 = vsel %vm4799_vm5, %v2614_v62, %v2618_v14  ;;  %v2844_v49 = vrot.slane %v2842_v36, 5  ;;  %v2631_v50 = vshrl.u32 %v4211_v33, 16  ;;  %v4274_v10 = vld [vmem:[%s4747_s19 + $0x50] sm:$0x1] }
  0xe0   : > { %v2829_v21 = vor.u32 %v2828_v41, %v2825_v30  ;;  %v2634_v37 = vshll.u32 %v4211_v33, 16  ;;  %v2640_v54 = vshll.u32 %v4212_v38, 16  ;;  %v2839_v57 = vor.u32 %v2838_v48, %v2834_v42  ;;  %v411_v19 = vld [vmem:[%s4747_s19 + $0xac] sm:$0xf]  ;;  %v412_v33 = vld [vmem:[%s4747_s19 + $0xb0] sm:$0x1] }
  0xe1   : > { %2423 = vrot.lane.b32.xlu1 %v4646_v18, %s4700_s25  ;;  %2405 = vrot.lane.b32.xlu0 %v4645_v28, %s4700_s25  ;;  %v2629_v53 = vsel %vm4799_vm5, %v2624_v40, %v2628_v25  ;;  %v2633_v46 = vrot.slane %v2631_v50, 4  ;;  %v2644_v56 = vshrl.u32 %v4212_v38, 16  ;;  %v2650_v60 = vshll.u32 %v4213_v45, 16  ;;  %v410_v18 = vld [vmem:[%s4747_s19 + $0xa8] sm:$0xf] }
  0xe2   : > { %v4248_v11 = vcombine.low %v2619_v47, %v2629_v53  ;;  %v2830_v59 = vrot.slane %v2829_v21, 4  ;;  %v2636_v44 = vrot.slane %v2634_v37, 5  ;;  %v2642_v13 = vrot.slane %v2640_v54, 5  ;;  %v386_v34 = vld [vmem:[%s4747_s19 + $0x48] sm:$0xf] }
  0xe3   : > { %v2840_v63 = vrot.slane %v2839_v57, 4  ;;  %v2646_v1 = vrot.slane %v2644_v56, 4  ;;  %v4320_v3 = vrot.slane %v4296_v55, 9  ;;  %v2652_v8 = vrot.slane %v2650_v60, 5  ;;  %v3337_v27 = vld [vmem:[#allocation2 + $0x48] sm:$0xff] }
  0xe4   : > { %v874_v58 = vpop.permute.xlu1 %873  ;;  %v2835_v6 = vsel %vm4799_vm5, %v2830_v59, %v2834_v42  ;;  %v2637_v7 = vor.u32 %v2636_v44, %v2633_v46  ;;  %v3422_v9 = vsel %vm3420_vm0, %v4654_v51, 0  ;;  %v3189_v15 = vrot.slane %v4297_v43, 5  ;;  %v387_v62 = vld [vmem:[%s4747_s19 + $0x4c] sm:$0xf]  ;;  %v388_v40 = vld [vmem:[%s4747_s19 + $0x50] sm:$0x1] }
  0xe5   : > { %911 = vst.msk [vmem:[#allocation2 + $0x58] sm:$0xff] %vm899_vm7, %v874_v58  ;;  %2966 = vrot.lane.b32.xlu1 %v4256_v39, %s4701_s26  ;;  %v858_v2 = vpop.permute.xlu0 %857  ;;  %2407 = vrot.lane.b32.xlu0 %v4647_v52, %s4700_s25  ;;  %v2845_v12 = vsel %vm4799_vm5, %v2840_v63, %v2844_v49  ;;  %v2647_v14 = vor.u32 %v2646_v1, %v2642_v13  ;;  %v3192_v16 = vrot.slane %v4298_v20, 5  ;;  %v4312_v25 = vrot.slane %v4272_v61, 9  ;;  %v4667_v53 = vld [vmem:[%s4747_s19 + $0xa8] sm:$0xff]   ;;  %v4299_v57 = vld [vmem:[%s4747_s19 + $0xb4] sm:$0xe] }
  0xe6   : > { %903 = vst.msk [vmem:[#allocation2 + $0x18] sm:$0xff] %vm899_vm7, %v858_v2  ;;  %4546 = vmatpush3.bf16.msra.mxu0 %v3422_v9  ;;  %v4257_v23 = vcombine.low %v2835_v6, %v2845_v12  ;;  %v2638_v24 = vrot.slane %v2637_v7, 4  ;;  %4584 = vmatpush3.bf16.msra.mxu1 %v3422_v9  ;;  %v3133_v26 = vrot.slane %v4273_v4, 5  ;;  %v3329_v22 = vld [vmem:[#allocation2 + $0x8] sm:$0xff]  ;;  %v3190_v29 = vsel %vm4749_vm2, %v4320_v3, %v3189_v15  ;;  %v4300_v46 = vld [vmem:[%s4747_s19 + $0xb8] sm:$0xf] }
  0xe7   : > { %v2648_v28 = vrot.slane %v2647_v14, 4  ;;  %v3191_v30 = vrot.slane %v3189_v15, 4  ;;  %v3136_v31 = vrot.slane %v4274_v10, 5  ;;  %v756_v39 = vshrl.u32 %v410_v18, 16  ;;  %v4668_v56 = vld [vmem:[%s4747_s19 + $0x48] sm:$0xff]   ;;  %366 = vst.msk [vmem:[#allocation2 + $0x70] sm:$0xff] %vm351_vm6, %v4667_v53 }
  0xe8   : > { %v1196_v17 = vpop.permute.xlu1 %1195  ;;  %v2643_v35 = vsel %vm4799_vm5, %v2638_v24, %v2642_v13  ;;  %v3134_v36 = vsel %vm4749_vm2, %v4312_v25, %v3133_v26  ;;  %v3135_v38 = vrot.slane %v3133_v26, 4  ;;  %v759_v45 = vshll.u32 %v410_v18, 16  ;;  %v4301_v44 = vld [vmem:[%s4747_s19 + $0xbc] sm:$0x1]  ;;  %v4275_v1 = vld [vmem:[%s4747_s19 + $0x54] sm:$0xe] }
  0xe9   : > { %1234 = vst.msk [vmem:[#allocation2 + $0x50] sm:$0xff] %vm1223_vm8, %v1196_v17  ;;  %v1180_v32 = vpop.permute.xlu0 %1179  ;;  %2950 = vrot.lane.b32.xlu0 %v4248_v11, %s4701_s26  ;;  %2968 = vrot.lane.b32.xlu1 %v4257_v23, %s4701_s26  ;;  %v2653_v41 = vsel %vm4799_vm5, %v2648_v28, %v2652_v8  ;;  %v3193_v42 = vsel %vm4749_vm2, %v3191_v30, %v3192_v16  ;;  %v765_v47 = vshll.u32 %v411_v19, 16  ;;  %v758_v52 = vrot.slane %v756_v39, 4  ;;  %v4276_v8 = vld [vmem:[%s4747_s19 + $0x58] sm:$0xf] }
  0xea   : > { %1226 = vst.msk [vmem:[#allocation2 + $0x10] sm:$0xff] %vm1223_vm8, %v1180_v32  ;;  %4548 = vmatmul.mubr.msk.bf16.vlgmr.msra.gmra.mrb[0].mxu0 %vm3371_vm15, %v3329_v22  ;;  %4564 = vmatmul.mubr.msk.bf16.vlgmr.msra.gmra.mrb[0].mxu1 %vm3371_vm15, %v3337_v27  ;;  %v4249_v49 = vcombine.low %v2643_v35, %v2653_v41  ;;  %v4336_v50 = vcombine.low %v3190_v29, %v3193_v42  ;;  %v761_v37 = vrot.slane %v759_v45, 5  ;;  %v769_v55 = vshrl.u32 %v411_v19, 16  ;;  %v4277_v15 = vld [vmem:[%s4747_s19 + $0x5c] sm:$0x1]  ;;  %v4669_v39 = vld [vmem:[%s4747_s19 + $0xb4] sm:$0xff]  }
  0xeb   : > { %v3137_v51 = vsel %vm4749_vm2, %v3135_v38, %v3136_v31  ;;  %v767_v54 = vrot.slane %v765_v47, 5  ;;  %v775_v58 = vshll.u32 %v412_v33, 16  ;;  %v564_v43 = vshrl.u32 %v386_v34, 16  ;;  %358 = vst.msk [vmem:[#allocation2 + $0x30] sm:$0xff] %vm351_vm6, %v4668_v56  ;;  %v413_v24 = vld [vmem:[%s4747_s19 + $0xb4] sm:$0xf] }
  0xec   : > { %v1198_v48 = vpop.permute.xlu1 %1197  ;;  %v4328_v21 = vcombine.low %v3134_v36, %v3137_v51  ;;  %v567_v20 = vshll.u32 %v386_v34, 16  ;;  %v573_v59 = vshll.u32 %v387_v62, 16  ;;  %v762_v13 = vor.u32 %v761_v37, %v758_v52  ;;  %v414_v35 = vld [vmem:[%s4747_s19 + $0xb8] sm:$0xf]  ;;  %v415_v47 = vld [vmem:[%s4747_s19 + $0xbc] sm:$0x1] }
  0xed   : > { %1235 = vst.msk [vmem:[#allocation2 + $0x58] sm:$0xff] %vm1223_vm8, %v1198_v48  ;;  %v1182_v11 = vpop.permute.xlu0 %1181  ;;  %2952 = vrot.lane.b32.xlu0 %v4249_v49, %s4701_s26  ;;  %3287 = vrot.lane.b32.xlu1 %v4336_v50, %s4702_s27  ;;  %v771_v60 = vrot.slane %v769_v55, 4  ;;  %v577_v61 = vshrl.u32 %v387_v62, 16  ;;  %v583_v63 = vshll.u32 %v388_v40, 16  ;;  %v777_v3 = vrot.slane %v775_v58, 5 }
  0xee   : > { %1227 = vst.msk [vmem:[#allocation2 + $0x18] sm:$0xff] %vm1223_vm8, %v1182_v11  ;;  %v566_v4 = vrot.slane %v564_v43, 4  ;;  %v569_v6 = vrot.slane %v567_v20, 5  ;;  %v575_v7 = vrot.slane %v573_v59, 5  ;;  %v763_v9 = vrot.slane %v762_v13, 4 }
  0xef   : > { %v772_v10 = vor.u32 %v771_v60, %v767_v54  ;;  %v579_v12 = vrot.slane %v577_v61, 4  ;;  %v585_v14 = vrot.slane %v583_v63, 5  ;;  %v4321_v18 = vrot.slane %v4299_v57, 9  ;;  %v389_v48 = vld [vmem:[%s4747_s19 + $0x54] sm:$0xf]  ;;  %367 = vst.msk [vmem:[#allocation2 + $0x78] sm:$0xff] %vm351_vm6, %v4669_v39 }
  0xf0   : > { %v1374_v2 = vpop.permute.xlu1 %1373  ;;  %v570_v17 = vor.u32 %v569_v6, %v566_v4  ;;  %v3196_v19 = vrot.slane %v4300_v46, 5  ;;  %v3199_v23 = vrot.slane %v4301_v44, 5  ;;  %v768_v25 = vsel %vm4799_vm5, %v763_v9, %v767_v54  ;;  %v390_v53 = vld [vmem:[%s4747_s19 + $0x58] sm:$0xf]  ;;  %v391_v57 = vld [vmem:[%s4747_s19 + $0x5c] sm:$0x1] }
  0xf1   : > { %1412 = vst.msk [vmem:[#allocation2 + $0x50] sm:$0xff] %vm1401_vm9, %v1374_v2  ;;  %v1358_v16 = vpop.permute.xlu0 %1357  ;;  %3271 = vrot.lane.b32.xlu0 %v4328_v21, %s4702_s27  ;;  %v773_v26 = vrot.slane %v772_v10, 4  ;;  %v580_v22 = vor.u32 %v579_v12, %v575_v7  ;;  %v4313_v27 = vrot.slane %v4275_v1, 9  ;;  %v3140_v32 = vrot.slane %v4276_v8, 5  ;;  %v4670_v46 = vld [vmem:[%s4747_s19 + $0x54] sm:$0xff]  }
  0xf2   : > { %1404 = vst.msk [vmem:[#allocation2 + $0x10] sm:$0xff] %vm1401_vm9, %v1358_v16  ;;  %v571_v29 = vrot.slane %v570_v17, 4  ;;  %v3197_v30 = vsel %vm4749_vm2, %v4321_v18, %v3196_v19  ;;  %v3198_v31 = vrot.slane %v3196_v19, 4  ;;  %v3143_v62 = vrot.slane %v4277_v15, 5  ;;  %v958_v59 = vld [vmem:[%s4747_s19 + $0xa8] sm:$0xe] }
  0xf3   : > { %v778_v33 = vsel %vm4799_vm5, %v773_v26, %v777_v3  ;;  %v581_v34 = vrot.slane %v580_v22, 4  ;;  %v780_v36 = vshrl.u32 %v413_v24, 16  ;;  %v3141_v45 = vsel %vm4749_vm2, %v4313_v27, %v3140_v32  ;;  %v959_v1 = vld [vmem:[%s4747_s19 + $0xac] sm:$0xf]  ;;  %359 = vst.msk [vmem:[#allocation2 + $0x38] sm:$0xff] %vm351_vm6, %v4670_v46 }
  0xf4   : > { %v1376_v28 = vpop.permute.xlu1 %1375  ;;  %v3922_v40 = vcombine.low %v768_v25, %v778_v33  ;;  %v576_v41 = vsel %vm4799_vm5, %v571_v29, %v575_v7  ;;  %v3200_v42 = vsel %vm4749_vm2, %v3198_v31, %v3199_v23  ;;  %v3142_v51 = vrot.slane %v3140_v32, 4  ;;  %v960_v7 = vld [vmem:[%s4747_s19 + $0xb0] sm:$0x1]  ;;  %v934_v15 = vld [vmem:[%s4747_s19 + $0x48] sm:$0xe] }
  0xf5   : > { %1413 = vst.msk [vmem:[#allocation2 + $0x58] sm:$0xff] %vm1401_vm9, %v1376_v28  ;;  %v1360_v38 = vpop.permute.xlu0 %1359  ;;  %v586_v49 = vsel %vm4799_vm5, %v581_v34, %v585_v14  ;;  %v4337_v50 = vcombine.low %v3197_v30, %v3200_v42  ;;  %v782_v52 = vrot.slane %v780_v36, 4  ;;  %v783_v54 = vshll.u32 %v413_v24, 16  ;;  %v935_v16 = vld [vmem:[%s4747_s19 + $0x4c] sm:$0xf] }
  0xf6   : > { %1405 = vst.msk [vmem:[#allocation2 + $0x18] sm:$0xff] %vm1401_vm9, %v1360_v38  ;;  %879 = vrot.lane.b32.xlu1 %v3922_v40, %s4697_s22  ;;  %v3914_v37 = vcombine.low %v576_v41, %v586_v49  ;;  %v789_v55 = vshll.u32 %v414_v35, 16  ;;  %v793_v11 = vshrl.u32 %v414_v35, 16  ;;  %v3144_v56 = vsel %vm4749_vm2, %v3142_v51, %v3143_v62  ;;  %v936_v24 = vld [vmem:[%s4747_s19 + $0x50] sm:$0x1] }
  0xf7   : > { %v799_v58 = vshll.u32 %v415_v47, 16  ;;  %v588_v43 = vshrl.u32 %v389_v48, 16  ;;  %v591_v20 = vshll.u32 %v389_v48, 16  ;;  %v4329_v13 = vcombine.low %v3141_v45, %v3144_v56  ;;  %v961_v25 = vld [vmem:[%s4747_s19 + $0xb4] sm:$0xe] }
  0xf8   : > { %v1919_v21 = vpop.permute.xlu1 %1918  ;;  %863 = vrot.lane.b32.xlu0 %v3914_v37, %s4697_s22  ;;  %v785_v60 = vrot.slane %v783_v54, 5  ;;  %v791_v61 = vrot.slane %v789_v55, 5  ;;  %v795_v63 = vrot.slane %v793_v11, 4  ;;  %v597_v6 = vshll.u32 %v390_v53, 16  ;;  %v962_v29 = vld [vmem:[%s4747_s19 + $0xb8] sm:$0xf] }
  0xf9   : > { %1957 = vst.msk [vmem:[#allocation2 + $0x50] sm:$0xff] %vm1946_vm10, %v1919_v21  ;;  %v1903_v44 = vpop.permute.xlu0 %1902  ;;  %v801_v2 = vrot.slane %v799_v58, 5  ;;  %v590_v3 = vrot.slane %v588_v43, 4  ;;  %v593_v4 = vrot.slane %v591_v20, 5  ;;  %v601_v12 = vshrl.u32 %v390_v53, 16 }
  0xfa   : > { %1949 = vst.msk [vmem:[#allocation2 + $0x10] sm:$0xff] %vm1946_vm10, %v1903_v44  ;;  %3289 = vrot.lane.b32.xlu1 %v4337_v50, %s4702_s27  ;;  %v786_v9 = vor.u32 %v785_v60, %v782_v52  ;;  %v796_v10 = vor.u32 %v795_v63, %v791_v61  ;;  %v607_v14 = vshll.u32 %v391_v57, 16  ;;  %v599_v18 = vrot.slane %v597_v6, 5  ;;  %v963_v30 = vld [vmem:[%s4747_s19 + $0xbc] sm:$0x1] }
  0xfb   : > { %v594_v17 = vor.u32 %v593_v4, %v590_v3  ;;  %v3938_v19 = vrot.slane %v958_v59, 9  ;;  %v1115_v23 = vrot.slane %v959_v1, 5  ;;  %v603_v27 = vrot.slane %v601_v12, 4  ;;  %v937_v62 = vld [vmem:[%s4747_s19 + $0x54] sm:$0xe] }
  0xfc   : > { %v1921_v8 = vpop.permute.xlu1 %1920  ;;  %3273 = vrot.lane.b32.xlu0 %v4329_v13, %s4702_s27  ;;  %v787_v26 = vrot.slane %v786_v9, 4  ;;  %v797_v22 = vrot.slane %v796_v10, 4  ;;  %v609_v28 = vrot.slane %v607_v14, 5  ;;  %v1118_v34 = vrot.slane %v960_v7, 5  ;;  %v938_v35 = vld [vmem:[%s4747_s19 + $0x58] sm:$0xf] }
  0xfd   : > { %1958 = vst.msk [vmem:[#allocation2 + $0x58] sm:$0xff] %vm1946_vm10, %v1921_v8  ;;  %v595_v31 = vrot.slane %v594_v17, 4  ;;  %v1116_v32 = vsel %vm4749_vm2, %v3938_v19, %v1115_v23  ;;  %v1117_v33 = vrot.slane %v1115_v23, 4  ;;  %v604_v41 = vor.u32 %v603_v27, %v599_v18  ;;  %v939_v45 = vld [vmem:[%s4747_s19 + $0x5c] sm:$0x1] }
  0xfe   : > { %v792_v39 = vsel %vm4799_vm5, %v787_v26, %v791_v61  ;;  %v802_v40 = vsel %vm4799_vm5, %v797_v22, %v801_v2  ;;  %v3930_v42 = vrot.slane %v934_v15, 9  ;;  %v1059_v50 = vrot.slane %v935_v16, 5  ;;  %v4046_v51 = vld [vmem:[%s4747_s19 + $0xb4] sm:$0xf]  ;;  %v4047_v54 = vld [vmem:[%s4747_s19 + $0xb8] sm:$0xf] }
  0xff   : > { %v1905_v36 = vpop.permute.xlu0 %1904  ;;  %v3923_v47 = vcombine.low %v792_v39, %v802_v40  ;;  %v600_v48 = vsel %vm4799_vm5, %v595_v31, %v599_v18  ;;  %v1119_v49 = vsel %vm4749_vm2, %v1117_v33, %v1118_v34  ;;  %v605_v52 = vrot.slane %v604_v41, 4  ;;  %v4048_v43 = vld [vmem:[%s4747_s19 + $0xbc] sm:$0x1]  ;;  %v4022_v2 = vld [vmem:[%s4747_s19 + $0x54] sm:$0xf] }
 0x100   : > { %v2240_v38 = vpop.permute.xlu1 %2239  ;;  %1950 = vst.msk [vmem:[#allocation2 + $0x18] sm:$0xff] %vm1946_vm10, %v1905_v36  ;;  %v3954_v53 = vcombine.low %v1116_v32, %v1119_v49  ;;  %v1062_v21 = vrot.slane %v936_v24, 5  ;;  %v3939_v37 = vrot.slane %v961_v25, 9  ;;  %v1060_v55 = vsel %vm4749_vm2, %v3930_v42, %v1059_v50  ;;  %v4023_v3 = vld [vmem:[%s4747_s19 + $0x58] sm:$0xf] }
 0x101   : > { %2278 = vst.msk [vmem:[#allocation2 + $0x50] sm:$0xff] %vm2267_vm11, %v2240_v38  ;;  %881 = vrot.lane.b32.xlu1 %v3923_v47, %s4697_s22  ;;  %v1061_v11 = vrot.slane %v1059_v50, 4  ;;  %v1122_v57 = vrot.slane %v962_v29, 5  ;;  %v1125_v46 = vrot.slane %v963_v30, 5  ;;  %v610_v20 = vsel %vm4799_vm5, %v605_v52, %v609_v28  ;;  %v4024_v24 = vld [vmem:[%s4747_s19 + $0x5c] sm:$0x1] }
 0x102   : > { %v3931_v59 = vrot.slane %v937_v62, 9  ;;  %v1066_v44 = vrot.slane %v938_v35, 5  ;;  %v1069_v13 = vrot.slane %v939_v45, 5  ;;  %v3915_v60 = vcombine.low %v600_v48, %v610_v20  ;;  %v4049_v28 = vld [vmem:[%s4747_s19 + $0xc0] sm:$0xf]  ;;  %v4655_v33 = vld [vmem:[%s4747_s19 + $0xb4] sm:$0xff]  }
 0x103   : > { %v2224_v56 = vpop.permute.xlu0 %2223  ;;  %v1063_v61 = vsel %vm4749_vm2, %v1061_v11, %v1062_v21  ;;  %v1123_v63 = vsel %vm4749_vm2, %v3939_v37, %v1122_v57  ;;  %v1124_v1 = vrot.slane %v1122_v57, 4  ;;  %v1803_v8 = vshrl.u32 %v4046_v51, 16  ;;  %v4050_v39 = vld [vmem:[%s4747_s19 + $0xc4] sm:$0xf]  ;;  %v4051_v52 = vld [vmem:[%s4747_s19 + $0xc8] sm:$0x1] }
 0x104   : > { %v2242_v58 = vpop.permute.xlu1 %2241  ;;  %2270 = vst.msk [vmem:[#allocation2 + $0x10] sm:$0xff] %vm2267_vm11, %v2224_v56  ;;  %v3946_v4 = vcombine.low %v1060_v55, %v1063_v61  ;;  %v1067_v6 = vsel %vm4749_vm2, %v3931_v59, %v1066_v44  ;;  %v1068_v7 = vrot.slane %v1066_v44, 4  ;;  %865 = vrot.lane.b32.xlu0 %v3915_v60, %s4697_s22  ;;  %v1806_v12 = vshll.u32 %v4046_v51, 16  ;;  %v4025_v11 = vld [vmem:[%s4747_s19 + $0x60] sm:$0xf] }
 0x105   : > { %2279 = vst.msk [vmem:[#allocation2 + $0x58] sm:$0xff] %vm2267_vm11, %v2242_v58  ;;  %1203 = vrot.lane.b32.xlu1 %v3954_v53, %s4696_s21  ;;  %v1126_v9 = vsel %vm4749_vm2, %v1124_v1, %v1125_v46  ;;  %v1812_v14 = vshll.u32 %v4047_v54, 16  ;;  %v1816_v15 = vshrl.u32 %v4047_v54, 16  ;;  %v1805_v19 = vrot.slane %v1803_v8, 4  ;;  %v4656_v53 = vld [vmem:[%s4747_s19 + $0x54] sm:$0xff]   ;;  %v4657_v57 = vld [vmem:[%s4747_s19 + $0xc0] sm:$0xff]  }
 0x106   : > { %v3955_v17 = vcombine.low %v1123_v63, %v1126_v9  ;;  %v1070_v18 = vsel %vm4749_vm2, %v1068_v7, %v1069_v13  ;;  %v1822_v23 = vshll.u32 %v4048_v43, 16  ;;  %v1808_v26 = vrot.slane %v1806_v12, 5  ;;  %v4026_v20 = vld [vmem:[%s4747_s19 + $0x64] sm:$0xf]  ;;  %v4027_v1 = vld [vmem:[%s4747_s19 + $0x68] sm:$0x1] }
 0x107   : > { %v2226_v10 = vpop.permute.xlu0 %2225  ;;  %v3947_v25 = vcombine.low %v1067_v6, %v1070_v18  ;;  %v1814_v22 = vrot.slane %v1812_v14, 5  ;;  %v1818_v27 = vrot.slane %v1816_v15, 4  ;;  %v1611_v30 = vshrl.u32 %v4022_v2, 16  ;;  %v4111_v9 = vld [vmem:[%s4747_s19 + $0xb8] sm:$0xf] }
 0x108   : > { %v2418_v16 = vpop.permute.xlu1 %2417  ;;  %2271 = vst.msk [vmem:[#allocation2 + $0x18] sm:$0xff] %vm2267_vm11, %v2226_v10  ;;  %v1824_v29 = vrot.slane %v1822_v23, 5  ;;  %v1614_v31 = vshll.u32 %v4022_v2, 16  ;;  %v1620_v32 = vshll.u32 %v4023_v3, 16  ;;  %1187 = vrot.lane.b32.xlu0 %v3946_v4, %s4696_s21  ;;  %v1809_v34 = vor.u32 %v1808_v26, %v1805_v19  ;;  %v4110_v2 = vld [vmem:[%s4747_s19 + $0xb4] sm:$0xe] }
 0x109   : > { %2456 = vst.msk [vmem:[#allocation2 + $0x50] sm:$0xff] %vm2445_vm12, %v2418_v16  ;;  %1205 = vrot.lane.b32.xlu1 %v3955_v17, %s4696_s21  ;;  %v1819_v62 = vor.u32 %v1818_v27, %v1814_v22  ;;  %v1624_v35 = vshrl.u32 %v4023_v3, 16  ;;  %v1630_v36 = vshll.u32 %v4024_v24, 16  ;;  %v1613_v41 = vrot.slane %v1611_v30, 4  ;;  %v4658_v3 = vld [vmem:[%s4747_s19 + $0x60] sm:$0xff]  }
 0x10a   : > { %v1616_v42 = vrot.slane %v1614_v31, 5  ;;  %v1622_v45 = vrot.slane %v1620_v32, 5  ;;  %v1827_v47 = vshrl.u32 %v4049_v28, 16  ;;  %v1810_v48 = vrot.slane %v1809_v34, 4  ;;  %v4112_v10 = vld [vmem:[%s4747_s19 + $0xbc] sm:$0x1] }
 0x10b   : > { %v2402_v38 = vpop.permute.xlu0 %2401  ;;  %v1820_v49 = vrot.slane %v1819_v62, 4  ;;  %v1626_v50 = vrot.slane %v1624_v35, 4  ;;  %v1632_v51 = vrot.slane %v1630_v36, 5  ;;  %v1830_v54 = vshll.u32 %v4049_v28, 16  ;;  %v4086_v17 = vld [vmem:[%s4747_s19 + $0x54] sm:$0xe] }
 0x10c   : > { %v2420_v40 = vpop.permute.xlu1 %2419  ;;  %2448 = vst.msk [vmem:[#allocation2 + $0x10] sm:$0xff] %vm2445_vm12, %v2402_v38  ;;  %v1617_v21 = vor.u32 %v1616_v42, %v1613_v41  ;;  %v1829_v37 = vrot.slane %v1827_v47, 4  ;;  %v1836_v55 = vshll.u32 %v4050_v39, 16  ;;  %1189 = vrot.lane.b32.xlu0 %v3947_v25, %s4696_s21  ;;  %v1815_v46 = vsel %vm4799_vm5, %v1810_v48, %v1814_v22  ;;  %v4087_v30 = vld [vmem:[%s4747_s19 + $0x58] sm:$0xf] }
 0x10d   : > { %2457 = vst.msk [vmem:[#allocation2 + $0x58] sm:$0xff] %vm2445_vm12, %v2420_v40  ;;  %1381 = vrot.lane.b32.xlu1 %v4655_v33, %s4695_s20  ;;  %v1825_v56 = vsel %vm4799_vm5, %v1820_v49, %v1824_v29  ;;  %v1627_v58 = vor.u32 %v1626_v50, %v1622_v45  ;;  %v1840_v43 = vshrl.u32 %v4050_v39, 16  ;;  %v1832_v61 = vrot.slane %v1830_v54, 5  ;;  %v4088_v62 = vld [vmem:[%s4747_s19 + $0x5c] sm:$0x1] }
 0x10e   : > { %v4066_v13 = vcombine.low %v1815_v46, %v1825_v56  ;;  %v1618_v60 = vrot.slane %v1617_v21, 4  ;;  %v1838_v63 = vrot.slane %v1836_v55, 5  ;;  %v1846_v7 = vshll.u32 %v4051_v52, 16  ;;  %v4113_v40 = vld [vmem:[%s4747_s19 + $0xc0] sm:$0xe] }
 0x10f   : > { %v2404_v59 = vpop.permute.xlu0 %2403  ;;  %v1628_v4 = vrot.slane %v1627_v58, 4  ;;  %v1842_v6 = vrot.slane %v1840_v43, 4  ;;  %v1635_v8 = vshrl.u32 %v4025_v11, 16  ;;  %v1833_v14 = vor.u32 %v1832_v61, %v1829_v37  ;;  %v4114_v41 = vld [vmem:[%s4747_s19 + $0xc4] sm:$0xf] }
 0x110   : > { %v2963_v44 = vpop.permute.xlu1 %2962  ;;  %2449 = vst.msk [vmem:[#allocation2 + $0x18] sm:$0xff] %vm2445_vm12, %v2404_v59  ;;  %v1623_v12 = vsel %vm4799_vm5, %v1618_v60, %v1622_v45  ;;  %v1638_v15 = vshll.u32 %v4025_v11, 16  ;;  %v1644_v16 = vshll.u32 %v4026_v20, 16  ;;  %1365 = vrot.lane.b32.xlu0 %v4656_v53, %s4695_s20  ;;  %v1848_v23 = vrot.slane %v1846_v7, 5  ;;  %v4115_v49 = vld [vmem:[%s4747_s19 + $0xc8] sm:$0x1] }
 0x111   : > { %3001 = vst.msk [vmem:[#allocation2 + $0x50] sm:$0xff] %vm2990_vm13, %v2963_v44  ;;  %1383 = vrot.lane.b32.xlu1 %v4657_v57, %s4695_s20  ;;  %v1633_v18 = vsel %vm4799_vm5, %v1628_v4, %v1632_v51  ;;  %v1843_v19 = vor.u32 %v1842_v6, %v1838_v63  ;;  %v1637_v24 = vrot.slane %v1635_v8, 4  ;;  %v1834_v27 = vrot.slane %v1833_v14, 4  ;;  %v4089_v54 = vld [vmem:[%s4747_s19 + $0x60] sm:$0xe] }
 0x112   : > { %v4058_v22 = vcombine.low %v1623_v12, %v1633_v18  ;;  %v1640_v28 = vrot.slane %v1638_v15, 5  ;;  %v5638_v29 = vrot.slane %v1644_v16, 5  ;;  %v1648_v32 = vshrl.u32 %v4026_v20, 16  ;;  %v4090_v56 = vld [vmem:[%s4747_s19 + $0x64] sm:$0xf] }
 0x113   : > { %v2947_v25 = vpop.permute.xlu0 %2946  ;;  %v1844_v31 = vrot.slane %v1843_v19, 4  ;;  %v1654_v33 = vshll.u32 %v4027_v1, 16  ;;  %v4130_v34 = vrot.slane %v4110_v2, 9  ;;  %v1839_v35 = vsel %vm4799_vm5, %v1834_v27, %v1838_v63  ;;  %v4091_v44 = vld [vmem:[%s4747_s19 + $0x68] sm:$0x1] }
 0x114   : > { %v2965_v26 = vpop.permute.xlu1 %2964  ;;  %2993 = vst.msk [vmem:[#allocation2 + $0x10] sm:$0xff] %vm2990_vm13, %v2947_v25  ;;  %v1641_v36 = vor.u32 %v1640_v28, %v1637_v24  ;;  %v2159_v38 = vrot.slane %v4111_v9, 5  ;;  %v2162_v39 = vrot.slane %v4112_v10, 5  ;;  %1367 = vrot.lane.b32.xlu0 %v4658_v3, %s4695_s20  ;;  %v1650_v45 = vrot.slane %v1648_v32, 4  ;;  %v4239_v3 = vld [vmem:[%s4747_s19 + $0xc4] sm:$0xf] }
 0x115   : > { %3002 = vst.msk [vmem:[#allocation2 + $0x58] sm:$0xff] %vm2990_vm13, %v2965_v26  ;;  %1926 = vrot.lane.b32.xlu1 %v4066_v13, %s4698_s23  ;;  %v1849_v42 = vsel %vm4799_vm5, %v1844_v31, %v1848_v23  ;;  %v1656_v47 = vrot.slane %v1654_v33, 5  ;;  %v4122_v48 = vrot.slane %v4086_v17, 9  ;;  %v2103_v11 = vrot.slane %v4087_v30, 5  ;;  %v4238_v13 = vld [vmem:[%s4747_s19 + $0xc0] sm:$0xf] }
 0x116   : > { %v4067_v52 = vcombine.low %v1839_v35, %v1849_v42  ;;  %v1642_v53 = vrot.slane %v1641_v36, 4  ;;  %v2160_v21 = vsel %vm4749_vm2, %v4130_v34, %v2159_v38  ;;  %v2161_v37 = vrot.slane %v2159_v38, 4  ;;  %v4240_v4 = vld [vmem:[%s4747_s19 + $0xc8] sm:$0x1]  ;;  %v4214_v6 = vld [vmem:[%s4747_s19 + $0x60] sm:$0xf] }
 0x117   : > { %v2949_v50 = vpop.permute.xlu0 %2948  ;;  %v1651_v55 = vor.u32 %v1650_v45, %v5638_v29  ;;  %v2106_v57 = vrot.slane %v4088_v62, 5  ;;  %v4131_v46 = vrot.slane %v4113_v40, 9  ;;  %v2166_v20 = vrot.slane %v4114_v41, 5  ;;  %v4215_v12 = vld [vmem:[%s4747_s19 + $0x64] sm:$0xf] }
 0x118   : > { %v3284_v51 = vpop.permute.xlu1 %3283  ;;  %2994 = vst.msk [vmem:[#allocation2 + $0x18] sm:$0xff] %vm2990_vm13, %v2949_v50  ;;  %v1647_v58 = vsel %vm4799_vm5, %v1642_v53, %v5638_v29  ;;  %v2163_v43 = vsel %vm4749_vm2, %v2161_v37, %v2162_v39  ;;  %v2169_v59 = vrot.slane %v4115_v49, 5  ;;  %1910 = vrot.lane.b32.xlu0 %v4058_v22, %s4698_s23  ;;  %v2104_v63 = vsel %vm4749_vm2, %v4122_v48, %v2103_v11  ;;  %v4216_v29 = vld [vmem:[%s4747_s19 + $0x68] sm:$0x1]  ;;  %v4241_v40 = vld [vmem:[%s4747_s19 + $0xcc] sm:$0xf] }
 0x119   : > { %3322 = vst.msk [vmem:[#allocation2 + $0x50] sm:$0xff] %vm3311_vm14, %v3284_v51  ;;  %1928 = vrot.lane.b32.xlu1 %v4067_v52, %s4698_s23  ;;  %v1652_v60 = vrot.slane %v1651_v55, 4  ;;  %v4146_v61 = vcombine.low %v2160_v21, %v2163_v43  ;;  %v2105_v1 = vrot.slane %v2103_v11, 4  ;;  %v2167_v7 = vsel %vm4749_vm2, %v4131_v46, %v2166_v20  ;;  %v4242_v48 = vld [vmem:[%s4747_s19 + $0xd0] sm:$0xf]  ;;  %v4659_v49 = vld [vmem:[%s4747_s19 + $0xc0] sm:$0xff]  }
 0x11a   : > { %v2168_v8 = vrot.slane %v2166_v20, 4  ;;  %v4123_v9 = vrot.slane %v4089_v54, 9  ;;  %v2110_v10 = vrot.slane %v4090_v56, 5  ;;  %v2113_v16 = vrot.slane %v4091_v44, 5  ;;  %v4243_v43 = vld [vmem:[%s4747_s19 + $0xd4] sm:$0x1] }
 0x11b   : > { %v3268_v2 = vpop.permute.xlu0 %3267  ;;  %v1657_v14 = vsel %vm4799_vm5, %v1652_v60, %v1656_v47  ;;  %v2107_v15 = vsel %vm4749_vm2, %v2105_v1, %v2106_v57  ;;  %v2847_v17 = vshrl.u32 %v4238_v13, 16  ;;  %v2850_v28 = vshll.u32 %v4238_v13, 16  ;;  %v4661_v1 = vld [vmem:[%s4747_s19 + $0xcc] sm:$0xff]  }
 0x11c   : > { %3314 = vst.msk [vmem:[#allocation2 + $0x10] sm:$0xff] %vm3311_vm14, %v3268_v2  ;;  %v4059_v18 = vcombine.low %v1647_v58, %v1657_v14  ;;  %v4138_v19 = vcombine.low %v2104_v63, %v2107_v15  ;;  %v2170_v23 = vsel %vm4749_vm2, %v2168_v8, %v2169_v59  ;;  %v2111_v24 = vsel %vm4749_vm2, %v4123_v9, %v2110_v10  ;;  %v4217_v63 = vld [vmem:[%s4747_s19 + $0x6c] sm:$0xf]  ;;  %v4218_v14 = vld [vmem:[%s4747_s19 + $0x70] sm:$0xf] }
 0x11d   : > { %2247 = vrot.lane.b32.xlu1 %v4146_v61, %s4699_s24  ;;  %v4147_v25 = vcombine.low %v2167_v7, %v2170_v23  ;;  %v2112_v26 = vrot.slane %v2110_v10, 4  ;;  %v2849_v27 = vrot.slane %v2847_v17, 4  ;;  %v2856_v31 = vshll.u32 %v4239_v3, 16  ;;  %v4660_v7 = vld [vmem:[%s4747_s19 + $0x60] sm:$0xff]  }
 0x11e   : > { %1912 = vrot.lane.b32.xlu0 %v4059_v18, %s4698_s23  ;;  %v2860_v32 = vshrl.u32 %v4239_v3, 16  ;;  %v2866_v33 = vshll.u32 %v4240_v4, 16  ;;  %v2655_v34 = vshrl.u32 %v4214_v6, 16  ;;  %v2852_v36 = vrot.slane %v2850_v28, 5  ;;  %v4219_v18 = vld [vmem:[%s4747_s19 + $0x74] sm:$0x1] }
 0x11f   : > { %v876_v22 = vpop.permute.xlu1 %875  ;;  %v2114_v62 = vsel %vm4749_vm2, %v2112_v26, %v2113_v16  ;;  %v2658_v38 = vshll.u32 %v4214_v6, 16  ;;  %v2664_v39 = vshll.u32 %v4215_v12, 16  ;;  %v2858_v42 = vrot.slane %v2856_v31, 5  ;;  %v4302_v23 = vld [vmem:[%s4747_s19 + $0xc0] sm:$0xe] }
 0x120   : > { %v3338_v30 = vld [vmem:[#allocation2 + $0x50] sm:$0xff]  ;;  %912 = vst.msk [vmem:[#allocation2 + $0x60] sm:$0xff] %vm899_vm7, %v876_v22  ;;  %v4139_v41 = vcombine.low %v2111_v24, %v2114_v62  ;;  %v2862_v45 = vrot.slane %v2860_v32, 4  ;;  %v2868_v47 = vrot.slane %v2866_v33, 5  ;;  %v2853_v50 = vor.u32 %v2852_v36, %v2849_v27  ;;  %v4303_v27 = vld [vmem:[%s4747_s19 + $0xc4] sm:$0xf] }
 0x121   : > { %4567 = vmatprep.mubr.msk.bf16.mxu1 %vm3371_vm15, %v3338_v30  ;;  %v860_v35 = vpop.permute.xlu0 %859  ;;  %2249 = vrot.lane.b32.xlu1 %v4147_v25, %s4699_s24  ;;  %v2657_v51 = vrot.slane %v2655_v34, 4  ;;  %v2660_v52 = vrot.slane %v2658_v38, 5  ;;  %v5698_v53 = vrot.slane %v2664_v39, 5  ;;  %v2668_v55 = vshrl.u32 %v4215_v12, 16  ;;  %v4304_v28 = vld [vmem:[%s4747_s19 + $0xc8] sm:$0x1] }
 0x122   : > { %904 = vst.msk [vmem:[#allocation2 + $0x20] sm:$0xff] %vm899_vm7, %v860_v35  ;;  %2231 = vrot.lane.b32.xlu0 %v4138_v19, %s4699_s24  ;;  %v2863_v54 = vor.u32 %v2862_v45, %v2858_v42  ;;  %v2674_v11 = vshll.u32 %v4216_v29, 16  ;;  %v2871_v57 = vshrl.u32 %v4241_v40, 16  ;;  %v2854_v46 = vrot.slane %v2853_v50, 4  ;;  %v4662_v29 = vld [vmem:[%s4747_s19 + $0x6c] sm:$0xff]  }
 0x123   : > { %v3286_v21 = vpop.permute.xlu1 %3285  ;;  %v3330_v37 = vld [vmem:[#allocation2 + $0x10] sm:$0xff]  ;;  %v2661_v56 = vor.u32 %v2660_v52, %v2657_v51  ;;  %v2874_v20 = vshll.u32 %v4241_v40, 16  ;;  %v2880_v59 = vshll.u32 %v4242_v48, 16  ;;  %v2670_v13 = vrot.slane %v2668_v55, 4  ;;  %v4278_v40 = vld [vmem:[%s4747_s19 + $0x60] sm:$0xe] }
 0x124   : > { %3323 = vst.msk [vmem:[#allocation2 + $0x58] sm:$0xff] %vm3311_vm14, %v3286_v21  ;;  %4551 = vmatprep.mubr.msk.bf16.mxu0 %vm3371_vm15, %v3330_v37  ;;  %v2864_v44 = vrot.slane %v2863_v54, 4  ;;  %v2676_v60 = vrot.slane %v2674_v11, 5  ;;  %v2873_v61 = vrot.slane %v2871_v57, 4  ;;  %v2859_v2 = vsel %vm4799_vm5, %v2854_v46, %v2858_v42  ;;  %v4305_v54 = vld [vmem:[%s4747_s19 + $0xcc] sm:$0xe] }
 0x125   : > { %v3270_v58 = vpop.permute.xlu0 %3269  ;;  %2425 = vrot.lane.b32.xlu1 %v4659_v49, %s4700_s25  ;;  %v2662_v3 = vrot.slane %v2661_v56, 4  ;;  %v2876_v4 = vrot.slane %v2874_v20, 5  ;;  %v5710_v6 = vrot.slane %v2880_v59, 5  ;;  %v2671_v9 = vor.u32 %v2670_v13, %v5698_v53  ;;  %v4280_v49 = vld [vmem:[%s4747_s19 + $0x68] sm:$0x1] }
 0x126   : > { %3315 = vst.msk [vmem:[#allocation2 + $0x18] sm:$0xff] %vm3311_vm14, %v3270_v58  ;;  %2233 = vrot.lane.b32.xlu0 %v4139_v41, %s4699_s24  ;;  %v2869_v8 = vsel %vm4799_vm5, %v2864_v44, %v2868_v47  ;;  %v2884_v10 = vshrl.u32 %v4242_v48, 16  ;;  %v2890_v12 = vshll.u32 %v4243_v43, 16  ;;  %v2679_v19 = vshrl.u32 %v4217_v63, 16  ;;  %v4279_v41 = vld [vmem:[%s4747_s19 + $0x64] sm:$0xf] }
 0x127   : > { %v4258_v15 = vcombine.low %v2859_v2, %v2869_v8  ;;  %v2667_v16 = vsel %vm4799_vm5, %v2662_v3, %v5698_v53  ;;  %v2877_v17 = vor.u32 %v2876_v4, %v2873_v61  ;;  %v2672_v24 = vrot.slane %v2671_v9, 4  ;;  %v4306_v58 = vld [vmem:[%s4747_s19 + $0xd0] sm:$0xf]  ;;  %v4307_v13 = vld [vmem:[%s4747_s19 + $0xd4] sm:$0x1] }
 0x128   : > { %v2886_v25 = vrot.slane %v2884_v10, 4  ;;  %v2892_v26 = vrot.slane %v2890_v12, 5  ;;  %v2682_v22 = vshll.u32 %v4217_v63, 16  ;;  %v2681_v31 = vrot.slane %v2679_v19, 4  ;;  %v4282_v8 = vld [vmem:[%s4747_s19 + $0x70] sm:$0xf] }
 0x129   : > { %2427 = vrot.lane.b32.xlu1 %v4661_v1, %s4700_s25  ;;  %v2878_v30 = vrot.slane %v2877_v17, 4  ;;  %v2688_v32 = vshll.u32 %v4218_v14, 16  ;;  %v2692_v33 = vshrl.u32 %v4218_v14, 16  ;;  %v2677_v35 = vsel %vm4799_vm5, %v2672_v24, %v2676_v60 }
 0x12a   : > { %2409 = vrot.lane.b32.xlu0 %v4660_v7, %s4700_s25  ;;  %v2887_v36 = vor.u32 %v2886_v25, %v5710_v6  ;;  %v2684_v38 = vrot.slane %v2682_v22, 5  ;;  %v2698_v39 = vshll.u32 %v4219_v18, 16  ;;  %v4250_v42 = vcombine.low %v2667_v16, %v2677_v35  ;;  %v4281_v7 = vld [vmem:[%s4747_s19 + $0x6c] sm:$0xe] }
 0x12b   : > { %v878_v34 = vpop.permute.xlu1 %877  ;;  %v3339_v62 = vld [vmem:[#allocation2 + $0x58] sm:$0xff]  ;;  %v2883_v45 = vsel %vm4799_vm5, %v2878_v30, %v5710_v6  ;;  %v2690_v47 = vrot.slane %v2688_v32, 5  ;;  %v2694_v48 = vrot.slane %v2692_v33, 4  ;;  %v4322_v37 = vrot.slane %v4302_v23, 9 }
 0x12c   : > { %913 = vst.msk [vmem:[#allocation2 + $0x68] sm:$0xff] %vm899_vm7, %v878_v34  ;;  %4568 = vmatmul.mubr.msk.bf16.gmra.mrb[4].mxu1 %vm3371_vm15, %v3339_v62  ;;  %v2888_v51 = vrot.slane %v2887_v36, 4  ;;  %v2685_v52 = vor.u32 %v2684_v38, %v2681_v31  ;;  %v2700_v53 = vrot.slane %v2698_v39, 5  ;;  %v3203_v11 = vrot.slane %v4303_v27, 5 }
 0x12d   : > { %v3331_v50 = vld [vmem:[#allocation2 + $0x18] sm:$0xff]  ;;  %v862_v21 = vpop.permute.xlu0 %861  ;;  %2970 = vrot.lane.b32.xlu1 %v4258_v15, %s4701_s26  ;;  %v2695_v55 = vor.u32 %v2694_v48, %v2690_v47  ;;  %v3206_v57 = vrot.slane %v4304_v28, 5  ;;  %v4314_v46 = vrot.slane %v4278_v40, 9  ;;  %v3147_v59 = vrot.slane %v4279_v41, 5  ;;  %v4283_v15 = vld [vmem:[%s4747_s19 + $0x74] sm:$0x1] }
 0x12e   : > { %4552 = vmatmul.mubr.msk.bf16.gmra.mrb[4].mxu0 %vm3371_vm15, %v3331_v50  ;;  %905 = vst.msk [vmem:[#allocation2 + $0x28] sm:$0xff] %vm899_vm7, %v862_v21  ;;  %2411 = vrot.lane.b32.xlu0 %v4662_v29, %s4700_s25  ;;  %v2893_v43 = vsel %vm4799_vm5, %v2888_v51, %v2892_v26  ;;  %v2686_v20 = vrot.slane %v2685_v52, 4  ;;  %v3150_v44 = vrot.slane %v4280_v49, 5  ;;  %v3204_v63 = vsel %vm4749_vm2, %v4322_v37, %v3203_v11 }
 0x12f   : > { %v1200_v56 = vpop.permute.xlu1 %1199  ;;  %v4259_v60 = vcombine.low %v2883_v45, %v2893_v43  ;;  %v2696_v61 = vrot.slane %v2695_v55, 4  ;;  %v3205_v1 = vrot.slane %v3203_v11, 4  ;;  %v3149_v3 = vrot.slane %v3147_v59, 4 }
 0x130   : > { %1236 = vst.msk [vmem:[#allocation2 + $0x60] sm:$0xff] %vm1223_vm8, %v1200_v56  ;;  %v2691_v2 = vsel %vm4799_vm5, %v2686_v20, %v2690_v47  ;;  %v4323_v6 = vrot.slane %v4305_v54, 9  ;;  %v3210_v12 = vrot.slane %v4306_v58, 5  ;;  %v3213_v14 = vrot.slane %v4307_v13, 5 }
 0x131   : > { %v1184_v4 = vpop.permute.xlu0 %1183  ;;  %2972 = vrot.lane.b32.xlu1 %v4259_v60, %s4701_s26  ;;  %v2701_v9 = vsel %vm4799_vm5, %v2696_v61, %v2700_v53  ;;  %v3207_v10 = vsel %vm4749_vm2, %v3205_v1, %v3206_v57  ;;  %v3148_v19 = vsel %vm4749_vm2, %v4314_v46, %v3147_v59  ;;  %v3151_v5 = vsel %vm4749_vm2, %v3149_v3, %v3150_v44 }
 0x132   : > { %1228 = vst.msk [vmem:[#allocation2 + $0x20] sm:$0xff] %vm1223_vm8, %v1184_v4  ;;  %2954 = vrot.lane.b32.xlu0 %v4250_v42, %s4701_s26  ;;  %v4251_v17 = vcombine.low %v2691_v2, %v2701_v9  ;;  %v4338_v18 = vcombine.low %v3204_v63, %v3207_v10  ;;  %v3211_v23 = vsel %vm4749_vm2, %v4323_v6, %v3210_v12  ;;  %v3212_v24 = vrot.slane %v3210_v12, 4 }
 0x133   : > { %v1202_v16 = vpop.permute.xlu1 %1201  ;;  %v4315_v25 = vrot.slane %v4281_v7, 9  ;;  %v3154_v26 = vrot.slane %v4282_v8, 5  ;;  %v3157_v22 = vrot.slane %v4283_v15, 5  ;;  %v4330_v31 = vcombine.low %v3148_v19, %v3151_v5 }
 0x134   : > { %1237 = vst.msk [vmem:[#allocation2 + $0x68] sm:$0xff] %vm1223_vm8, %v1202_v16  ;;  %v3214_v28 = vsel %vm4749_vm2, %v3212_v24, %v3213_v14 }
 0x135   : > { %v1186_v27 = vpop.permute.xlu0 %1185  ;;  %3291 = vrot.lane.b32.xlu1 %v4338_v18, %s4702_s27  ;;  %v3156_v29 = vrot.slane %v3154_v26, 4  ;;  %v4339_v32 = vcombine.low %v3211_v23, %v3214_v28  ;;  %v3155_v33 = vsel %vm4749_vm2, %v4315_v25, %v3154_v26 }
 0x136   : > { %1229 = vst.msk [vmem:[#allocation2 + $0x28] sm:$0xff] %vm1223_vm8, %v1186_v27  ;;  %2956 = vrot.lane.b32.xlu0 %v4251_v17, %s4701_s26 }
 0x137   : > { %v1378_v30 = vpop.permute.xlu1 %1377  ;;  %v3158_v34 = vsel %vm4749_vm2, %v3156_v29, %v3157_v22 }
 0x138   : > { %1414 = vst.msk [vmem:[#allocation2 + $0x60] sm:$0xff] %vm1401_vm9, %v1378_v30  ;;  %v4331_v36 = vcombine.low %v3155_v33, %v3158_v34 }
 0x139   : > { %v1362_v62 = vpop.permute.xlu0 %1361  ;;  %3293 = vrot.lane.b32.xlu1 %v4339_v32, %s4702_s27 }
 0x13a   : > { %1406 = vst.msk [vmem:[#allocation2 + $0x20] sm:$0xff] %vm1401_vm9, %v1362_v62  ;;  %3275 = vrot.lane.b32.xlu0 %v4330_v31, %s4702_s27  ;;  %v5849_v62 = vld [vmem:[%s5916_s2] ss:$0 sm:$0xff] }
 0x13b   : > { %v1380_v35 = vpop.permute.xlu1 %1379 }
 0x13c   : > { %1415 = vst.msk [vmem:[#allocation2 + $0x68] sm:$0xff] %vm1401_vm9, %v1380_v35 }
 0x13d   : > { %v1364_v38 = vpop.permute.xlu0 %1363 }
 0x13e   : > { %1407 = vst.msk [vmem:[#allocation2 + $0x28] sm:$0xff] %vm1401_vm9, %v1364_v38  ;;  %3277 = vrot.lane.b32.xlu0 %v4331_v36, %s4702_s27 }
 0x13f   : > { %v1923_v39 = vpop.permute.xlu1 %1922 }
 0x140   : > { %1959 = vst.msk [vmem:[#allocation2 + $0x60] sm:$0xff] %vm1946_vm10, %v1923_v39 }
 0x141   : > { %v1907_v0 = vpop.permute.xlu0 %1906 }
 0x142   : > { %1951 = vst.msk [vmem:[#allocation2 + $0x20] sm:$0xff] %vm1946_vm10, %v1907_v0 }
 0x143   : > { %v1925_v40 = vpop.permute.xlu1 %1924 }
 0x144   : > { %1960 = vst.msk [vmem:[#allocation2 + $0x68] sm:$0xff] %vm1946_vm10, %v1925_v40 }
 0x147   : > { %v2244_v41 = vpop.permute.xlu1 %2243  ;;  %v1909_v42 = vpop.permute.xlu0 %1908 }
 0x148   : > { %2280 = vst.msk [vmem:[#allocation2 + $0x60] sm:$0xff] %vm2267_vm11, %v2244_v41 }
 0x149   : > { %1952 = vst.msk [vmem:[#allocation2 + $0x28] sm:$0xff] %vm1946_vm10, %v1909_v42 }
 0x14b   : > { %v2246_v45 = vpop.permute.xlu1 %2245  ;;  %v2228_v47 = vpop.permute.xlu0 %2227 }
 0x14c   : > { %2281 = vst.msk [vmem:[#allocation2 + $0x68] sm:$0xff] %vm2267_vm11, %v2246_v45  ;;  %2272 = vst.msk [vmem:[#allocation2 + $0x20] sm:$0xff] %vm2267_vm11, %v2228_v47 }
 0x14f   : > { %v2422_v48 = vpop.permute.xlu1 %2421  ;;  %v2230_v49 = vpop.permute.xlu0 %2229 }
 0x150   : > { %2458 = vst.msk [vmem:[#allocation2 + $0x60] sm:$0xff] %vm2445_vm12, %v2422_v48 }
 0x151   : > { %2273 = vst.msk [vmem:[#allocation2 + $0x28] sm:$0xff] %vm2267_vm11, %v2230_v49 }
 0x153   : > { %v2424_v50 = vpop.permute.xlu1 %2423  ;;  %v2406_v51 = vpop.permute.xlu0 %2405 }
 0x154   : > { %2459 = vst.msk [vmem:[#allocation2 + $0x68] sm:$0xff] %vm2445_vm12, %v2424_v50  ;;  %2450 = vst.msk [vmem:[#allocation2 + $0x20] sm:$0xff] %vm2445_vm12, %v2406_v51 }
 0x157   : > { %v2967_v52 = vpop.permute.xlu1 %2966  ;;  %v2408_v53 = vpop.permute.xlu0 %2407 }
 0x158   : > { %3003 = vst.msk [vmem:[#allocation2 + $0x60] sm:$0xff] %vm2990_vm13, %v2967_v52 }
 0x159   : > { %2451 = vst.msk [vmem:[#allocation2 + $0x28] sm:$0xff] %vm2445_vm12, %v2408_v53 }
 0x15b   : > { %v2951_v21 = vpop.permute.xlu0 %2950  ;;  %v2969_v37 = vpop.permute.xlu1 %2968 }
 0x15c   : > { %2995 = vst.msk [vmem:[#allocation2 + $0x20] sm:$0xff] %vm2990_vm13, %v2951_v21  ;;  %3004 = vst.msk [vmem:[#allocation2 + $0x68] sm:$0xff] %vm2990_vm13, %v2969_v37 }
 0x15f   : > { %v2953_v54 = vpop.permute.xlu0 %2952  ;;  %v3288_v55 = vpop.permute.xlu1 %3287 }
 0x160   : > { %2996 = vst.msk [vmem:[#allocation2 + $0x28] sm:$0xff] %vm2990_vm13, %v2953_v54 }
 0x161   : > { %3324 = vst.msk [vmem:[#allocation2 + $0x60] sm:$0xff] %vm3311_vm14, %v3288_v55 }
 0x163   : > { %v3272_v11 = vpop.permute.xlu0 %3271 }
 0x164   : > { %3316 = vst.msk [vmem:[#allocation2 + $0x20] sm:$0xff] %vm3311_vm14, %v3272_v11 }
 0x168   : > { %v3340_v57 = vld [vmem:[#allocation2 + $0x60] sm:$0xff]  ;;  %v880_v46 = vpop.permute.xlu1 %879 }
 0x169   : > { %4571 = vmatprep.mubr.msk.bf16.mxu1 %vm3371_vm15, %v3340_v57  ;;  %914 = vst.msk [vmem:[#allocation2 + $0x70] sm:$0xff] %vm899_vm7, %v880_v46 }
 0x16a   : > { %v864_v56 = vpop.permute.xlu0 %863 }
 0x16b   : > { %v3332_v58 = vld [vmem:[#allocation2 + $0x20] sm:$0xff]  ;;  %906 = vst.msk [vmem:[#allocation2 + $0x30] sm:$0xff] %vm899_vm7, %v864_v56 }
 0x16c   : > { %4555 = vmatprep.mubr.msk.bf16.mxu0 %vm3371_vm15, %v3332_v58  ;;  %v3290_v43 = vpop.permute.xlu1 %3289 }
 0x16d   : > { %3325 = vst.msk [vmem:[#allocation2 + $0x68] sm:$0xff] %vm3311_vm14, %v3290_v43 }
 0x16e   : > { %v3274_v20 = vpop.permute.xlu0 %3273 }
 0x16f   : > { %3317 = vst.msk [vmem:[#allocation2 + $0x28] sm:$0xff] %vm3311_vm14, %v3274_v20 }
 0x173   : > { %v882_v59 = vpop.permute.xlu1 %881 }
 0x174   : > { %915 = vst.msk [vmem:[#allocation2 + $0x78] sm:$0xff] %vm899_vm7, %v882_v59  ;;  %v3341_v44 = vld [vmem:[#allocation2 + $0x68] sm:$0xff] }
 0x175   : > { %4572 = vmatmul.mubr.msk.bf16.gmra.mrb[8].mxu1 %vm3371_vm15, %v3341_v44 }
 0x176   : > { %v3333_v13 = vld [vmem:[#allocation2 + $0x28] sm:$0xff]  ;;  %v866_v60 = vpop.permute.xlu0 %865 }
 0x177   : > { %v1204_v61 = vpop.permute.xlu1 %1203  ;;  %4556 = vmatmul.mubr.msk.bf16.gmra.mrb[8].mxu0 %vm3371_vm15, %v3333_v13  ;;  %907 = vst.msk [vmem:[#allocation2 + $0x38] sm:$0xff] %vm899_vm7, %v866_v60 }
 0x178   : > { %1238 = vst.msk [vmem:[#allocation2 + $0x70] sm:$0xff] %vm1223_vm8, %v1204_v61 }
 0x17a   : > { %v1188_v63 = vpop.permute.xlu0 %1187 }
 0x17b   : > { %v1206_v1 = vpop.permute.xlu1 %1205  ;;  %1230 = vst.msk [vmem:[#allocation2 + $0x30] sm:$0xff] %vm1223_vm8, %v1188_v63 }
 0x17c   : > { %1239 = vst.msk [vmem:[#allocation2 + $0x78] sm:$0xff] %vm1223_vm8, %v1206_v1 }
 0x17e   : > { %v1190_v2 = vpop.permute.xlu0 %1189 }
 0x17f   : > { %v1382_v3 = vpop.permute.xlu1 %1381  ;;  %1231 = vst.msk [vmem:[#allocation2 + $0x38] sm:$0xff] %vm1223_vm8, %v1190_v2 }
 0x180   : > { %1416 = vst.msk [vmem:[#allocation2 + $0x70] sm:$0xff] %vm1401_vm9, %v1382_v3 }
 0x182   : > { %v1366_v4 = vpop.permute.xlu0 %1365 }
 0x183   : > { %v1384_v6 = vpop.permute.xlu1 %1383  ;;  %1408 = vst.msk [vmem:[#allocation2 + $0x30] sm:$0xff] %vm1401_vm9, %v1366_v4 }
 0x184   : > { %1417 = vst.msk [vmem:[#allocation2 + $0x78] sm:$0xff] %vm1401_vm9, %v1384_v6 }
 0x186   : > { %v1368_v7 = vpop.permute.xlu0 %1367 }
 0x187   : > { %v1927_v8 = vpop.permute.xlu1 %1926  ;;  %1409 = vst.msk [vmem:[#allocation2 + $0x38] sm:$0xff] %vm1401_vm9, %v1368_v7 }
 0x188   : > { %1961 = vst.msk [vmem:[#allocation2 + $0x70] sm:$0xff] %vm1946_vm10, %v1927_v8 }
 0x18a   : > { %v1911_v9 = vpop.permute.xlu0 %1910 }
 0x18b   : > { %v1929_v10 = vpop.permute.xlu1 %1928  ;;  %1953 = vst.msk [vmem:[#allocation2 + $0x30] sm:$0xff] %vm1946_vm10, %v1911_v9 }
 0x18c   : > { %1962 = vst.msk [vmem:[#allocation2 + $0x78] sm:$0xff] %vm1946_vm10, %v1929_v10 }
 0x18f   : > { %v2248_v12 = vpop.permute.xlu1 %2247 }
 0x190   : > { %v1913_v14 = vpop.permute.xlu0 %1912  ;;  %2282 = vst.msk [vmem:[#allocation2 + $0x70] sm:$0xff] %vm2267_vm11, %v2248_v12 }
 0x191   : > { %1954 = vst.msk [vmem:[#allocation2 + $0x38] sm:$0xff] %vm1946_vm10, %v1913_v14 }
 0x193   : > { %v2250_v15 = vpop.permute.xlu1 %2249 }
 0x194   : > { %v2232_v16 = vpop.permute.xlu0 %2231  ;;  %2283 = vst.msk [vmem:[#allocation2 + $0x78] sm:$0xff] %vm2267_vm11, %v2250_v15 }
 0x195   : > { %2274 = vst.msk [vmem:[#allocation2 + $0x30] sm:$0xff] %vm2267_vm11, %v2232_v16 }
 0x197   : > { %v2426_v17 = vpop.permute.xlu1 %2425 }
 0x198   : > { %v2234_v18 = vpop.permute.xlu0 %2233  ;;  %2460 = vst.msk [vmem:[#allocation2 + $0x70] sm:$0xff] %vm2445_vm12, %v2426_v17 }
 0x199   : > { %2275 = vst.msk [vmem:[#allocation2 + $0x38] sm:$0xff] %vm2267_vm11, %v2234_v18 }
 0x19b   : > { %v2428_v19 = vpop.permute.xlu1 %2427 }
 0x19c   : > { %v2410_v5 = vpop.permute.xlu0 %2409  ;;  %2461 = vst.msk [vmem:[#allocation2 + $0x78] sm:$0xff] %vm2445_vm12, %v2428_v19 }
 0x19d   : > { %2452 = vst.msk [vmem:[#allocation2 + $0x30] sm:$0xff] %vm2445_vm12, %v2410_v5 }
 0x19f   : > { %v2971_v23 = vpop.permute.xlu1 %2970 }
 0x1a0   : > { %v2412_v24 = vpop.permute.xlu0 %2411  ;;  %3005 = vst.msk [vmem:[#allocation2 + $0x70] sm:$0xff] %vm2990_vm13, %v2971_v23 }
 0x1a1   : > { %2453 = vst.msk [vmem:[#allocation2 + $0x38] sm:$0xff] %vm2445_vm12, %v2412_v24 }
 0x1a3   : > { %v2973_v25 = vpop.permute.xlu1 %2972 }
 0x1a4   : > { %v2955_v26 = vpop.permute.xlu0 %2954  ;;  %3006 = vst.msk [vmem:[#allocation2 + $0x78] sm:$0xff] %vm2990_vm13, %v2973_v25 }
 0x1a5   : > { %2997 = vst.msk [vmem:[#allocation2 + $0x30] sm:$0xff] %vm2990_vm13, %v2955_v26 }
 0x1a7   : > { %v3292_v22 = vpop.permute.xlu1 %3291 }
 0x1a8   : > { %v2957_v27 = vpop.permute.xlu0 %2956  ;;  %3326 = vst.msk [vmem:[#allocation2 + $0x70] sm:$0xff] %vm3311_vm14, %v3292_v22 }
 0x1a9   : > { %2998 = vst.msk [vmem:[#allocation2 + $0x38] sm:$0xff] %vm2990_vm13, %v2957_v27 }
 0x1ab   : > { %v3294_v28 = vpop.permute.xlu1 %3293 }
 0x1ac   : > { %v3276_v29 = vpop.permute.xlu0 %3275  ;;  %3327 = vst.msk [vmem:[#allocation2 + $0x78] sm:$0xff] %vm3311_vm14, %v3294_v28 }
 0x1ad   : > { %3318 = vst.msk [vmem:[#allocation2 + $0x30] sm:$0xff] %vm3311_vm14, %v3276_v29 }
 0x1af   : > { %v3342_v30 = vld [vmem:[#allocation2 + $0x70] sm:$0xff] }
 0x1b0   : > { %v3278_v31 = vpop.permute.xlu0 %3277  ;;  %4575 = vmatprep.mubr.msk.bf16.mxu1 %vm3371_vm15, %v3342_v30 }
 0x1b1   : > { %3319 = vst.msk [vmem:[#allocation2 + $0x38] sm:$0xff] %vm3311_vm14, %v3278_v31 }
 0x1b3   : > { %v3343_v32 = vld [vmem:[#allocation2 + $0x78] sm:$0xff] }
 0x1b4   : > { %v3334_v33 = vld [vmem:[#allocation2 + $0x30] sm:$0xff]  ;;  %4576 = vmatmul.mubr.msk.bf16.gmra.mrb[12].mxu1 %vm3371_vm15, %v3343_v32 }
 0x1b5   : > { %4559 = vmatprep.mubr.msk.bf16.mxu0 %vm3371_vm15, %v3334_v33 }
 0x1b8   : > { %v3335_v34 = vld [vmem:[#allocation2 + $0x38] sm:$0xff] }
 0x1b9   : > { %4560 = vmatmul.mubr.msk.bf16.gmra.mrb[12].mxu0 %vm3371_vm15, %v3335_v34 }
 0x1bd   : > { %v4549_v35 = vpop.f32.mrb[0].mxu0  ;;  %v4565_v36 = vpop.f32.mrb[0].mxu1 }
 0x1be   : > { %v3467_v38 = vadd.f32 %v4549_v35, %v5849_v62  ;;  %v3531_v39 = vadd.f32 %v4565_v36, %v5849_v62  ;;  %v3458_v0 = vpop.f32.mrb[1].mxu0  ;;  %v3522_v40 = vpop.f32.mrb[1].mxu1 }
 0x1bf   : > { %v3459_v41 = vadd.f32 %v5849_v62, %v3458_v0  ;;  %v3523_v42 = vadd.f32 %v5849_v62, %v3522_v40  ;;  %v4550_v45 = vpop.f32.mrb[2].mxu0  ;;  %v4566_v47 = vpop.f32.mrb[2].mxu1 }
 0x1c0   : > { %v3470_v48 = vadd.f32 %v4550_v45, %v5849_v62  ;;  %v3534_v49 = vadd.f32 %v4566_v47, %v5849_v62  ;;  %v3461_v50 = vpop.f32.mrb[3].mxu0  ;;  %v3525_v51 = vpop.f32.mrb[3].mxu1  ;;  %v3587_v21 = vmax.f32 %v3467_v38, 0.0  ;;  %v3603_v37 = vmax.f32 %v3531_v39, 0.0 }
 0x1c1   : > { %v3462_v52 = vadd.f32 %v5849_v62, %v3461_v50  ;;  %v3526_v53 = vadd.f32 %v5849_v62, %v3525_v51  ;;  %v3585_v11 = vmax.f32 %v3459_v41, 0.0  ;;  %v3601_v57 = vmax.f32 %v3523_v42, 0.0 }
 0x1c2   : > { %v3588_v54 = vmax.f32 %v3470_v48, 0.0  ;;  %v3604_v55 = vmax.f32 %v3534_v49, 0.0 }
 0x1c3   : > { %v3586_v46 = vmax.f32 %v3462_v52, 0.0  ;;  %v3602_v56 = vmax.f32 %v3526_v53, 0.0 }
 0x1c4   : > { %v4435_v58 = vpack.c.bf16 %v3588_v54, %v3587_v21  ;;  %v4475_v43 = vpack.c.bf16 %v3604_v55, %v3603_v37 }
 0x1c5   : > { %v4430_v20 = vpack.c.bf16 %v3586_v46, %v3585_v11  ;;  %v4470_v59 = vpack.c.bf16 %v3602_v56, %v3601_v57 }
 0x1c6   : > { %4507 = vst [vmem:[%s5863_s12 + $0x8] sm:$0xff] %v4435_v58   ;;  %4515 = vst [vmem:[%s5863_s12 + $0x48] sm:$0xff] %v4475_v43  }
 0x1c7   : > { %4431 = vst [vmem:[%s5863_s12] sm:$0xff] %v4430_v20   ;;  %4514 = vst [vmem:[%s5863_s12 + $0x40] sm:$0xff] %v4470_v59  }
 0x1ff   : > { %v4569_v44 = vpop.f32.mrb[4].mxu1 }
 0x200   : > { %v3547_v13 = vadd.f32 %v4569_v44, %v5849_v62  ;;  %v3538_v60 = vpop.f32.mrb[5].mxu1 }
 0x201   : > { %v4553_v61 = vpop.f32.mrb[4].mxu0  ;;  %v3539_v63 = vadd.f32 %v5849_v62, %v3538_v60  ;;  %v4570_v1 = vpop.f32.mrb[6].mxu1 }
 0x202   : > { %v3483_v2 = vadd.f32 %v4553_v61, %v5849_v62  ;;  %v3474_v3 = vpop.f32.mrb[5].mxu0  ;;  %v3550_v4 = vadd.f32 %v4570_v1, %v5849_v62  ;;  %v3541_v6 = vpop.f32.mrb[7].mxu1  ;;  %v3607_v10 = vmax.f32 %v3547_v13, 0.0 }
 0x203   : > { %v3475_v7 = vadd.f32 %v5849_v62, %v3474_v3  ;;  %v4554_v8 = vpop.f32.mrb[6].mxu0  ;;  %v3542_v9 = vadd.f32 %v5849_v62, %v3541_v6  ;;  %v3605_v16 = vmax.f32 %v3539_v63, 0.0 }
 0x204   : > { %v3486_v12 = vadd.f32 %v4554_v8, %v5849_v62  ;;  %v3608_v14 = vmax.f32 %v3550_v4, 0.0  ;;  %v3477_v15 = vpop.f32.mrb[7].mxu0  ;;  %v3591_v19 = vmax.f32 %v3483_v2, 0.0 }
 0x205   : > { %v3478_v17 = vadd.f32 %v5849_v62, %v3477_v15  ;;  %v3606_v18 = vmax.f32 %v3542_v9, 0.0  ;;  %v3589_v24 = vmax.f32 %v3475_v7, 0.0 }
 0x206   : > { %v3592_v5 = vmax.f32 %v3486_v12, 0.0  ;;  %v4485_v23 = vpack.c.bf16 %v3608_v14, %v3607_v10 }
 0x207   : > { %v3590_v25 = vmax.f32 %v3478_v17, 0.0  ;;  %v4480_v26 = vpack.c.bf16 %v3606_v18, %v3605_v16 }
 0x208   : > { %v4445_v22 = vpack.c.bf16 %v3592_v5, %v3591_v19  ;;  %4517 = vst [vmem:[%s5863_s12 + $0x58] sm:$0xff] %v4485_v23  }
 0x209   : > { %v4440_v27 = vpack.c.bf16 %v3590_v25, %v3589_v24  ;;  %4516 = vst [vmem:[%s5863_s12 + $0x50] sm:$0xff] %v4480_v26  }
 0x20a   : > { %4509 = vst [vmem:[%s5863_s12 + $0x18] sm:$0xff] %v4445_v22  }
 0x20b   : > { %4508 = vst [vmem:[%s5863_s12 + $0x10] sm:$0xff] %v4440_v27  }
 0x248   : > { %v4573_v28 = vpop.f32.mrb[8].mxu1 }
 0x249   : > { %v3563_v29 = vadd.f32 %v4573_v28, %v5849_v62  ;;  %v3554_v30 = vpop.f32.mrb[9].mxu1 }
 0x24a   : > { %v4557_v31 = vpop.f32.mrb[8].mxu0  ;;  %v3555_v32 = vadd.f32 %v5849_v62, %v3554_v30  ;;  %v4574_v33 = vpop.f32.mrb[10].mxu1 }
 0x24b   : > { %v3499_v34 = vadd.f32 %v4557_v31, %v5849_v62  ;;  %v3490_v35 = vpop.f32.mrb[9].mxu0  ;;  %v3566_v36 = vadd.f32 %v4574_v33, %v5849_v62  ;;  %v3557_v38 = vpop.f32.mrb[11].mxu1  ;;  %v3611_v41 = vmax.f32 %v3563_v29, 0.0 }
 0x24c   : > { %v3491_v39 = vadd.f32 %v5849_v62, %v3490_v35  ;;  %v4558_v0 = vpop.f32.mrb[10].mxu0  ;;  %v3558_v40 = vadd.f32 %v5849_v62, %v3557_v38  ;;  %v3609_v48 = vmax.f32 %v3555_v32, 0.0 }
 0x24d   : > { %v3502_v42 = vadd.f32 %v4558_v0, %v5849_v62  ;;  %v3612_v45 = vmax.f32 %v3566_v36, 0.0  ;;  %v3493_v47 = vpop.f32.mrb[11].mxu0  ;;  %v3595_v51 = vmax.f32 %v3499_v34, 0.0 }
 0x24e   : > { %v3494_v49 = vadd.f32 %v5849_v62, %v3493_v47  ;;  %v3610_v50 = vmax.f32 %v3558_v40, 0.0  ;;  %v3593_v21 = vmax.f32 %v3491_v39, 0.0 }
 0x24f   : > { %v3596_v52 = vmax.f32 %v3502_v42, 0.0  ;;  %v4495_v53 = vpack.c.bf16 %v3612_v45, %v3611_v41 }
 0x250   : > { %v3594_v37 = vmax.f32 %v3494_v49, 0.0  ;;  %v4490_v54 = vpack.c.bf16 %v3610_v50, %v3609_v48 }
 0x251   : > { %v4455_v55 = vpack.c.bf16 %v3596_v52, %v3595_v51  ;;  %4519 = vst [vmem:[%s5863_s12 + $0x68] sm:$0xff] %v4495_v53  }
 0x252   : > { %v4450_v11 = vpack.c.bf16 %v3594_v37, %v3593_v21  ;;  %4518 = vst [vmem:[%s5863_s12 + $0x60] sm:$0xff] %v4490_v54  }
 0x253   : > { %4511 = vst [vmem:[%s5863_s12 + $0x28] sm:$0xff] %v4455_v55  }
 0x254   : > { %4510 = vst [vmem:[%s5863_s12 + $0x20] sm:$0xff] %v4450_v11  }
 0x287   : > { %v4577_v57 = vpop.f32.mrb[12].mxu1 }
 0x288   : > { %v3579_v46 = vadd.f32 %v4577_v57, %v5849_v62  ;;  %v3570_v56 = vpop.f32.mrb[13].mxu1 }
 0x289   : > { %v3571_v58 = vadd.f32 %v5849_v62, %v3570_v56  ;;  %v4578_v43 = vpop.f32.mrb[14].mxu1 }
 0x28a   : > { %v3582_v20 = vadd.f32 %v4578_v43, %v5849_v62  ;;  %v3573_v59 = vpop.f32.mrb[15].mxu1  ;;  %v3615_v60 = vmax.f32 %v3579_v46, 0.0 }
 0x28b   : > { %v3574_v44 = vadd.f32 %v5849_v62, %v3573_v59  ;;  %v3613_v2 = vmax.f32 %v3571_v58, 0.0 }
 0x28c   : > { %v4561_v13 = vpop.f32.mrb[12].mxu0  ;;  %v3616_v61 = vmax.f32 %v3582_v20, 0.0 }
 0x28d   : > { %v3515_v63 = vadd.f32 %v4561_v13, %v5849_v62  ;;  %v3506_v1 = vpop.f32.mrb[13].mxu0  ;;  %v3614_v3 = vmax.f32 %v3574_v44, 0.0 }
 0x28e   : > { %v3507_v4 = vadd.f32 %v5849_v62, %v3506_v1  ;;  %v4562_v6 = vpop.f32.mrb[14].mxu0  ;;  %v4505_v7 = vpack.c.bf16 %v3616_v61, %v3615_v60 }
 0x28f   : > { %v3518_v8 = vadd.f32 %v4562_v6, %v5849_v62  ;;  %v3509_v9 = vpop.f32.mrb[15].mxu0  ;;  %v4500_v10 = vpack.c.bf16 %v3614_v3, %v3613_v2  ;;  %v3599_v14 = vmax.f32 %v3515_v63, 0.0 }
 0x290   : > { %4521 = vst [vmem:[%s5863_s12 + $0x78] sm:$0xff] %v4505_v7   ;;  %v3510_v12 = vadd.f32 %v5849_v62, %v3509_v9  ;;  %v3597_v16 = vmax.f32 %v3507_v4, 0.0 }
 0x291   : > { %v3600_v15 = vmax.f32 %v3518_v8, 0.0  ;;  %4520 = vst [vmem:[%s5863_s12 + $0x70] sm:$0xff] %v4500_v10  }
 0x292   : > { %v3598_v17 = vmax.f32 %v3510_v12, 0.0 }
 0x293   : > { %v4465_v18 = vpack.c.bf16 %v3600_v15, %v3599_v14 }
 0x294   : > { %v4460_v19 = vpack.c.bf16 %v3598_v17, %v3597_v16 }
 0x295   : > { %4513 = vst [vmem:[%s5863_s12 + $0x38] sm:$0xff] %v4465_v18  }
 0x296   : > { %4512 = vst [vmem:[%s5863_s12 + $0x30] sm:$0xff] %v4460_v19  }
 0x297 PF: > { %s13_s14 = sadd.s32 1, %s4693_s14   ;;  %s5922_s12 = smov %s4689_s13 }
 0x298   : > { %p10_p5 = scmp.ge.s32.totalorder %s13_s14, 4   ;;  %s5923_s13 = smov %s5925_s15 }
 0x29a   :  { %12 = sbr.rel (!%p10_p5) target bundleno = 2 (0x2), region = 70 }

</bundles_post_ra>
